<compile_context>
chip_gen: v7x
topology: tpu7x:2x2x1
jax: 0.10.0
libtpu: 0.0.40
codegen_flags: <defaults>
</compile_context>

<pallas_src>
import functools

import jax
import jax.numpy as jnp
from jax.experimental import pallas as pl
from jax.experimental.pallas import tpu as pltpu


def _round_up(v, m):
    return ((v + m - 1) // m) * m


# ----------------------------------------------------------------------------
# Single fused kernel (channel-major, lane-dense (rows, N*H*W) blocks)
# ----------------------------------------------------------------------------
def _fused_kernel(x_ref, mid_ref, pool_ref, bsel_ref, masks_ref,
                  caw1_ref, cab1_ref, caw2_ref, cab2_ref,
                  w1s_ref, w2s_ref, gamma_ref, beta_ref,
                  krt_ref, kit_ref, b1a_ref, b1b_ref, b2r_ref, b2i_ref,
                  grt_ref, git_ref,
                  dw1_ref, db1_ref, dw2_ref, db2_ref,
                  out_ref, pad_ref, stk_ref, *, W, pad):
    f32 = jnp.float32
    x = x_ref[...]                                      # (C, NL)
    C, NL = x.shape
    N = pool_ref.shape[1]

    # ---- channel attention: per-image avg pool as a K=NL matmul ------------
    pooled = jnp.dot(x, pool_ref[...], preferred_element_type=f32)       # (C, N)
    h = jnp.maximum(jnp.dot(caw1_ref[...], pooled, preferred_element_type=f32)
                    + cab1_ref[...], 0.0)                                # (Cr, N)
    a = jax.nn.sigmoid(jnp.dot(caw2_ref[...], h, preferred_element_type=f32)
                       + cab2_ref[...])                                  # (C, N)
    # broadcast the per-image scale over its L columns on the VPU (no matmul)
    scale = a[:, 0:1] * bsel_ref[0:1, :]
    for n in range(1, N):
        scale = scale + a[:, n:n + 1] * bsel_ref[n:n + 1, :]
    y = x * scale                                                         # (C, NL)

    # ---- 3x3 "same" convs: 9 taps stacked along the contraction axis -> ----
    # ---- ONE MXU matmul per conv layer (shifts via zero-padded scratch) ----
    offs = [dy * W + dx for dy in (-1, 0, 1) for dx in (-1, 0, 1)]

    def conv3x3(inp, w_stk):
        cin = inp.shape[0]
        pad_ref[:cin, :] = jnp.zeros((cin, pad_ref.shape[1]), f32)
        pad_ref[:cin, pad:pad + NL] = inp
        for k, off in enumerate(offs):
            tap = pad_ref[:cin, pad + off:pad + off + NL]                 # (cin, NL)
            stk_ref[k * cin:(k + 1) * cin, :] = tap * masks_ref[k:k + 1, :]
        return jnp.dot(w_stk, stk_ref[:9 * cin, :],
                       preferred_element_type=f32)

    t1 = jnp.maximum(conv3x3(y, w1s_ref[...]), 0.0)                       # (Cs, NL)
    y1 = conv3x3(t1, w2s_ref[...])                                        # (C, NL)
    y1m = jnp.maximum(jnp.max(y1, axis=0, keepdims=True), 1.0)            # (1, NL)

    # ---- BatchNorm2d (training-mode batch statistics, PyTorch default) -----
    mean = jnp.mean(x, axis=1, keepdims=True)                             # (C, 1)
    var = jnp.mean(jnp.square(x - mean), axis=1, keepdims=True)
    xn = (x - mean) * jax.lax.rsqrt(var + 1e-5)
    xn = xn * gamma_ref[...] + beta_ref[...]

    # ---- spectral branch: rfft2 / irfft2 as precomputed DFT matmuls, -------
    # ---- complex channel MLP in block-real form (spectral lanes padded) ----
    zr = jnp.dot(xn, krt_ref[...], preferred_element_type=f32)            # (C, Mp)
    zi = jnp.dot(xn, kit_ref[...], preferred_element_type=f32)            # (C, Mp)
    hf = jnp.maximum(jnp.dot(b1a_ref[...], zr, preferred_element_type=f32)
                     + jnp.dot(b1b_ref[...], zi, preferred_element_type=f32),
                     0.0)                                                  # (2Cf, Mp)
    ur = jnp.dot(b2r_ref[...], hf, preferred_element_type=f32)            # (C, Mp)
    ui = jnp.dot(b2i_ref[...], hf, preferred_element_type=f32)            # (C, Mp)
    y2 = (jnp.dot(ur, grt_ref[...], preferred_element_type=f32)
          + jnp.dot(ui, git_ref[...], preferred_element_type=f32))        # (C, NL)

    # ---- y1_max gating + residual + BOTH derivate heads (stacked) ----------
    # NOTE: approx reciprocal (EUP slot) replaces the exact divide of the
    # reference; relative error ~1e-3, well inside the test tolerance.
    gate = y1m * jnp.tanh(y2 * pl.reciprocal(y1m, approx=True))
    xs = y1 + gate + x + mid_ref[...]                                     # (C, NL)
    hh = jnp.maximum(jnp.dot(dw1_ref[...], xs, preferred_element_type=f32)
                     + db1_ref[...], 0.0)                                 # (2Cc, NL)
    out_ref[...] = (jnp.dot(dw2_ref[...], hh, preferred_element_type=f32)
                    + db2_ref[...]).astype(out_ref.dtype)                 # (2C, NL)


# ----------------------------------------------------------------------------
# Constant-operand builders (all shape-only -> constant folded under jit)
# ----------------------------------------------------------------------------
def _conv_masks(N, H, W, dtype=jnp.float32):
    """(9, N*H*W) boundary masks for the 9 conv taps, (kh, kw) row-major."""
    L = H * W
    cols = jnp.arange(N * L)
    pix = cols % L
    yy = pix // W
    xx = pix % W
    rows = []
    for dy in (-1, 0, 1):
        for dx in (-1, 0, 1):
            rows.append((yy + dy >= 0) & (yy + dy < H) &
                        (xx + dx >= 0) & (xx + dx < W))
    return jnp.stack(rows, axis=0).astype(dtype)


def _dft_operands(N, H, W, Mp, dtype=jnp.float32):
    """Real matmul operands implementing rfft2 / irfft2 (norm='backward')."""
    assert W % 2 == 0
    L = H * W
    Wf = W // 2 + 1
    Lf = H * Wf
    hh = jnp.arange(H).astype(dtype)
    ww = jnp.arange(W).astype(dtype)
    wf = jnp.arange(Wf).astype(dtype)

    # forward: Z = FH @ x @ FWr^T   (full DFT over H, half-spectrum over W)
    FH = jnp.exp(-2j * jnp.pi * jnp.outer(hh, hh) / H)               # (H, H)
    FWr = jnp.exp(-2j * jnp.pi * jnp.outer(wf, ww) / W)              # (Wf, W)
    K = jnp.kron(FH, FWr)                                            # (Lf, L)

    # inverse: y = Re(IFH @ U) @ Cw - Im(IFH @ U) @ Sw   (1/(H*W) scaling)
    IFH = jnp.exp(2j * jnp.pi * jnp.outer(hh, hh) / H) / H           # (H, H)
    Ar, Ai = jnp.real(IFH), jnp.imag(IFH)
    cvec = jnp.ones((Wf,), dtype).at[1:Wf - 1].set(2.0)              # Hermitian weights
    ang = 2.0 * jnp.pi * jnp.outer(wf, ww) / W
    Cw = (cvec[:, None] * jnp.cos(ang)) / W                          # (Wf, W)
    Sw = (cvec[:, None] * jnp.sin(ang)) / W
    Gr = jnp.kron(Ar, Cw.T) - jnp.kron(Ai, Sw.T)                     # (L, Lf)
    Gi = -(jnp.kron(Ai, Cw.T) + jnp.kron(Ar, Sw.T))

    eyeN = jnp.eye(N, dtype=dtype)
    padf = Mp - N * Lf
    KrT = jnp.pad(jnp.kron(eyeN, jnp.real(K).T.astype(dtype)), ((0, 0), (0, padf)))
    KiT = jnp.pad(jnp.kron(eyeN, jnp.imag(K).T.astype(dtype)), ((0, 0), (0, padf)))
    GrT = jnp.pad(jnp.kron(eyeN, Gr.T.astype(dtype)), ((0, padf), (0, 0)))
    GiT = jnp.pad(jnp.kron(eyeN, Gi.T.astype(dtype)), ((0, padf), (0, 0)))
    return KrT, KiT, GrT, GiT


# ----------------------------------------------------------------------------
# Full module forward (one pallas_call)
# ----------------------------------------------------------------------------
def auxiliary_variable_module(x_nchw, mid_nchw, params):
    N, C, H, W = x_nchw.shape
    L = H * W
    NL = N * L
    Wf = W // 2 + 1
    Lf = H * Wf
    Mp = _round_up(N * Lf, 128)          # spectral lanes padded to 128-multiple
    PAD = 64                             # zero margin for conv tap shifts
    NLP = NL + 2 * PAD
    f32 = jnp.float32

    Cs = params['conv1_w'].shape[0]
    Cf = params['w1'].shape[-1]
    Cr = params['ca_w1'].shape[0]
    Cc = params['d1_w1'].shape[0]
    Cm = max(C, Cs)

    # channel-major, lane-dense layout (rows, N*H*W); columns are batch-major.
    def to_cmajor(t):
        return jnp.transpose(t.reshape(N, C, L), (1, 0, 2)).reshape(C, NL)

    def from_cmajor(t):
        return jnp.transpose(t.reshape(C, N, L), (1, 0, 2)).reshape(N, C, H, W)

    x_cm = to_cmajor(x_nchw.astype(f32))
    mid_cm = to_cmajor(mid_nchw.astype(f32))

    # constant operands (shape-only)
    bsel = jnp.kron(jnp.eye(N, dtype=f32), jnp.ones((1, L), f32))   # (N, NL)
    pool = bsel.T / float(L)                                        # (NL, N)
    masks = _conv_masks(N, H, W, f32)                               # (9, NL)
    KrT, KiT, GrT, GiT = _dft_operands(N, H, W, Mp, f32)

    # parameter repack (tiny XLA ops)
    w1s = jnp.transpose(params['conv1_w'], (0, 2, 3, 1)).reshape(Cs, 9 * C)
    w2s = jnp.transpose(params['conv2_w'], (0, 2, 3, 1)).reshape(C, 9 * Cs)
    w1r, w1i = params['w1'][0], params['w1'][1]          # (C, Cf)
    w2r, w2i = params['w2'][0], params['w2'][1]          # (Cf, C)
    b1a = jnp.concatenate([w1r.T, w1i.T], axis=0)        # (2Cf, C)  * Zr
    b1b = jnp.concatenate([-w1i.T, w1r.T], axis=0)       # (2Cf, C)  * Zi
    b2r = jnp.concatenate([w2r.T, -w2i.T], axis=1)       # (C, 2Cf)
    b2i = jnp.concatenate([w2i.T, w2r.T], axis=1)        # (C, 2Cf)
    dw1 = jnp.concatenate([params['d1_w1'], params['d2_w1']], axis=0)      # (2Cc, C)
    db1 = jnp.concatenate([params['d1_b1'], params['d2_b1']]).reshape(2 * Cc, 1)
    zcc = jnp.zeros((C, Cc), f32)
    dw2 = jnp.block([[params['d1_w2'], zcc], [zcc, params['d2_w2']]])      # (2C, 2Cc)
    db2 = jnp.concatenate([params['d1_b2'], params['d2_b2']]).reshape(2 * C, 1)

    kernel = functools.partial(_fused_kernel, W=W, pad=PAD)
    vmem = pl.BlockSpec(memory_space=pltpu.MemorySpace.VMEM)
    out2 = pl.pallas_call(
        kernel,
        out_shape=jax.ShapeDtypeStruct((2 * C, NL), f32),
        in_specs=[vmem] * 25,
        out_specs=vmem,
        scratch_shapes=[pltpu.VMEM((Cm, NLP), f32),        # padded conv input
                        pltpu.VMEM((9 * Cm, NL), f32)],    # stacked conv taps
    )(x_cm, mid_cm, pool, bsel, masks,
      params['ca_w1'], params['ca_b1'].reshape(Cr, 1),
      params['ca_w2'], params['ca_b2'].reshape(C, 1),
      w1s, w2s,
      params['bn_gamma'].reshape(C, 1), params['bn_beta'].reshape(C, 1),
      KrT, KiT, b1a, b1b, b2r, b2i, GrT, GiT,
      dw1, db1, dw2, db2)

    return from_cmajor(out2[:C]), from_cmajor(out2[C:])


# ----------------------------------------------------------------------------
# Pure-JAX / XLA reference of the PyTorch module (numerical self-check)
# ----------------------------------------------------------------------------
def _reference_forward(x, mid, params):
    hp = jax.lax.Precision.HIGHEST
    N, C, H, W = x.shape

    # Channle_attention
    pooled = jnp.mean(x, axis=(2, 3))                                   # (N, C)
    h = jnp.maximum(jnp.einsum('nc,oc->no', pooled, params['ca_w1'],
                               precision=hp) + params['ca_b1'], 0.0)
    a = jax.nn.sigmoid(jnp.einsum('no,co->nc', h, params['ca_w2'],
                                  precision=hp) + params['ca_b2'])
    y1 = x * a[:, :, None, None]

    dn = ('NCHW', 'OIHW', 'NCHW')
    y1 = jax.lax.conv_general_dilated(y1, params['conv1_w'], (1, 1), 'SAME',
                                      dimension_numbers=dn, precision=hp)
    y1 = jnp.maximum(y1, 0.0)
    y1 = jax.lax.conv_general_dilated(y1, params['conv2_w'], (1, 1), 'SAME',
                                      dimension_numbers=dn, precision=hp)
    y1_max = jnp.maximum(jnp.max(y1, axis=1, keepdims=True), 1.0)

    # BatchNorm2d (training-mode batch statistics)
    mean = jnp.mean(x, axis=(0, 2, 3), keepdims=True)
    var = jnp.var(x, axis=(0, 2, 3), keepdims=True)
    y2 = (x - mean) * jax.lax.rsqrt(var + 1e-5)
    y2 = (y2 * params['bn_gamma'][None, :, None, None]
          + params['bn_beta'][None, :, None, None])

    # spectral complex MLP
    z = jnp.fft.rfft2(y2, axes=(-2, -1))                 # (N, C, H, Wf)
    z = jnp.transpose(z, (0, 2, 3, 1))                   # (N, H, Wf, C)
    zr, zi = jnp.real(z), jnp.imag(z)
    w1r, w1i = params['w1'][0], params['w1'][1]
    w2r, w2i = params['w2'][0], params['w2'][1]
    hr = (jnp.einsum('nhwc,cf->nhwf', zr, w1r, precision=hp)
          - jnp.einsum('nhwc,cf->nhwf', zi, w1i, precision=hp))
    hi = (jnp.einsum('nhwc,cf->nhwf', zr, w1i, precision=hp)
          + jnp.einsum('nhwc,cf->nhwf', zi, w1r, precision=hp))
    hr, hi = jnp.maximum(hr, 0.0), jnp.maximum(hi, 0.0)
    ur = (jnp.einsum('nhwf,fc->nhwc', hr, w2r, precision=hp)
          - jnp.einsum('nhwf,fc->nhwc', hi, w2i, precision=hp))
    ui = (jnp.einsum('nhwf,fc->nhwc', hr, w2i, precision=hp)
          + jnp.einsum('nhwf,fc->nhwc', hi, w2r, precision=hp))
    u = jnp.transpose(jax.lax.complex(ur, ui), (0, 3, 1, 2))
    y2 = jnp.fft.irfft2(u, s=(H, W), axes=(-2, -1))
    y2 = y1_max * jnp.tanh(y2 / y1_max)

    xs = y1 + y2 + x + mid

    def deriv(t, w1, b1, w2, b2):
        hh = jnp.maximum(jnp.einsum('nchw,oc->nohw', t, w1, precision=hp)
                         + b1[None, :, None, None], 0.0)
        return (jnp.einsum('nohw,co->nchw', hh, w2, precision=hp)
                + b2[None, :, None, None])

    out = deriv(xs, params['d1_w1'], params['d1_b1'],
                params['d1_w2'], params['d1_b2'])
    xn = deriv(xs, params['d2_w1'], params['d2_b1'],
               params['d2_w2'], params['d2_b2'])
    return out, xn


# ----------------------------------------------------------------------------
# Main
# ----------------------------------------------------------------------------
if __name__ == "__main__":
    N, C, H, W = 2, 4, 16, 16
    ratio_spatial, ratio_freq, coefficient, r = 2, 2, 2, 3
    Cr = C // r            # channel-attention bottleneck
    Cs = C * ratio_spatial
    Cf = C * ratio_freq
    Cc = C * coefficient

    key = jax.random.PRNGKey(0)
    keys = jax.random.split(key, 20)

    def init(k, shape, scale=0.3):
        return (jax.random.uniform(k, shape, jnp.float32) - 0.5) * 2.0 * scale

    params = dict(
        # Channle_attention (1x1 convs, PyTorch (Cout, Cin) layout)
        ca_w1=init(keys[0], (Cr, C)), ca_b1=init(keys[1], (Cr,)),
        ca_w2=init(keys[2], (C, Cr)), ca_b2=init(keys[3], (C,)),
        # 3x3 convs (OIHW, no bias)
        conv1_w=init(keys[4], (Cs, C, 3, 3)),
        conv2_w=init(keys[5], (C, Cs, 3, 3)),
        # BatchNorm2d affine params (PyTorch init: weight=1, bias=0)
        bn_gamma=jnp.ones((C,), jnp.float32),
        bn_beta=jnp.zeros((C,), jnp.float32),
        # complex spectral weights w1: (2, C, Cf), w2: (2, Cf, C)
        w1=init(keys[6], (2, C, Cf)), w2=init(keys[7], (2, Cf, C)),
        # derivate #1
        d1_w1=init(keys[8], (Cc, C)), d1_b1=init(keys[9], (Cc,)),
        d1_w2=init(keys[10], (C, Cc)), d1_b2=init(keys[11], (C,)),
        # derivate #2
        d2_w1=init(keys[12], (Cc, C)), d2_b1=init(keys[13], (Cc,)),
        d2_w2=init(keys[14], (C, Cc)), d2_b2=init(keys[15], (C,)),
    )

    x = jax.random.normal(keys[16], (N, C, H, W), jnp.float32)
    mid = jax.random.normal(keys[17], (N, C, H, W), jnp.float32)

    fwd = jax.jit(functools.partial(auxiliary_variable_module, params=params))
    out, x_new = fwd(x, mid)
    jax.block_until_ready((out, x_new))
    assert out.shape == (N, C, H, W) and x_new.shape == (N, C, H, W)

    # numerical self-check of the fused Pallas path vs. a pure-XLA reference
    ref_out, ref_x = jax.jit(
        functools.partial(_reference_forward, params=params))(x, mid)
    jax.block_until_ready((ref_out, ref_x))
    err = max(float(jnp.max(jnp.abs(out - ref_out))),
              float(jnp.max(jnp.abs(x_new - ref_x))))
    assert err < 5e-2, f"kernel/reference mismatch: max abs err = {err}"

    print("KERNEL_OK")
</pallas_src>

<mosaic_0001>
module attributes {stable_mosaic.version = 11 : i64} {
  func.func @_fused_kernel(%arg0: memref<4x512xf32, #tpu.memory_space<vmem>>, %arg1: memref<4x512xf32, #tpu.memory_space<vmem>>, %arg2: memref<512x2xf32, #tpu.memory_space<vmem>>, %arg3: memref<2x512xf32, #tpu.memory_space<vmem>>, %arg4: memref<9x512xf32, #tpu.memory_space<vmem>>, %arg5: memref<1x4xf32, #tpu.memory_space<vmem>>, %arg6: memref<1x1xf32, #tpu.memory_space<vmem>>, %arg7: memref<4x1xf32, #tpu.memory_space<vmem>>, %arg8: memref<4x1xf32, #tpu.memory_space<vmem>>, %arg9: memref<8x36xf32, #tpu.memory_space<vmem>>, %arg10: memref<4x72xf32, #tpu.memory_space<vmem>>, %arg11: memref<4x1xf32, #tpu.memory_space<vmem>>, %arg12: memref<4x1xf32, #tpu.memory_space<vmem>>, %arg13: memref<512x384xf32, #tpu.memory_space<vmem>>, %arg14: memref<512x384xf32, #tpu.memory_space<vmem>>, %arg15: memref<16x4xf32, #tpu.memory_space<vmem>>, %arg16: memref<16x4xf32, #tpu.memory_space<vmem>>, %arg17: memref<4x16xf32, #tpu.memory_space<vmem>>, %arg18: memref<4x16xf32, #tpu.memory_space<vmem>>, %arg19: memref<384x512xf32, #tpu.memory_space<vmem>>, %arg20: memref<384x512xf32, #tpu.memory_space<vmem>>, %arg21: memref<16x4xf32, #tpu.memory_space<vmem>>, %arg22: memref<16x1xf32, #tpu.memory_space<vmem>>, %arg23: memref<8x16xf32, #tpu.memory_space<vmem>>, %arg24: memref<8x1xf32, #tpu.memory_space<vmem>>, %arg25: memref<8x512xf32, #tpu.memory_space<vmem>>, %arg26: memref<8x640xf32, #tpu.memory_space<vmem>>, %arg27: memref<72x512xf32, #tpu.memory_space<vmem>>) attributes {dimension_semantics = [], scalar_prefetch = 0 : i64, scratch_operands = 2 : i64, tpu.core_type = #tpu.core_type<tc>} {
    %c0 = arith.constant 0 : index
    %c0_0 = arith.constant 0 : index
    %0 = vector.load %arg0[%c0, %c0_0] : memref<4x512xf32, #tpu.memory_space<vmem>>, vector<4x512xf32>
    %c0_1 = arith.constant 0 : index
    %c0_2 = arith.constant 0 : index
    %1 = vector.load %arg2[%c0_1, %c0_2] : memref<512x2xf32, #tpu.memory_space<vmem>>, vector<512x2xf32>
    %cst = arith.constant dense<0.000000e+00> : vector<4x2xf32>
    %2 = tpu.matmul %0, %1, %cst {dimension_numbers = #tpu.dot_dimension_numbers<[1], [0], [0], [1], [0, 0, 1, 1], [], []>} : vector<4x512xf32>, vector<512x2xf32>, vector<4x2xf32> -> vector<4x2xf32>
    %c0_3 = arith.constant 0 : index
    %c0_4 = arith.constant 0 : index
    %3 = vector.load %arg5[%c0_3, %c0_4] : memref<1x4xf32, #tpu.memory_space<vmem>>, vector<1x4xf32>
    %cst_5 = arith.constant dense<0.000000e+00> : vector<1x2xf32>
    %4 = tpu.matmul %3, %2, %cst_5 {dimension_numbers = #tpu.dot_dimension_numbers<[1], [0], [0], [1], [0, 0, 1, 1], [], []>} : vector<1x4xf32>, vector<4x2xf32>, vector<1x2xf32> -> vector<1x2xf32>
    %c0_6 = arith.constant 0 : index
    %c0_7 = arith.constant 0 : index
    %5 = vector.load %arg6[%c0_6, %c0_7] : memref<1x1xf32, #tpu.memory_space<vmem>>, vector<1x1xf32>
    %6 = vector.broadcast %5 : vector<1x1xf32> to vector<1x2xf32>
    %7 = arith.addf %4, %6 : vector<1x2xf32>
    %cst_8 = arith.constant 0.000000e+00 : f32
    %8 = vector.broadcast %cst_8 : f32 to vector<1x2xf32>
    %9 = arith.maximumf %7, %8 : vector<1x2xf32>
    %c0_9 = arith.constant 0 : index
    %c0_10 = arith.constant 0 : index
    %10 = vector.load %arg7[%c0_9, %c0_10] : memref<4x1xf32, #tpu.memory_space<vmem>>, vector<4x1xf32>
    %cst_11 = arith.constant dense<0.000000e+00> : vector<4x2xf32>
    %11 = tpu.matmul %10, %9, %cst_11 {dimension_numbers = #tpu.dot_dimension_numbers<[1], [0], [0], [1], [0, 0, 1, 1], [], []>} : vector<4x1xf32>, vector<1x2xf32>, vector<4x2xf32> -> vector<4x2xf32>
    %c0_12 = arith.constant 0 : index
    %c0_13 = arith.constant 0 : index
    %12 = vector.load %arg8[%c0_12, %c0_13] : memref<4x1xf32, #tpu.memory_space<vmem>>, vector<4x1xf32>
    %13 = vector.broadcast %12 : vector<4x1xf32> to vector<4x2xf32>
    %14 = arith.addf %11, %13 : vector<4x2xf32>
    %15 = arith.negf %14 : vector<4x2xf32>
    %16 = math.exp %15 : vector<4x2xf32>
    %cst_14 = arith.constant 1.000000e+00 : f32
    %17 = vector.broadcast %cst_14 : f32 to vector<4x2xf32>
    %18 = arith.addf %17, %16 : vector<4x2xf32>
    %19 = arith.divf %17, %18 : vector<4x2xf32>
    %20 = vector.extract_strided_slice %19 {offsets = [0, 0], sizes = [4, 1], strides = [1, 1]} : vector<4x2xf32> to vector<4x1xf32>
    %c0_15 = arith.constant 0 : index
    %c0_16 = arith.constant 0 : index
    %21 = vector.load %arg3[%c0_15, %c0_16] : memref<2x512xf32, #tpu.memory_space<vmem>>, vector<1x512xf32>
    %22 = vector.broadcast %20 : vector<4x1xf32> to vector<4x512xf32>
    %23 = vector.broadcast %21 : vector<1x512xf32> to vector<4x512xf32>
    %24 = arith.mulf %22, %23 : vector<4x512xf32>
    %25 = vector.extract_strided_slice %19 {offsets = [0, 1], sizes = [4, 1], strides = [1, 1]} : vector<4x2xf32> to vector<4x1xf32>
    %c1 = arith.constant 1 : index
    %c0_17 = arith.constant 0 : index
    %26 = vector.load %arg3[%c1, %c0_17] : memref<2x512xf32, #tpu.memory_space<vmem>>, vector<1x512xf32>
    %27 = vector.broadcast %25 : vector<4x1xf32> to vector<4x512xf32>
    %28 = vector.broadcast %26 : vector<1x512xf32> to vector<4x512xf32>
    %29 = arith.mulf %27, %28 : vector<4x512xf32>
    %30 = arith.addf %24, %29 : vector<4x512xf32>
    %31 = arith.mulf %0, %30 : vector<4x512xf32>
    %c0_18 = arith.constant 0 : index
    %c0_19 = arith.constant 0 : index
    %32 = vector.load %arg9[%c0_18, %c0_19] : memref<8x36xf32, #tpu.memory_space<vmem>>, vector<8x36xf32>
    %cst_20 = arith.constant 0.000000e+00 : f32
    %33 = vector.broadcast %cst_20 : f32 to vector<4x640xf32>
    %c0_21 = arith.constant 0 : index
    %c0_22 = arith.constant 0 : index
    %34 = vector.load %arg26[%c0_21, %c0_22] : memref<8x640xf32, #tpu.memory_space<vmem>>, vector<4x640xf32>
    tpu.vector_store %arg26[%c0_21, %c0_22], %33 {strides = array<i32>} : memref<8x640xf32, #tpu.memory_space<vmem>>, vector<4x640xf32>,
    %c0_23 = arith.constant 0 : index
    %c64 = arith.constant 64 : index
    %35 = vector.load %arg26[%c0_23, %c64] : memref<8x640xf32, #tpu.memory_space<vmem>>, vector<4x512xf32>
    tpu.vector_store %arg26[%c0_23, %c64], %31 {strides = array<i32>} : memref<8x640xf32, #tpu.memory_space<vmem>>, vector<4x512xf32>,
    %c0_24 = arith.constant 0 : index
    %c47 = arith.constant 47 : index
    %36 = vector.load %arg26[%c0_24, %c47] : memref<8x640xf32, #tpu.memory_space<vmem>>, vector<4x512xf32>
    %c0_25 = arith.constant 0 : index
    %c0_26 = arith.constant 0 : index
    %37 = vector.load %arg4[%c0_25, %c0_26] : memref<9x512xf32, #tpu.memory_space<vmem>>, vector<1x512xf32>
    %38 = vector.broadcast %37 : vector<1x512xf32> to vector<4x512xf32>
    %39 = arith.mulf %36, %38 : vector<4x512xf32>
    %c0_27 = arith.constant 0 : index
    %c0_28 = arith.constant 0 : index
    %40 = vector.load %arg27[%c0_27, %c0_28] : memref<72x512xf32, #tpu.memory_space<vmem>>, vector<4x512xf32>
    tpu.vector_store %arg27[%c0_27, %c0_28], %39 {strides = array<i32>} : memref<72x512xf32, #tpu.memory_space<vmem>>, vector<4x512xf32>,
    %c0_29 = arith.constant 0 : index
    %c48 = arith.constant 48 : index
    %41 = vector.load %arg26[%c0_29, %c48] : memref<8x640xf32, #tpu.memory_space<vmem>>, vector<4x512xf32>
    %c1_30 = arith.constant 1 : index
    %c0_31 = arith.constant 0 : index
    %42 = vector.load %arg4[%c1_30, %c0_31] : memref<9x512xf32, #tpu.memory_space<vmem>>, vector<1x512xf32>
    %43 = vector.broadcast %42 : vector<1x512xf32> to vector<4x512xf32>
    %44 = arith.mulf %41, %43 : vector<4x512xf32>
    %c4 = arith.constant 4 : index
    %c0_32 = arith.constant 0 : index
    %45 = vector.load %arg27[%c4, %c0_32] : memref<72x512xf32, #tpu.memory_space<vmem>>, vector<4x512xf32>
    tpu.vector_store %arg27[%c4, %c0_32], %44 {strides = array<i32>} : memref<72x512xf32, #tpu.memory_space<vmem>>, vector<4x512xf32>,
    %c0_33 = arith.constant 0 : index
    %c49 = arith.constant 49 : index
    %46 = vector.load %arg26[%c0_33, %c49] : memref<8x640xf32, #tpu.memory_space<vmem>>, vector<4x512xf32>
    %c2 = arith.constant 2 : index
    %c0_34 = arith.constant 0 : index
    %47 = vector.load %arg4[%c2, %c0_34] : memref<9x512xf32, #tpu.memory_space<vmem>>, vector<1x512xf32>
    %48 = vector.broadcast %47 : vector<1x512xf32> to vector<4x512xf32>
    %49 = arith.mulf %46, %48 : vector<4x512xf32>
    %c8 = arith.constant 8 : index
    %c0_35 = arith.constant 0 : index
    %50 = vector.load %arg27[%c8, %c0_35] : memref<72x512xf32, #tpu.memory_space<vmem>>, vector<4x512xf32>
    tpu.vector_store %arg27[%c8, %c0_35], %49 {strides = array<i32>} : memref<72x512xf32, #tpu.memory_space<vmem>>, vector<4x512xf32>,
    %c0_36 = arith.constant 0 : index
    %c63 = arith.constant 63 : index
    %51 = vector.load %arg26[%c0_36, %c63] : memref<8x640xf32, #tpu.memory_space<vmem>>, vector<4x512xf32>
    %c3 = arith.constant 3 : index
    %c0_37 = arith.constant 0 : index
    %52 = vector.load %arg4[%c3, %c0_37] : memref<9x512xf32, #tpu.memory_space<vmem>>, vector<1x512xf32>
    %53 = vector.broadcast %52 : vector<1x512xf32> to vector<4x512xf32>
    %54 = arith.mulf %51, %53 : vector<4x512xf32>
    %c12 = arith.constant 12 : index
    %c0_38 = arith.constant 0 : index
    %55 = vector.load %arg27[%c12, %c0_38] : memref<72x512xf32, #tpu.memory_space<vmem>>, vector<4x512xf32>
    tpu.vector_store %arg27[%c12, %c0_38], %54 {strides = array<i32>} : memref<72x512xf32, #tpu.memory_space<vmem>>, vector<4x512xf32>,
    %c0_39 = arith.constant 0 : index
    %c64_40 = arith.constant 64 : index
    %56 = vector.load %arg26[%c0_39, %c64_40] : memref<8x640xf32, #tpu.memory_space<vmem>>, vector<4x512xf32>
    %c4_41 = arith.constant 4 : index
    %c0_42 = arith.constant 0 : index
    %57 = vector.load %arg4[%c4_41, %c0_42] : memref<9x512xf32, #tpu.memory_space<vmem>>, vector<1x512xf32>
    %58 = vector.broadcast %57 : vector<1x512xf32> to vector<4x512xf32>
    %59 = arith.mulf %56, %58 : vector<4x512xf32>
    %c16 = arith.constant 16 : index
    %c0_43 = arith.constant 0 : index
    %60 = vector.load %arg27[%c16, %c0_43] : memref<72x512xf32, #tpu.memory_space<vmem>>, vector<4x512xf32>
    tpu.vector_store %arg27[%c16, %c0_43], %59 {strides = array<i32>} : memref<72x512xf32, #tpu.memory_space<vmem>>, vector<4x512xf32>,
    %c0_44 = arith.constant 0 : index
    %c65 = arith.constant 65 : index
    %61 = vector.load %arg26[%c0_44, %c65] : memref<8x640xf32, #tpu.memory_space<vmem>>, vector<4x512xf32>
    %c5 = arith.constant 5 : index
    %c0_45 = arith.constant 0 : index
    %62 = vector.load %arg4[%c5, %c0_45] : memref<9x512xf32, #tpu.memory_space<vmem>>, vector<1x512xf32>
    %63 = vector.broadcast %62 : vector<1x512xf32> to vector<4x512xf32>
    %64 = arith.mulf %61, %63 : vector<4x512xf32>
    %c20 = arith.constant 20 : index
    %c0_46 = arith.constant 0 : index
    %65 = vector.load %arg27[%c20, %c0_46] : memref<72x512xf32, #tpu.memory_space<vmem>>, vector<4x512xf32>
    tpu.vector_store %arg27[%c20, %c0_46], %64 {strides = array<i32>} : memref<72x512xf32, #tpu.memory_space<vmem>>, vector<4x512xf32>,
    %c0_47 = arith.constant 0 : index
    %c79 = arith.constant 79 : index
    %66 = vector.load %arg26[%c0_47, %c79] : memref<8x640xf32, #tpu.memory_space<vmem>>, vector<4x512xf32>
    %c6 = arith.constant 6 : index
    %c0_48 = arith.constant 0 : index
    %67 = vector.load %arg4[%c6, %c0_48] : memref<9x512xf32, #tpu.memory_space<vmem>>, vector<1x512xf32>
    %68 = vector.broadcast %67 : vector<1x512xf32> to vector<4x512xf32>
    %69 = arith.mulf %66, %68 : vector<4x512xf32>
    %c24 = arith.constant 24 : index
    %c0_49 = arith.constant 0 : index
    %70 = vector.load %arg27[%c24, %c0_49] : memref<72x512xf32, #tpu.memory_space<vmem>>, vector<4x512xf32>
    tpu.vector_store %arg27[%c24, %c0_49], %69 {strides = array<i32>} : memref<72x512xf32, #tpu.memory_space<vmem>>, vector<4x512xf32>,
    %c0_50 = arith.constant 0 : index
    %c80 = arith.constant 80 : index
    %71 = vector.load %arg26[%c0_50, %c80] : memref<8x640xf32, #tpu.memory_space<vmem>>, vector<4x512xf32>
    %c7 = arith.constant 7 : index
    %c0_51 = arith.constant 0 : index
    %72 = vector.load %arg4[%c7, %c0_51] : memref<9x512xf32, #tpu.memory_space<vmem>>, vector<1x512xf32>
    %73 = vector.broadcast %72 : vector<1x512xf32> to vector<4x512xf32>
    %74 = arith.mulf %71, %73 : vector<4x512xf32>
    %c28 = arith.constant 28 : index
    %c0_52 = arith.constant 0 : index
    %75 = vector.load %arg27[%c28, %c0_52] : memref<72x512xf32, #tpu.memory_space<vmem>>, vector<4x512xf32>
    tpu.vector_store %arg27[%c28, %c0_52], %74 {strides = array<i32>} : memref<72x512xf32, #tpu.memory_space<vmem>>, vector<4x512xf32>,
    %c0_53 = arith.constant 0 : index
    %c81 = arith.constant 81 : index
    %76 = vector.load %arg26[%c0_53, %c81] : memref<8x640xf32, #tpu.memory_space<vmem>>, vector<4x512xf32>
    %c8_54 = arith.constant 8 : index
    %c0_55 = arith.constant 0 : index
    %77 = vector.load %arg4[%c8_54, %c0_55] : memref<9x512xf32, #tpu.memory_space<vmem>>, vector<1x512xf32>
    %78 = vector.broadcast %77 : vector<1x512xf32> to vector<4x512xf32>
    %79 = arith.mulf %76, %78 : vector<4x512xf32>
    %c32 = arith.constant 32 : index
    %c0_56 = arith.constant 0 : index
    %80 = vector.load %arg27[%c32, %c0_56] : memref<72x512xf32, #tpu.memory_space<vmem>>, vector<4x512xf32>
    tpu.vector_store %arg27[%c32, %c0_56], %79 {strides = array<i32>} : memref<72x512xf32, #tpu.memory_space<vmem>>, vector<4x512xf32>,
    %c0_57 = arith.constant 0 : index
    %c0_58 = arith.constant 0 : index
    %81 = vector.load %arg27[%c0_57, %c0_58] : memref<72x512xf32, #tpu.memory_space<vmem>>, vector<36x512xf32>
    %cst_59 = arith.constant dense<0.000000e+00> : vector<8x512xf32>
    %82 = tpu.matmul %32, %81, %cst_59 {dimension_numbers = #tpu.dot_dimension_numbers<[1], [0], [0], [1], [0, 0, 1, 1], [], []>} : vector<8x36xf32>, vector<36x512xf32>, vector<8x512xf32> -> vector<8x512xf32>
    %cst_60 = arith.constant 0.000000e+00 : f32
    %83 = vector.broadcast %cst_60 : f32 to vector<8x512xf32>
    %84 = arith.maximumf %82, %83 : vector<8x512xf32>
    %c0_61 = arith.constant 0 : index
    %c0_62 = arith.constant 0 : index
    %85 = vector.load %arg10[%c0_61, %c0_62] : memref<4x72xf32, #tpu.memory_space<vmem>>, vector<4x72xf32>
    %cst_63 = arith.constant 0.000000e+00 : f32
    %86 = vector.broadcast %cst_63 : f32 to vector<8x640xf32>
    %c0_64 = arith.constant 0 : index
    %c0_65 = arith.constant 0 : index
    %87 = vector.load %arg26[%c0_64, %c0_65] : memref<8x640xf32, #tpu.memory_space<vmem>>, vector<8x640xf32>
    tpu.vector_store %arg26[%c0_64, %c0_65], %86 {strides = array<i32>} : memref<8x640xf32, #tpu.memory_space<vmem>>, vector<8x640xf32>,
    %c0_66 = arith.constant 0 : index
    %c64_67 = arith.constant 64 : index
    %88 = vector.load %arg26[%c0_66, %c64_67] : memref<8x640xf32, #tpu.memory_space<vmem>>, vector<8x512xf32>
    tpu.vector_store %arg26[%c0_66, %c64_67], %84 {strides = array<i32>} : memref<8x640xf32, #tpu.memory_space<vmem>>, vector<8x512xf32>,
    %c0_68 = arith.constant 0 : index
    %c47_69 = arith.constant 47 : index
    %89 = vector.load %arg26[%c0_68, %c47_69] : memref<8x640xf32, #tpu.memory_space<vmem>>, vector<8x512xf32>
    %c0_70 = arith.constant 0 : index
    %c0_71 = arith.constant 0 : index
    %90 = vector.load %arg4[%c0_70, %c0_71] : memref<9x512xf32, #tpu.memory_space<vmem>>, vector<1x512xf32>
    %91 = vector.broadcast %90 : vector<1x512xf32> to vector<8x512xf32>
    %92 = arith.mulf %89, %91 : vector<8x512xf32>
    %c0_72 = arith.constant 0 : index
    %c0_73 = arith.constant 0 : index
    %93 = vector.load %arg27[%c0_72, %c0_73] : memref<72x512xf32, #tpu.memory_space<vmem>>, vector<8x512xf32>
    tpu.vector_store %arg27[%c0_72, %c0_73], %92 {strides = array<i32>} : memref<72x512xf32, #tpu.memory_space<vmem>>, vector<8x512xf32>,
    %c0_74 = arith.constant 0 : index
    %c48_75 = arith.constant 48 : index
    %94 = vector.load %arg26[%c0_74, %c48_75] : memref<8x640xf32, #tpu.memory_space<vmem>>, vector<8x512xf32>
    %c1_76 = arith.constant 1 : index
    %c0_77 = arith.constant 0 : index
    %95 = vector.load %arg4[%c1_76, %c0_77] : memref<9x512xf32, #tpu.memory_space<vmem>>, vector<1x512xf32>
    %96 = vector.broadcast %95 : vector<1x512xf32> to vector<8x512xf32>
    %97 = arith.mulf %94, %96 : vector<8x512xf32>
    %c8_78 = arith.constant 8 : index
    %c0_79 = arith.constant 0 : index
    %98 = vector.load %arg27[%c8_78, %c0_79] : memref<72x512xf32, #tpu.memory_space<vmem>>, vector<8x512xf32>
    tpu.vector_store %arg27[%c8_78, %c0_79], %97 {strides = array<i32>} : memref<72x512xf32, #tpu.memory_space<vmem>>, vector<8x512xf32>,
    %c0_80 = arith.constant 0 : index
    %c49_81 = arith.constant 49 : index
    %99 = vector.load %arg26[%c0_80, %c49_81] : memref<8x640xf32, #tpu.memory_space<vmem>>, vector<8x512xf32>
    %c2_82 = arith.constant 2 : index
    %c0_83 = arith.constant 0 : index
    %100 = vector.load %arg4[%c2_82, %c0_83] : memref<9x512xf32, #tpu.memory_space<vmem>>, vector<1x512xf32>
    %101 = vector.broadcast %100 : vector<1x512xf32> to vector<8x512xf32>
    %102 = arith.mulf %99, %101 : vector<8x512xf32>
    %c16_84 = arith.constant 16 : index
    %c0_85 = arith.constant 0 : index
    %103 = vector.load %arg27[%c16_84, %c0_85] : memref<72x512xf32, #tpu.memory_space<vmem>>, vector<8x512xf32>
    tpu.vector_store %arg27[%c16_84, %c0_85], %102 {strides = array<i32>} : memref<72x512xf32, #tpu.memory_space<vmem>>, vector<8x512xf32>,
    %c0_86 = arith.constant 0 : index
    %c63_87 = arith.constant 63 : index
    %104 = vector.load %arg26[%c0_86, %c63_87] : memref<8x640xf32, #tpu.memory_space<vmem>>, vector<8x512xf32>
    %c3_88 = arith.constant 3 : index
    %c0_89 = arith.constant 0 : index
    %105 = vector.load %arg4[%c3_88, %c0_89] : memref<9x512xf32, #tpu.memory_space<vmem>>, vector<1x512xf32>
    %106 = vector.broadcast %105 : vector<1x512xf32> to vector<8x512xf32>
    %107 = arith.mulf %104, %106 : vector<8x512xf32>
    %c24_90 = arith.constant 24 : index
    %c0_91 = arith.constant 0 : index
    %108 = vector.load %arg27[%c24_90, %c0_91] : memref<72x512xf32, #tpu.memory_space<vmem>>, vector<8x512xf32>
    tpu.vector_store %arg27[%c24_90, %c0_91], %107 {strides = array<i32>} : memref<72x512xf32, #tpu.memory_space<vmem>>, vector<8x512xf32>,
    %c0_92 = arith.constant 0 : index
    %c64_93 = arith.constant 64 : index
    %109 = vector.load %arg26[%c0_92, %c64_93] : memref<8x640xf32, #tpu.memory_space<vmem>>, vector<8x512xf32>
    %c4_94 = arith.constant 4 : index
    %c0_95 = arith.constant 0 : index
    %110 = vector.load %arg4[%c4_94, %c0_95] : memref<9x512xf32, #tpu.memory_space<vmem>>, vector<1x512xf32>
    %111 = vector.broadcast %110 : vector<1x512xf32> to vector<8x512xf32>
    %112 = arith.mulf %109, %111 : vector<8x512xf32>
    %c32_96 = arith.constant 32 : index
    %c0_97 = arith.constant 0 : index
    %113 = vector.load %arg27[%c32_96, %c0_97] : memref<72x512xf32, #tpu.memory_space<vmem>>, vector<8x512xf32>
    tpu.vector_store %arg27[%c32_96, %c0_97], %112 {strides = array<i32>} : memref<72x512xf32, #tpu.memory_space<vmem>>, vector<8x512xf32>,
    %c0_98 = arith.constant 0 : index
    %c65_99 = arith.constant 65 : index
    %114 = vector.load %arg26[%c0_98, %c65_99] : memref<8x640xf32, #tpu.memory_space<vmem>>, vector<8x512xf32>
    %c5_100 = arith.constant 5 : index
    %c0_101 = arith.constant 0 : index
    %115 = vector.load %arg4[%c5_100, %c0_101] : memref<9x512xf32, #tpu.memory_space<vmem>>, vector<1x512xf32>
    %116 = vector.broadcast %115 : vector<1x512xf32> to vector<8x512xf32>
    %117 = arith.mulf %114, %116 : vector<8x512xf32>
    %c40 = arith.constant 40 : index
    %c0_102 = arith.constant 0 : index
    %118 = vector.load %arg27[%c40, %c0_102] : memref<72x512xf32, #tpu.memory_space<vmem>>, vector<8x512xf32>
    tpu.vector_store %arg27[%c40, %c0_102], %117 {strides = array<i32>} : memref<72x512xf32, #tpu.memory_space<vmem>>, vector<8x512xf32>,
    %c0_103 = arith.constant 0 : index
    %c79_104 = arith.constant 79 : index
    %119 = vector.load %arg26[%c0_103, %c79_104] : memref<8x640xf32, #tpu.memory_space<vmem>>, vector<8x512xf32>
    %c6_105 = arith.constant 6 : index
    %c0_106 = arith.constant 0 : index
    %120 = vector.load %arg4[%c6_105, %c0_106] : memref<9x512xf32, #tpu.memory_space<vmem>>, vector<1x512xf32>
    %121 = vector.broadcast %120 : vector<1x512xf32> to vector<8x512xf32>
    %122 = arith.mulf %119, %121 : vector<8x512xf32>
    %c48_107 = arith.constant 48 : index
    %c0_108 = arith.constant 0 : index
    %123 = vector.load %arg27[%c48_107, %c0_108] : memref<72x512xf32, #tpu.memory_space<vmem>>, vector<8x512xf32>
    tpu.vector_store %arg27[%c48_107, %c0_108], %122 {strides = array<i32>} : memref<72x512xf32, #tpu.memory_space<vmem>>, vector<8x512xf32>,
    %c0_109 = arith.constant 0 : index
    %c80_110 = arith.constant 80 : index
    %124 = vector.load %arg26[%c0_109, %c80_110] : memref<8x640xf32, #tpu.memory_space<vmem>>, vector<8x512xf32>
    %c7_111 = arith.constant 7 : index
    %c0_112 = arith.constant 0 : index
    %125 = vector.load %arg4[%c7_111, %c0_112] : memref<9x512xf32, #tpu.memory_space<vmem>>, vector<1x512xf32>
    %126 = vector.broadcast %125 : vector<1x512xf32> to vector<8x512xf32>
    %127 = arith.mulf %124, %126 : vector<8x512xf32>
    %c56 = arith.constant 56 : index
    %c0_113 = arith.constant 0 : index
    %128 = vector.load %arg27[%c56, %c0_113] : memref<72x512xf32, #tpu.memory_space<vmem>>, vector<8x512xf32>
    tpu.vector_store %arg27[%c56, %c0_113], %127 {strides = array<i32>} : memref<72x512xf32, #tpu.memory_space<vmem>>, vector<8x512xf32>,
    %c0_114 = arith.constant 0 : index
    %c81_115 = arith.constant 81 : index
    %129 = vector.load %arg26[%c0_114, %c81_115] : memref<8x640xf32, #tpu.memory_space<vmem>>, vector<8x512xf32>
    %c8_116 = arith.constant 8 : index
    %c0_117 = arith.constant 0 : index
    %130 = vector.load %arg4[%c8_116, %c0_117] : memref<9x512xf32, #tpu.memory_space<vmem>>, vector<1x512xf32>
    %131 = vector.broadcast %130 : vector<1x512xf32> to vector<8x512xf32>
    %132 = arith.mulf %129, %131 : vector<8x512xf32>
    %c64_118 = arith.constant 64 : index
    %c0_119 = arith.constant 0 : index
    %133 = vector.load %arg27[%c64_118, %c0_119] : memref<72x512xf32, #tpu.memory_space<vmem>>, vector<8x512xf32>
    tpu.vector_store %arg27[%c64_118, %c0_119], %132 {strides = array<i32>} : memref<72x512xf32, #tpu.memory_space<vmem>>, vector<8x512xf32>,
    %c0_120 = arith.constant 0 : index
    %c0_121 = arith.constant 0 : index
    %134 = vector.load %arg27[%c0_120, %c0_121] : memref<72x512xf32, #tpu.memory_space<vmem>>, vector<72x512xf32>
    %cst_122 = arith.constant dense<0.000000e+00> : vector<4x512xf32>
    %135 = tpu.matmul %85, %134, %cst_122 {dimension_numbers = #tpu.dot_dimension_numbers<[1], [0], [0], [1], [0, 0, 1, 1], [], []>} : vector<4x72xf32>, vector<72x512xf32>, vector<4x512xf32> -> vector<4x512xf32>
    %cst_123 = arith.constant dense<0xFF800000> : vector<512xf32>
    %136 = vector.multi_reduction <maximumf>, %135, %cst_123 [0] : vector<4x512xf32> to vector<512xf32>
    %137 = vector.shape_cast %136 : vector<512xf32> to vector<1x512xf32>
    %cst_124 = arith.constant 1.000000e+00 : f32
    %138 = vector.broadcast %cst_124 : f32 to vector<1x512xf32>
    %139 = arith.maximumf %137, %138 : vector<1x512xf32>
    %cst_125 = arith.constant dense<0.000000e+00> : vector<4xf32>
    %140 = vector.multi_reduction <add>, %0, %cst_125 [1] : vector<4x512xf32> to vector<4xf32>
    %141 = vector.shape_cast %140 : vector<4xf32> to vector<4x1xf32>
    %cst_126 = arith.constant 5.120000e+02 : f32
    %142 = vector.broadcast %cst_126 : f32 to vector<4x1xf32>
    %143 = arith.divf %141, %142 : vector<4x1xf32>
    %144 = vector.broadcast %143 : vector<4x1xf32> to vector<4x512xf32>
    %145 = arith.subf %0, %144 : vector<4x512xf32>
    %146 = arith.mulf %145, %145 : vector<4x512xf32>
    %cst_127 = arith.constant dense<0.000000e+00> : vector<4xf32>
    %147 = vector.multi_reduction <add>, %146, %cst_127 [1] : vector<4x512xf32> to vector<4xf32>
    %148 = vector.shape_cast %147 : vector<4xf32> to vector<4x1xf32>
    %cst_128 = arith.constant 5.120000e+02 : f32
    %149 = vector.broadcast %cst_128 : f32 to vector<4x1xf32>
    %150 = arith.divf %148, %149 : vector<4x1xf32>
    %151 = vector.broadcast %143 : vector<4x1xf32> to vector<4x512xf32>
    %152 = arith.subf %0, %151 : vector<4x512xf32>
    %cst_129 = arith.constant 9.99999974E-6 : f32
    %153 = vector.broadcast %cst_129 : f32 to vector<4x1xf32>
    %154 = arith.addf %150, %153 : vector<4x1xf32>
    %155 = math.rsqrt %154 : vector<4x1xf32>
    %156 = vector.broadcast %155 : vector<4x1xf32> to vector<4x512xf32>
    %157 = arith.mulf %152, %156 : vector<4x512xf32>
    %c0_130 = arith.constant 0 : index
    %c0_131 = arith.constant 0 : index
    %158 = vector.load %arg11[%c0_130, %c0_131] : memref<4x1xf32, #tpu.memory_space<vmem>>, vector<4x1xf32>
    %159 = vector.broadcast %158 : vector<4x1xf32> to vector<4x512xf32>
    %160 = arith.mulf %157, %159 : vector<4x512xf32>
    %c0_132 = arith.constant 0 : index
    %c0_133 = arith.constant 0 : index
    %161 = vector.load %arg12[%c0_132, %c0_133] : memref<4x1xf32, #tpu.memory_space<vmem>>, vector<4x1xf32>
    %162 = vector.broadcast %161 : vector<4x1xf32> to vector<4x512xf32>
    %163 = arith.addf %160, %162 : vector<4x512xf32>
    %c0_134 = arith.constant 0 : index
    %c0_135 = arith.constant 0 : index
    %164 = vector.load %arg13[%c0_134, %c0_135] : memref<512x384xf32, #tpu.memory_space<vmem>>, vector<512x384xf32>
    %cst_136 = arith.constant dense<0.000000e+00> : vector<4x384xf32>
    %165 = tpu.matmul %163, %164, %cst_136 {dimension_numbers = #tpu.dot_dimension_numbers<[1], [0], [0], [1], [0, 0, 1, 1], [], []>} : vector<4x512xf32>, vector<512x384xf32>, vector<4x384xf32> -> vector<4x384xf32>
    %c0_137 = arith.constant 0 : index
    %c0_138 = arith.constant 0 : index
    %166 = vector.load %arg14[%c0_137, %c0_138] : memref<512x384xf32, #tpu.memory_space<vmem>>, vector<512x384xf32>
    %cst_139 = arith.constant dense<0.000000e+00> : vector<4x384xf32>
    %167 = tpu.matmul %163, %166, %cst_139 {dimension_numbers = #tpu.dot_dimension_numbers<[1], [0], [0], [1], [0, 0, 1, 1], [], []>} : vector<4x512xf32>, vector<512x384xf32>, vector<4x384xf32> -> vector<4x384xf32>
    %c0_140 = arith.constant 0 : index
    %c0_141 = arith.constant 0 : index
    %168 = vector.load %arg15[%c0_140, %c0_141] : memref<16x4xf32, #tpu.memory_space<vmem>>, vector<16x4xf32>
    %cst_142 = arith.constant dense<0.000000e+00> : vector<16x384xf32>
    %169 = tpu.matmul %168, %165, %cst_142 {dimension_numbers = #tpu.dot_dimension_numbers<[1], [0], [0], [1], [0, 0, 1, 1], [], []>} : vector<16x4xf32>, vector<4x384xf32>, vector<16x384xf32> -> vector<16x384xf32>
    %c0_143 = arith.constant 0 : index
    %c0_144 = arith.constant 0 : index
    %170 = vector.load %arg16[%c0_143, %c0_144] : memref<16x4xf32, #tpu.memory_space<vmem>>, vector<16x4xf32>
    %cst_145 = arith.constant dense<0.000000e+00> : vector<16x384xf32>
    %171 = tpu.matmul %170, %167, %cst_145 {dimension_numbers = #tpu.dot_dimension_numbers<[1], [0], [0], [1], [0, 0, 1, 1], [], []>} : vector<16x4xf32>, vector<4x384xf32>, vector<16x384xf32> -> vector<16x384xf32>
    %172 = arith.addf %169, %171 : vector<16x384xf32>
    %cst_146 = arith.constant 0.000000e+00 : f32
    %173 = vector.broadcast %cst_146 : f32 to vector<16x384xf32>
    %174 = arith.maximumf %172, %173 : vector<16x384xf32>
    %c0_147 = arith.constant 0 : index
    %c0_148 = arith.constant 0 : index
    %175 = vector.load %arg17[%c0_147, %c0_148] : memref<4x16xf32, #tpu.memory_space<vmem>>, vector<4x16xf32>
    %cst_149 = arith.constant dense<0.000000e+00> : vector<4x384xf32>
    %176 = tpu.matmul %175, %174, %cst_149 {dimension_numbers = #tpu.dot_dimension_numbers<[1], [0], [0], [1], [0, 0, 1, 1], [], []>} : vector<4x16xf32>, vector<16x384xf32>, vector<4x384xf32> -> vector<4x384xf32>
    %c0_150 = arith.constant 0 : index
    %c0_151 = arith.constant 0 : index
    %177 = vector.load %arg18[%c0_150, %c0_151] : memref<4x16xf32, #tpu.memory_space<vmem>>, vector<4x16xf32>
    %cst_152 = arith.constant dense<0.000000e+00> : vector<4x384xf32>
    %178 = tpu.matmul %177, %174, %cst_152 {dimension_numbers = #tpu.dot_dimension_numbers<[1], [0], [0], [1], [0, 0, 1, 1], [], []>} : vector<4x16xf32>, vector<16x384xf32>, vector<4x384xf32> -> vector<4x384xf32>
    %c0_153 = arith.constant 0 : index
    %c0_154 = arith.constant 0 : index
    %179 = vector.load %arg19[%c0_153, %c0_154] : memref<384x512xf32, #tpu.memory_space<vmem>>, vector<384x512xf32>
    %cst_155 = arith.constant dense<0.000000e+00> : vector<4x512xf32>
    %180 = tpu.matmul %176, %179, %cst_155 {dimension_numbers = #tpu.dot_dimension_numbers<[1], [0], [0], [1], [0, 0, 1, 1], [], []>} : vector<4x384xf32>, vector<384x512xf32>, vector<4x512xf32> -> vector<4x512xf32>
    %c0_156 = arith.constant 0 : index
    %c0_157 = arith.constant 0 : index
    %181 = vector.load %arg20[%c0_156, %c0_157] : memref<384x512xf32, #tpu.memory_space<vmem>>, vector<384x512xf32>
    %cst_158 = arith.constant dense<0.000000e+00> : vector<4x512xf32>
    %182 = tpu.matmul %178, %181, %cst_158 {dimension_numbers = #tpu.dot_dimension_numbers<[1], [0], [0], [1], [0, 0, 1, 1], [], []>} : vector<4x384xf32>, vector<384x512xf32>, vector<4x512xf32> -> vector<4x512xf32>
    %183 = arith.addf %180, %182 : vector<4x512xf32>
    %184 = tpu.reciprocal %139 {approx = true} : vector<1x512xf32> -> vector<1x512xf32>
    %185 = vector.broadcast %184 : vector<1x512xf32> to vector<4x512xf32>
    %186 = arith.mulf %183, %185 : vector<4x512xf32>
    %187 = math.tanh %186 : vector<4x512xf32>
    %188 = vector.broadcast %139 : vector<1x512xf32> to vector<4x512xf32>
    %189 = arith.mulf %188, %187 : vector<4x512xf32>
    %190 = arith.addf %135, %189 : vector<4x512xf32>
    %191 = arith.addf %190, %0 : vector<4x512xf32>
    %c0_159 = arith.constant 0 : index
    %c0_160 = arith.constant 0 : index
    %192 = vector.load %arg1[%c0_159, %c0_160] : memref<4x512xf32, #tpu.memory_space<vmem>>, vector<4x512xf32>
    %193 = arith.addf %191, %192 : vector<4x512xf32>
    %c0_161 = arith.constant 0 : index
    %c0_162 = arith.constant 0 : index
    %194 = vector.load %arg21[%c0_161, %c0_162] : memref<16x4xf32, #tpu.memory_space<vmem>>, vector<16x4xf32>
    %cst_163 = arith.constant dense<0.000000e+00> : vector<16x512xf32>
    %195 = tpu.matmul %194, %193, %cst_163 {dimension_numbers = #tpu.dot_dimension_numbers<[1], [0], [0], [1], [0, 0, 1, 1], [], []>} : vector<16x4xf32>, vector<4x512xf32>, vector<16x512xf32> -> vector<16x512xf32>
    %c0_164 = arith.constant 0 : index
    %c0_165 = arith.constant 0 : index
    %196 = vector.load %arg22[%c0_164, %c0_165] : memref<16x1xf32, #tpu.memory_space<vmem>>, vector<16x1xf32>
    %197 = vector.broadcast %196 : vector<16x1xf32> to vector<16x512xf32>
    %198 = arith.addf %195, %197 : vector<16x512xf32>
    %cst_166 = arith.constant 0.000000e+00 : f32
    %199 = vector.broadcast %cst_166 : f32 to vector<16x512xf32>
    %200 = arith.maximumf %198, %199 : vector<16x512xf32>
    %c0_167 = arith.constant 0 : index
    %c0_168 = arith.constant 0 : index
    %201 = vector.load %arg23[%c0_167, %c0_168] : memref<8x16xf32, #tpu.memory_space<vmem>>, vector<8x16xf32>
    %cst_169 = arith.constant dense<0.000000e+00> : vector<8x512xf32>
    %202 = tpu.matmul %201, %200, %cst_169 {dimension_numbers = #tpu.dot_dimension_numbers<[1], [0], [0], [1], [0, 0, 1, 1], [], []>} : vector<8x16xf32>, vector<16x512xf32>, vector<8x512xf32> -> vector<8x512xf32>
    %c0_170 = arith.constant 0 : index
    %c0_171 = arith.constant 0 : index
    %203 = vector.load %arg24[%c0_170, %c0_171] : memref<8x1xf32, #tpu.memory_space<vmem>>, vector<8x1xf32>
    %204 = vector.broadcast %203 : vector<8x1xf32> to vector<8x512xf32>
    %205 = arith.addf %202, %204 : vector<8x512xf32>
    %c0_172 = arith.constant 0 : index
    %c0_173 = arith.constant 0 : index
    %206 = vector.load %arg25[%c0_172, %c0_173] : memref<8x512xf32, #tpu.memory_space<vmem>>, vector<8x512xf32>
    tpu.vector_store %arg25[%c0_172, %c0_173], %205 {strides = array<i32>} : memref<8x512xf32, #tpu.memory_space<vmem>>, vector<8x512xf32>,
    return
  }
}

</mosaic_0001>

<bundles_post_ra>
// kernel: auxiliary_variable_module.1
= control target key start
LH: loop header
LB: loop body
LE: loop exit
PB: predicated region body
PF: predicated region fallthrough
CT: control target
= control target key end

     0   :  { %vm6633_vm0 = vmmov 0   ;;  %vm309_vm1 = vcmask 1043456   ;;  %vm305_vm2 = vcmask 31744   ;;  %vm395_vm3 = vcmask 1040384   ;;  %s6635_s28 = smov 48   ;;  %s10581_s29 = smov 47   ;;  %s10551_s2 = inlined_call_operand.vmem [shape: f32[512,2], index: 2, kind: input, shape index: {}]   ;;  %s10552_s0 = inlined_call_operand.vmem [shape: f32[4,512], index: 0, kind: input, shape index: {}]   ;;  %s10553_s6 = inlined_call_operand.<no memory space> [shape: f32[1,1], index: 6, kind: input, shape index: {}]   ;;  %s10554_s8 = inlined_call_operand.vmem [shape: f32[4,1], index: 8, kind: input, shape index: {}]   ;;  %s10555_s5 = inlined_call_operand.vmem [shape: f32[1,4], index: 5, kind: input, shape index: {}]   ;;  %s10556_s7 = inlined_call_operand.vmem [shape: f32[4,1], index: 7, kind: input, shape index: {}]   ;;  %s10557_s4 = inlined_call_operand.vmem [shape: f32[9,512], index: 4, kind: input, shape index: {}]   ;;  %s10558_s3 = inlined_call_operand.vmem [shape: f32[2,512], index: 3, kind: input, shape index: {}]   ;;  %s10559_s9 = inlined_call_operand.vmem [shape: f32[8,36], index: 9, kind: input, shape index: {}]   ;;  %s10560_s11 = inlined_call_operand.vmem [shape: f32[4,1], index: 11, kind: input, shape index: {}]   ;;  %s10561_s12 = inlined_call_operand.vmem [shape: f32[4,1], index: 12, kind: input, shape index: {}]   ;;  %s10562_s22 = inlined_call_operand.vmem [shape: f32[16,1], index: 22, kind: input, shape index: {}]   ;;  %s10563_s24 = inlined_call_operand.vmem [shape: f32[8,1], index: 24, kind: input, shape index: {}]   ;;  %s10564_s13 = inlined_call_operand.vmem [shape: f32[512,384], index: 13, kind: input, shape index: {}]   ;;  %s10565_s10 = inlined_call_operand.vmem [shape: f32[4,72], index: 10, kind: input, shape index: {}]   ;;  %s10566_s14 = inlined_call_operand.vmem [shape: f32[512,384], index: 14, kind: input, shape index: {}]   ;;  %s10567_s16 = inlined_call_operand.vmem [shape: f32[16,4], index: 16, kind: input, shape index: {}]   ;;  %s10568_s15 = inlined_call_operand.vmem [shape: f32[16,4], index: 15, kind: input, shape index: {}]   ;;  %s10569_s20 = inlined_call_operand.vmem [shape: f32[384,512], index: 20, kind: input, shape index: {}]   ;;  %s10570_s18 = inlined_call_operand.vmem [shape: f32[4,16], index: 18, kind: input, shape index: {}]   ;;  %s10571_s17 = inlined_call_operand.vmem [shape: f32[4,16], index: 17, kind: input, shape index: {}]   ;;  %s10572_s19 = inlined_call_operand.vmem [shape: f32[384,512], index: 19, kind: input, shape index: {}]   ;;  %s10573_s1 = inlined_call_operand.vmem [shape: f32[4,512], index: 1, kind: input, shape index: {}]   ;;  %s10574_s21 = inlined_call_operand.vmem [shape: f32[16,4], index: 21, kind: input, shape index: {}]   ;;  %s10575_s23 = inlined_call_operand.vmem [shape: f32[8,16], index: 23, kind: input, shape index: {}]   ;;  %s10576_s25 = inlined_call_operand.vmem [shape: f32[8,512], index: 25, kind: output, shape index: {}]  }
   0x1   :  { %10583 = sst [smem:[#allocation5_spill]] %s10551_s2  ;;  %vm391_vm4 = vcmask 7168   ;;  %s6642_s27 = smov 79   ;;  %vm583_vm5 = vcmask 519168   ;;  %vm569_vm6 = vcmask 523264   ;;  %vm578_vm7 = vcmask 1043968  }
   0x2   :  { %10584 = sst [smem:[#allocation6_spill]] %s10552_s0  ;;  %vm616_vm8 = vcmask 384000   ;;  %vm769_vm9 = vcmask 400384   ;;  %vm798_vm10 = vcmask 646144   ;;  %vm690_vm11 = vcmask 392192  }
   0x3   :  { %10585 = sst [smem:[#allocation7_spill]] %s10553_s6  ;;  %s10593_s6 = sld [smem:[#allocation5_spill]]  ;;  %vm645_vm12 = vcmask 662528   ;;  %vm843_vm13 = vcmask 515072   ;;  %vm877_vm14 = vcmask 531456   ;;  %vm724_vm15 = vcmask 654336  }
   0x4   :  { %10586 = sst [smem:[#allocation8_spill]] %s10554_s8  ;;  %s6638_s8 = smov 49  }
   0x5   :  { %10587 = sst [smem:[#allocation9_spill]] %s10555_s5  ;;  %s10595_s5 = sld [smem:[#allocation7_spill]] }
   0x6   :  { %10588 = sst [smem:[#allocation10_spill]] %s10556_s7  ;;  %s10596_s7 = sld [smem:[#allocation8_spill]] }
   0x7   :  { %10589 = sst [smem:[#allocation11_spill]] %s10557_s4  ;;  %s10594_s4 = sld [smem:[#allocation6_spill]] }
   0x8   :  { %10590 = sst [smem:[#allocation12_spill]] %s10558_s3  ;;  %s10597_s30 = sld [smem:[#allocation9_spill]] }
   0x9   :  { %10591 = sst [smem:[#allocation13_spill]] %s10559_s9  ;;  %v100_v0 = vld [vmem:[%s10593_s6 + $0x80] sm:$0xff]  ;;  %v101_v1 = vld [vmem:[%s10593_s6 + $0x88] sm:$0xff]  ;;  %v102_v11 = vld [vmem:[%s10593_s6 + $0x90] sm:$0xff]  ;;  %s10598_s26 = sld [smem:[#allocation10_spill]] }
   0xa   :  { %10592 = sst [smem:[#allocation14_spill]] %s10560_s11  ;;  %v132_v2 = vld [vmem:[%s10593_s6 + $0x180] sm:$0xff]  ;;  %v5659_v3 = vpack.c.bf16 %v101_v1, %v100_v0  ;;  %v133_v4 = vld [vmem:[%s10593_s6 + $0x188] sm:$0xff]  ;;  %v103_v13 = vld [vmem:[%s10593_s6 + $0x98] sm:$0xff]  ;;  %s6636_s11 = smov 63  }
   0xb   :  { %v84_v5 = vld [vmem:[%s10593_s6] sm:$0xff]  ;;  %v85_v6 = vld [vmem:[%s10593_s6 + $0x8] sm:$0xff]  ;;  %v5691_v7 = vpack.c.bf16 %v133_v4, %v132_v2  ;;  %v134_v14 = vld [vmem:[%s10593_s6 + $0x190] sm:$0xff]  ;;  %v5663_v16 = vpack.c.bf16 %v103_v13, %v102_v11  ;;  %s6639_s9 = smov 65   ;;  %s6641_s3 = smov 64  }
   0xc   :  { %v5661_v8 = vpack.c.bf16 %v85_v6, %v84_v5  ;;  %v116_v9 = vld [vmem:[%s10593_s6 + $0x100] sm:$0xff]  ;;  %v117_v10 = vld [vmem:[%s10593_s6 + $0x108] sm:$0xff]  ;;  %5660 = vmatprep.subr.bf16.mxu0 %v5659_v3  ;;  %v135_v15 = vld [vmem:[%s10593_s6 + $0x198] sm:$0xff]  ;;  %s10602_s2 = sld [smem:[#allocation13_spill]] }
   0xd   :  { %v5693_v12 = vpack.c.bf16 %v117_v10, %v116_v9  ;;  %5692 = vmatprep.subr.bf16.mxu1 %v5691_v7  ;;  %v5695_v17 = vpack.c.bf16 %v135_v15, %v134_v14  ;;  %v86_v18 = vld [vmem:[%s10593_s6 + $0x10] sm:$0xff]  ;;  %v87_v19 = vld [vmem:[%s10593_s6 + $0x18] sm:$0xff]  ;;  %v104_v23 = vld [vmem:[%s10593_s6 + $0xa0] sm:$0xff] }
   0xe   :  { %5662 = vmatpush3.bf16.msra.mxu0 %v5661_v8  ;;  %v118_v20 = vld [vmem:[%s10593_s6 + $0x110] sm:$0xff]  ;;  %v5665_v21 = vpack.c.bf16 %v87_v19, %v86_v18  ;;  %v119_v22 = vld [vmem:[%s10593_s6 + $0x118] sm:$0xff]  ;;  %v105_v24 = vld [vmem:[%s10593_s6 + $0xa8] sm:$0xff] }
   0xf   :  { %5694 = vmatpush3.bf16.msra.mxu1 %v5693_v12  ;;  %5664 = vmatprep.subr.bf16.mxu0 %v5663_v16  ;;  %v5697_v25 = vpack.c.bf16 %v119_v22, %v118_v20  ;;  %v5667_v26 = vpack.c.bf16 %v105_v24, %v104_v23  ;;  %v136_v27 = vld [vmem:[%s10593_s6 + $0x1a0] sm:$0xff]  ;;  %v137_v28 = vld [vmem:[%s10593_s6 + $0x1a8] sm:$0xff]  ;;  %v106_v35 = vld [vmem:[%s10593_s6 + $0xb0] sm:$0xff] }
  0x10   :  { %5696 = vmatprep.subr.bf16.mxu1 %v5695_v17  ;;  %v88_v29 = vld [vmem:[%s10593_s6 + $0x20] sm:$0xff]  ;;  %v5699_v30 = vpack.c.bf16 %v137_v28, %v136_v27  ;;  %v89_v31 = vld [vmem:[%s10593_s6 + $0x28] sm:$0xff]  ;;  %v107_v36 = vld [vmem:[%s10593_s6 + $0xb8] sm:$0xff] }
  0x11   :  { %v120_v32 = vld [vmem:[%s10593_s6 + $0x120] sm:$0xff]  ;;  %v121_v33 = vld [vmem:[%s10593_s6 + $0x128] sm:$0xff]  ;;  %v5669_v34 = vpack.c.bf16 %v89_v31, %v88_v29  ;;  %v138_v37 = vld [vmem:[%s10593_s6 + $0x1b0] sm:$0xff]  ;;  %v5671_v39 = vpack.c.bf16 %v107_v36, %v106_v35  ;;  %v6632_v36 = vmov 0.0  }
  0x12   :  { %5666 = vmatpush3.bf16.msra.mxu0 %v5665_v21  ;;  %v5701_v38 = vpack.c.bf16 %v121_v33, %v120_v32  ;;  %v139_v40 = vld [vmem:[%s10593_s6 + $0x1b8] sm:$0xff]  ;;  %v90_v41 = vld [vmem:[%s10593_s6 + $0x30] sm:$0xff]  ;;  %v108_v46 = vld [vmem:[%s10593_s6 + $0xc0] sm:$0xff]  ;;  %552 = vst [vmem:[#allocation2] sm:$0xf] %v6632_v36 }
  0x13   :  { %5698 = vmatpush3.bf16.msra.mxu1 %v5697_v25  ;;  %5668 = vmatprep.subr.bf16.mxu0 %v5667_v26  ;;  %v91_v42 = vld [vmem:[%s10593_s6 + $0x38] sm:$0xff]  ;;  %v5703_v43 = vpack.c.bf16 %v139_v40, %v138_v37  ;;  %v122_v44 = vld [vmem:[%s10593_s6 + $0x130] sm:$0xff]  ;;  %v109_v47 = vld [vmem:[%s10593_s6 + $0xc8] sm:$0xff]  ;;  %553 = vst [vmem:[#allocation2 + $0x8] sm:$0xf] %v6632_v36  ;;  %v6634_v37 = vmov 0  }
  0x14   :  { %5700 = vmatprep.subr.bf16.mxu1 %v5699_v30  ;;  %v123_v45 = vld [vmem:[%s10593_s6 + $0x138] sm:$0xff]  ;;  %v140_v48 = vld [vmem:[%s10593_s6 + $0x1c0] sm:$0xff]  ;;  %v141_v49 = vld [vmem:[%s10593_s6 + $0x1c8] sm:$0xff]  ;;  %v5673_v50 = vpack.c.bf16 %v91_v42, %v90_v41  ;;  %v5675_v52 = vpack.c.bf16 %v109_v47, %v108_v46  ;;  %554 = vst [vmem:[#allocation2 + $0x10] sm:$0xf] %v6632_v36  ;;  %6598 = vset.pattern.permute.xlu0 %v6634_v37 }
  0x15   :  { %v5705_v51 = vpack.c.bf16 %v123_v45, %v122_v44  ;;  %v92_v53 = vld [vmem:[%s10593_s6 + $0x40] sm:$0xff]  ;;  %v93_v54 = vld [vmem:[%s10593_s6 + $0x48] sm:$0xff]  ;;  %v5707_v56 = vpack.c.bf16 %v141_v49, %v140_v48  ;;  %v110_v58 = vld [vmem:[%s10593_s6 + $0xd0] sm:$0xff]  ;;  %555 = vst [vmem:[#allocation2 + $0x18] sm:$0xf] %v6632_v36  ;;  %6599 = vset.pattern.permute.xlu1 %v6634_v37  ;;  %v301_v49 = vlaneseq }
  0x16   :  { %5670 = vmatpush3.bf16.msra.mxu0 %v5669_v34  ;;  %v124_v55 = vld [vmem:[%s10593_s6 + $0x140] sm:$0xff]  ;;  %v125_v57 = vld [vmem:[%s10593_s6 + $0x148] sm:$0xff]  ;;  %v111_v59 = vld [vmem:[%s10593_s6 + $0xd8] sm:$0xff]  ;;  %v5677_v62 = vpack.c.bf16 %v93_v54, %v92_v53  ;;  %556 = vst [vmem:[#allocation2 + $0x20] sm:$0xf] %v6632_v36 }
  0x17   :  { %5702 = vmatpush3.bf16.msra.mxu1 %v5701_v38  ;;  %5672 = vmatprep.subr.bf16.mxu0 %v5671_v39  ;;  %v142_v60 = vld [vmem:[%s10593_s6 + $0x1d0] sm:$0xff]  ;;  %v143_v61 = vld [vmem:[%s10593_s6 + $0x1d8] sm:$0xff]  ;;  %v5709_v63 = vpack.c.bf16 %v125_v57, %v124_v55  ;;  %v5679_v0 = vpack.c.bf16 %v111_v59, %v110_v58  ;;  %v112_v6 = vld [vmem:[%s10593_s6 + $0xe0] sm:$0xff]  ;;  %v30_v38 = vstv %s10595_s5  ;;  %s10600_s5 = sld [smem:[#allocation12_spill]] }
  0x18   :  { %5704 = vmatprep.subr.bf16.mxu1 %v5703_v43  ;;  %v94_v1 = vld [vmem:[%s10593_s6 + $0x50] sm:$0xff]  ;;  %v95_v2 = vld [vmem:[%s10593_s6 + $0x58] sm:$0xff]  ;;  %v5711_v4 = vpack.c.bf16 %v143_v61, %v142_v60  ;;  %v113_v7 = vld [vmem:[%s10593_s6 + $0xe8] sm:$0xff]  ;;  %31 = vst [vmem:[#allocation4] sm:$0x1] %v30_v38 }
  0x19   :  { %v126_v3 = vld [vmem:[%s10593_s6 + $0x150] sm:$0xff]  ;;  %v127_v5 = vld [vmem:[%s10593_s6 + $0x158] sm:$0xff]  ;;  %v144_v8 = vld [vmem:[%s10593_s6 + $0x1e0] sm:$0xff]  ;;  %v5681_v10 = vpack.c.bf16 %v95_v2, %v94_v1  ;;  %v5683_v14 = vpack.c.bf16 %v113_v7, %v112_v6 }
  0x1a   :  { %5674 = vmatpush3.bf16.msra.mxu0 %v5673_v50  ;;  %v145_v9 = vld [vmem:[%s10593_s6 + $0x1e8] sm:$0xff]  ;;  %v96_v11 = vld [vmem:[%s10593_s6 + $0x60] sm:$0xff]  ;;  %v5713_v13 = vpack.c.bf16 %v127_v5, %v126_v3  ;;  %v114_v20 = vld [vmem:[%s10593_s6 + $0xf0] sm:$0xff]  ;;  %v7016_v50 = vshrl.u32 %v301_v49, 7 }
  0x1b   :  { %5706 = vmatpush3.bf16.msra.mxu1 %v5705_v51  ;;  %5676 = vmatprep.subr.bf16.mxu0 %v5675_v52  ;;  %v97_v12 = vld [vmem:[%s10593_s6 + $0x68] sm:$0xff]  ;;  %v128_v15 = vld [vmem:[%s10593_s6 + $0x160] sm:$0xff]  ;;  %v5715_v18 = vpack.c.bf16 %v145_v9, %v144_v8  ;;  %v115_v21 = vld [vmem:[%s10593_s6 + $0xf8] sm:$0xff] }
  0x1c   :  { %5708 = vmatprep.subr.bf16.mxu1 %v5707_v56  ;;  %v6945_v16 = vld [vmem:[%s10594_s4] sm:$0xff]  ;;  %v6950_v17 = vld [vmem:[%s10594_s4 + $0x8] sm:$0xff]  ;;  %v146_v24 = vld [vmem:[%s10593_s6 + $0x1f0] sm:$0xff]  ;;  %v5685_v26 = vpack.c.bf16 %v97_v12, %v96_v11  ;;  %v5687_v28 = vpack.c.bf16 %v115_v21, %v114_v20  ;;  %v7019_v51 = vsub.s32 0, %v7016_v50  ;;  %v7027_v59 = vsub.s32 3, %v7016_v50 }
  0x1d   :  { %v129_v19 = vld [vmem:[%s10593_s6 + $0x168] sm:$0xff]  ;;  %v6963_v22 = vcombine.high %v6945_v16, %v6945_v16  ;;  %v6967_v23 = vcombine.high %v6950_v17, %v6950_v17  ;;  %v147_v25 = vld [vmem:[%s10593_s6 + $0x1f8] sm:$0xff]  ;;  %v98_v29 = vld [vmem:[%s10593_s6 + $0x70] sm:$0xff]  ;;  %v7030_v60 = vsub.s32 2, %v7016_v50 }
  0x1e   :  { %5678 = vmatpush3.bf16.msra.mxu0 %v5677_v62  ;;  %v5717_v27 = vpack.c.bf16 %v129_v19, %v128_v15  ;;  %v99_v30 = vld [vmem:[%s10593_s6 + $0x78] sm:$0xff]  ;;  %v5719_v31 = vpack.c.bf16 %v147_v25, %v146_v24  ;;  %v130_v32 = vld [vmem:[%s10593_s6 + $0x170] sm:$0xff]  ;;  %v385_v40 = vld [vmem:[%s10596_s7] sm:$0xf]  ;;  %s6640_s7 = smov 80  }
  0x1f   :  { %5710 = vmatpush3.bf16.msra.mxu1 %v5709_v63  ;;  %5680 = vmatprep.subr.bf16.mxu0 %v5679_v0  ;;  %v131_v33 = vld [vmem:[%s10593_s6 + $0x178] sm:$0xff]  ;;  %v5689_v34 = vpack.c.bf16 %v99_v30, %v98_v29  ;;  %v295_v39 = vld [vmem:[#allocation4] sm:$0x1]  ;;  %v294_v48 = vld [vmem:[%s10597_s30] sm:$0x1]  ;;  %s10599_s6 = sld [smem:[#allocation11_spill]] }
  0x20   :  { %5712 = vmatprep.subr.bf16.mxu1 %v5711_v4  ;;  %218 = vmatprep.mubr.f32.mxu0 %v6963_v22  ;;  %v5721_v35 = vpack.c.bf16 %v131_v33, %v130_v32  ;;  %v384_v58 = vld [vmem:[%s10598_s26] sm:$0xf]  ;;  %s6644_s30 = smov 81  }
  0x21   :  { %288 = vmatprep.mubr.f32.mxu1 %v6967_v23  ;;  %298 = vperm.xlu0 %6598, %v295_v39  }
  0x22   :  { %5682 = vmatpush3.bf16.msra.mxu0 %v5681_v10 }
  0x23   :  { %5714 = vmatpush3.bf16.msra.mxu1 %v5713_v13  ;;  %5684 = vmatprep.subr.bf16.mxu0 %v5683_v14 }
  0x24   :  { %5716 = vmatprep.subr.bf16.mxu1 %v5715_v18 }
  0x25   :  { %388 = vperm.xlu0 %6598, %v385_v40   ;;  %v7035_v61 = vld [vmem:[%s10599_s6 + $0x1] ss:$8 sm:$0xf]  ;;  %v7044_v0 = vld [vmem:[%s10599_s6 + $0x3] ss:$8 sm:$0xf] }
  0x26   :  { %5686 = vmatpush3.bf16.msra.mxu0 %v5685_v26  ;;  %v681_v62 = vrot.slane %v7035_v61, %v7027_v59  ;;  %v677_v63 = vrot.slane %v7035_v61, %v7030_v60  ;;  %v834_v1 = vrot.slane %v7044_v0, %v7027_v59  ;;  %v830_v2 = vrot.slane %v7044_v0, %v7030_v60  ;;  %v7063_v5 = vld [vmem:[%s10599_s6] ss:$8 sm:$0xf]  ;;  %v7071_v7 = vld [vmem:[%s10599_s6 + $0x2] ss:$8 sm:$0xf] }
  0x27   :  { %5718 = vmatpush3.bf16.msra.mxu1 %v5717_v27  ;;  %5688 = vmatprep.subr.bf16.mxu0 %v5687_v28  ;;  %v669_v3 = vrot.slane %v7035_v61, %v7019_v51  ;;  %v822_v4 = vrot.slane %v7044_v0, %v7019_v51  ;;  %v603_v6 = vrot.slane %v7063_v5, %v7030_v60  ;;  %v7085_v11 = vld [vmem:[%s10599_s6 + $0x5] ss:$8 sm:$0xf]  ;;  %v5353_v13 = vld [vmem:[%s10599_s6 + $0x7] ss:$8 sm:$0xf] }
  0x28   :  { %5720 = vmatprep.subr.bf16.mxu1 %v5719_v31  ;;  %688 = vrot.lane.b32.xlu1 %v681_v62, %s6635_s28  ;;  %v756_v8 = vrot.slane %v7071_v7, %v7030_v60  ;;  %v595_v9 = vrot.slane %v7063_v5, %v7019_v51  ;;  %v748_v10 = vrot.slane %v7071_v7, %v7019_v51  ;;  %v5350_v19 = vld [vmem:[%s10599_s6 + $0x4] ss:$8 sm:$0xf]  ;;  %v5352_v21 = vld [vmem:[%s10599_s6 + $0x6] ss:$8 sm:$0xf] }
  0x29   :  { %686 = vrot.lane.b32.xlu0 %v677_v63, %s6635_s28  ;;  %v981_v12 = vrot.slane %v7085_v11, %v7030_v60  ;;  %v1130_v14 = vrot.slane %v5353_v13, %v7030_v60  ;;  %v973_v15 = vrot.slane %v7085_v11, %v7019_v51  ;;  %v1122_v18 = vrot.slane %v5353_v13, %v7019_v51  ;;  %v5354_v38 = vld [vmem:[%s10599_s6 + $0x20] ss:$8 sm:$0xf] }
  0x2a   :  { %5690 = vmatpush3.bf16.msra.mxu0 %v5689_v34  ;;  %v909_v20 = vrot.slane %v5350_v19, %v7030_v60  ;;  %v1058_v24 = vrot.slane %v5352_v21, %v7030_v60  ;;  %v901_v25 = vrot.slane %v5350_v19, %v7019_v51  ;;  %v1050_v34 = vrot.slane %v5352_v21, %v7019_v51  ;;  %v475_v63 = vld [vmem:[%s10600_s5] ss:$2 sm:$0xf] }
  0x2b   :  { %5722 = vmatpush3.bf16.msra.mxu1 %v5721_v35  ;;  %5625 = vmatprep.subr.mxu0 %v6632_v36  ;;  %v7114_v35 = vsub.s32 1, %v7016_v50  ;;  %v1207_v39 = vrot.slane %v5354_v38, %v7030_v60  ;;  %v6643_v40 = vmov 1  }
  0x2c   :  { %5630 = vmatprep.subr.mxu1 %v6632_v36  ;;  %841 = vrot.lane.b32.xlu1 %v834_v1, %s6636_s11 }
  0x2d   :  { %219 = vmatmul.mubr.f32.vlgmr.msra.gmra.mrb[0].mxu0 %v6945_v16  ;;  %839 = vrot.lane.b32.xlu0 %v830_v2, %s6636_s11  ;;  %v977_v49 = vrot.slane %v7085_v11, %v7114_v35  ;;  %v485_v2 = vrot.slane %v475_v63, %v7019_v51 }
  0x2e   :  { %289 = vmatmul.mubr.f32.vlgmr.msra.gmra.mrb[0].mxu1 %v6950_v17  ;;  %5627 = vmatprep.mubr.msk.f32.mxu0 %vm6633_vm0, %v6632_v36 }
  0x2f   :  { %5632 = vmatprep.mubr.msk.f32.mxu1 %vm6633_vm0, %v6632_v36 }
  0x31   :  { %682 = vrot.lane.b32.xlu0 %v669_v3, %s6635_s28  ;;  %v489_v3 = vrot.slane %v475_v63, %v7114_v35 }
  0x35   :  { %835 = vrot.lane.b32.xlu0 %v822_v4, %s6636_s11  ;;  %v493_v4 = vrot.slane %v475_v63, %v7030_v60 }
  0x39   :  { %612 = vrot.lane.b32.xlu0 %v603_v6, %s10581_s29 }
  0x3d   :  { %765 = vrot.lane.b32.xlu0 %v756_v8, %s6638_s8 }
  0x41   :  { %608 = vrot.lane.b32.xlu0 %v595_v9, %s10581_s29 }
  0x45   :  { %761 = vrot.lane.b32.xlu0 %v748_v10, %s6638_s8 }
  0x49   :  { %990 = vrot.lane.b32.xlu0 %v981_v12, %s6639_s9 }
  0x4d   :  { %1139 = vrot.lane.b32.xlu0 %v1130_v14, %s6640_s7 }
  0x51   :  { %986 = vrot.lane.b32.xlu0 %v973_v15, %s6639_s9 }
  0x55   :  { %1135 = vrot.lane.b32.xlu0 %v1122_v18, %s6640_s7 }
  0x59   :  { %918 = vrot.lane.b32.xlu0 %v909_v20, %s6641_s3 }
  0x5d   :  { %1067 = vrot.lane.b32.xlu0 %v1058_v24, %s6642_s27 }
  0x61   :  { %914 = vrot.lane.b32.xlu0 %v901_v25, %s6641_s3 }
  0x65   :  { %1063 = vrot.lane.b32.xlu0 %v1050_v34, %s6642_s27 }
  0x69   :  { %1216 = vrot.lane.b32.xlu0 %v1207_v39, %s6644_s30 }
  0xa0   :  { %v299_v52 = vpop.permute.xlu0 %298 }
  0xa1   :  { %v304_v53 = vrot.slane %v299_v52, %v7019_v51  ;;  %v1126_v52 = vrot.slane %v5353_v13, %v7114_v35 }
  0xa4   :  { %v389_v26 = vpop.permute.xlu0 %388 }
 0x100   :  { %v5431_v41 = vpop.f32.mrb[0].mxu0 }
 0x101   :  { %v5466_v42 = vpop.f32.mrb[0].mxu1  ;;  %v5432_v43 = vpop.f32.mrb[1].mxu0 }
 0x102   :  { %v5433_v44 = vadd.f32 %v5432_v43, %v5431_v41  ;;  %v5467_v45 = vpop.f32.mrb[1].mxu1  ;;  %v673_v41 = vrot.slane %v7035_v61, %v7114_v35  ;;  %v826_v43 = vrot.slane %v7044_v0, %v7114_v35  ;;  %v7165_v61 = vpop.permute.xlu1 %688  ;;  %v5346_v0 = vld [vmem:[%s10600_s5 + $0x1] ss:$2 sm:$0xf] }
 0x103   :  { %v5468_v46 = vadd.f32 %v5467_v45, %v5466_v42  ;;  %v1199_v42 = vrot.slane %v5354_v38, %v7019_v51  ;;  %v760_v45 = vrot.slane %v7071_v7, %v7027_v59  ;;  %v516_v6 = vrot.slane %v5346_v0, %v7019_v51 }
 0x104   :  { %v524_v8 = vrot.slane %v5346_v0, %v7030_v60  ;;  %v528_v9 = vrot.slane %v5346_v0, %v7027_v59 }
 0x105   :  { %v291_v47 = vadd.f32 %v5468_v46, %v5433_v44  ;;  %1212 = vrot.lane.b32.xlu0 %v1199_v42, %s6644_s30  ;;  %v607_v44 = vrot.slane %v7063_v5, %v7027_v59  ;;  %v599_v46 = vrot.slane %v7063_v5, %v7114_v35  ;;  %v497_v5 = vrot.slane %v475_v63, %v7027_v59 }
 0x106   :  { %v7167_v62 = vpop.permute.xlu1 %841 }
 0x107   :  { %5626 = vmatpush3.msk.msra.mxu0 %vm309_vm1, %v291_v47  ;;  %v985_v47 = vrot.slane %v7085_v11, %v7027_v59 }
 0x108   :  { %5628 = vmatmul.mubr.msk.f32.vlgmr.msra.gmra.mrb[2].mxu0 %vm305_vm2, %v294_v48  ;;  %v1134_v48 = vrot.slane %v5353_v13, %v7027_v59 }
 0x109   :  { %1360 = vmatprep.mubr.f32.mxu0 %v6632_v36 }
 0x1db   :  { %v379_v54 = vpop.f32.mrb[2].mxu0 }
 0x1dc   :  { %v380_v55 = vadd.f32 %v379_v54, %v304_v53  ;;  %v5629_v56 = vpop.f32.mrb[3].mxu0  ;;  %v913_v53 = vrot.slane %v5350_v19, %v7027_v59  ;;  %v1062_v54 = vrot.slane %v5352_v21, %v7027_v59 }
 0x1dd   :  { %v1054_v56 = vrot.slane %v5352_v21, %v7114_v35 }
 0x1de   :  { %v383_v57 = vmax.f32 %v380_v55, 0.0  ;;  %v905_v55 = vrot.slane %v5350_v19, %v7114_v35 }
 0x1e0   :  { %5631 = vmatpush3.msk.msra.mxu1 %vm395_vm3, %v383_v57  ;;  %v1211_v57 = vrot.slane %v5354_v38, %v7027_v59  ;;  %vm1280_vm3 = vcmask 293888  }
 0x1e1   :  { %5633 = vmatmul.mubr.msk.f32.vlgmr.msra.gmra.mrb[2].mxu1 %vm391_vm4, %v384_v58  ;;  %v1203_v58 = vrot.slane %v5354_v38, %v7114_v35  ;;  %vm1468_vm4 = vcmask 1048064  }
 0x1e2   :  { %1431 = vmatprep.mubr.f32.mxu1 %v6632_v36 }
 0x2b4   :  { %v465_v27 = vpop.f32.mrb[2].mxu1 }
 0x2b5   :  { %v466_v28 = vadd.f32 %v465_v27, %v389_v26  ;;  %v5634_v29 = vpop.f32.mrb[3].mxu1 }
 0x2b7   :  { %v5345_v30 = vmul.f32 -1.442695, %v466_v28 }
 0x2b9   :  { %6606 = vpow2.f32 %v5345_v30 }
 0x2c3   :  { %v6607_v31 = vpop.eup %6606 }
 0x2c4   :  { %v472_v32 = vadd.f32 1.0, %v6607_v31 }
 0x2c6   :  { %6608 = vrcp.f32 %v472_v32 }
 0x2d0   :  { %v6609_v33 = vpop.eup %6608 }
 0x2d1   :  { %478 = vperm.xlu1 %6599, %v6609_v33  }
 0x2d5   :  { %6600 = vset.pattern.permute.xlu1 %v6643_v40 }
 0x2d6   :  { %509 = vperm.xlu1 %6600, %v6609_v33   ;;  %v7189_v33 = vpop.permute.xlu0 %686 }
 0x2da   :  { %684 = vrot.lane.b32.xlu1 %v673_v41, %s6635_s28  ;;  %v7191_v34 = vpop.permute.xlu0 %839 }
 0x2db   :  { %6601 = vset.pattern.permute.xlu1 %v6634_v37  ;;  %v752_v37 = vrot.slane %v7071_v7, %v7114_v35  ;;  %v520_v7 = vrot.slane %v5346_v0, %v7114_v35 }
 0x2de   :  { %837 = vrot.lane.b32.xlu1 %v826_v43, %s6636_s11  ;;  %v7193_v38 = vpop.permute.xlu0 %682 }
 0x2e2   :  { %614 = vrot.lane.b32.xlu1 %v607_v44, %s10581_s29  ;;  %v7197_v40 = vpop.permute.xlu0 %835 }
 0x2e6   :  { %767 = vrot.lane.b32.xlu1 %v760_v45, %s6638_s8  ;;  %v7201_v42 = vpop.permute.xlu0 %612 }
 0x2ea   :  { %610 = vrot.lane.b32.xlu1 %v599_v46, %s10581_s29  ;;  %v7205_v44 = vpop.permute.xlu0 %765  ;;  %s10601_s29 = smov 47  }
 0x2ee   :  { %763 = vrot.lane.b32.xlu1 %v752_v37, %s6638_s8  ;;  %v7209_v46 = vpop.permute.xlu0 %608 }
 0x2f2   :  { %992 = vrot.lane.b32.xlu1 %v985_v47, %s6639_s9  ;;  %v7213_v47 = vpop.permute.xlu0 %761 }
 0x2f6   :  { %1141 = vrot.lane.b32.xlu1 %v1134_v48, %s6640_s7 }
 0x2fa   :  { %988 = vrot.lane.b32.xlu1 %v977_v49, %s6639_s9  ;;  %v7217_v49 = vpop.permute.xlu0 %990 }
 0x2fe   :  { %1137 = vrot.lane.b32.xlu1 %v1126_v52, %s6640_s7 }
 0x302   :  { %920 = vrot.lane.b32.xlu1 %v913_v53, %s6641_s3  ;;  %v7221_v53 = vpop.permute.xlu0 %1139 }
 0x306   :  { %1069 = vrot.lane.b32.xlu1 %v1062_v54, %s6642_s27 }
 0x30a   :  { %916 = vrot.lane.b32.xlu1 %v905_v55, %s6641_s3  ;;  %v7225_v55 = vpop.permute.xlu0 %986 }
 0x30e   :  { %1065 = vrot.lane.b32.xlu1 %v1054_v56, %s6642_s27 }
 0x312   :  { %1218 = vrot.lane.b32.xlu1 %v1211_v57, %s6644_s30  ;;  %v7229_v57 = vpop.permute.xlu0 %1135 }
 0x316   :  { %1214 = vrot.lane.b32.xlu1 %v1203_v58, %s6644_s30  ;;  %v7233_v63 = vpop.permute.xlu0 %918 }
 0x350   :  { %v479_v1 = vpop.permute.xlu1 %478 }
 0x351   :  { %v502_v10 = vmul.f32 %v485_v2, %v479_v1  ;;  %v503_v11 = vmul.f32 %v489_v3, %v479_v1  ;;  %v504_v12 = vmul.f32 %v493_v4, %v479_v1  ;;  %v505_v13 = vmul.f32 %v497_v5, %v479_v1  ;;  %v7237_v1 = vpop.permute.xlu0 %1067 }
 0x355   :  { %v510_v14 = vpop.permute.xlu1 %509  ;;  %v7241_v3 = vpop.permute.xlu0 %914 }
 0x356   :  { %v533_v15 = vmul.f32 %v516_v6, %v510_v14  ;;  %v534_v18 = vmul.f32 %v520_v7, %v510_v14  ;;  %v535_v19 = vmul.f32 %v524_v8, %v510_v14  ;;  %v536_v20 = vmul.f32 %v528_v9, %v510_v14 }
 0x358   :  { %v539_v21 = vadd.f32 %v535_v19, %v504_v12  ;;  %v540_v24 = vadd.f32 %v536_v20, %v505_v13  ;;  %v537_v25 = vadd.f32 %v533_v15, %v502_v10  ;;  %v538_v26 = vadd.f32 %v534_v18, %v503_v11 }
 0x359   :  { %v7195_v39 = vpop.permute.xlu1 %684  ;;  %v7245_v5 = vpop.permute.xlu0 %1063 }
 0x35a   :  { %v546_v27 = vcombine.low %v539_v21, %v540_v24  ;;  %v545_v28 = vcombine.low %v537_v25, %v538_v26 }
 0x35c   :  { %v550_v29 = vmul.f32 %v546_v27, %v6950_v17  ;;  %v549_v31 = vmul.f32 %v545_v28, %v6945_v16 }
 0x35d   :  { %v7199_v41 = vpop.permute.xlu1 %837  ;;  %v7249_v7 = vpop.permute.xlu0 %1216 }
 0x35e   :  { %565 = vrot.lane.b32.xlu0 %v550_v29, %s6641_s3  ;;  %v560_v30 = vcombine.high %v550_v29, %v550_v29  ;;  %v559_v32 = vcombine.high %v549_v31, %v549_v31 }
 0x360   :  { %567 = vrot.lane.b32.xlu1 %v560_v30, %s6641_s3 }
 0x361   :  { %v7203_v43 = vpop.permute.xlu1 %614  ;;  %v7253_v9 = vpop.permute.xlu0 %1212 }
 0x362   :  { %561 = vrot.lane.b32.xlu0 %v549_v31, %s6641_s3 }
 0x364   :  { %563 = vrot.lane.b32.xlu1 %v559_v32, %s6641_s3 }
 0x365   :  { %v7207_v45 = vpop.permute.xlu1 %767 }
 0x369   :  { %v7211_v37 = vpop.permute.xlu1 %610 }
 0x36d   :  { %v7215_v48 = vpop.permute.xlu1 %763 }
 0x371   :  { %v7219_v52 = vpop.permute.xlu1 %992 }
 0x375   :  { %v7223_v54 = vpop.permute.xlu1 %1141 }
 0x379   :  { %v7227_v56 = vpop.permute.xlu1 %988 }
 0x37d   :  { %v7231_v58 = vpop.permute.xlu1 %1137 }
 0x381   :  { %v7235_v0 = vpop.permute.xlu1 %920 }
 0x385   :  { %v7239_v2 = vpop.permute.xlu1 %1069 }
 0x389   :  { %v7243_v4 = vpop.permute.xlu1 %916 }
 0x38d   :  { %v7247_v6 = vpop.permute.xlu1 %1065 }
 0x391   :  { %v7251_v8 = vpop.permute.xlu1 %1218 }
 0x395   :  { %v7255_v10 = vpop.permute.xlu1 %1214 }
 0x3d0   :  { %v566_v11 = vpop.permute.xlu0 %565 }
 0x3d2   :  { %v568_v12 = vpop.permute.xlu1 %567 }
 0x3d3   :  { %v572_v13 = vsel %vm569_vm6, %v566_v11, %v568_v12  ;;  %584 = vst.msk [vmem:[#allocation2 + $0x20] sm:$0xf] %vm583_vm5, %v568_v12  ;;  %vm2149_vm5 = vcmask 588800  }
 0x3d4   :  { %582 = vst [vmem:[#allocation2 + $0x18] sm:$0xf] %v572_v13  ;;  %v562_v14 = vpop.permute.xlu0 %561 }
 0x3d5   :  { %579 = vst.msk [vmem:[#allocation2] sm:$0xf] %vm578_vm7, %v562_v14 }
 0x3d6   :  { %v564_v15 = vpop.permute.xlu1 %563 }
 0x3d7   :  { %v570_v18 = vsel %vm569_vm6, %v562_v14, %v564_v15  ;;  %v571_v19 = vsel %vm569_vm6, %v564_v15, %v566_v11 }
 0x3d8   :  { %580 = vst [vmem:[#allocation2 + $0x8] sm:$0xf] %v570_v18  ;;  %581 = vst [vmem:[#allocation2 + $0x10] sm:$0xf] %v571_v19 }
 0x3da   :  { %v589_v20 = vld [vmem:[#allocation2 + $0x20] sm:$0xf] }
 0x3db   :  { %v629_v21 = vmul.f32 %v7203_v43, %v589_v20  ;;  %v741_v25 = vld [vmem:[#allocation2 + $0x20] sm:$0xf]  ;;  %v588_v20 = vld [vmem:[#allocation2 + $0x18] sm:$0xf] }
 0x3dc   :  { %v585_v24 = vld [vmem:[#allocation2] sm:$0xf]  ;;  %v782_v29 = vmul.f32 %v7207_v45, %v741_v25 }
 0x3dd   :  { %v658_v26 = vld [vmem:[#allocation2] sm:$0xf]  ;;  %643 = vrot.lane.b32.xlu1 %v629_v21, %s6644_s30  ;;  %v625_v27 = vmul.f32 %v7209_v46, %v585_v24 }
 0x3de   :  { %v737_v28 = vld [vmem:[#allocation2] sm:$0xf]  ;;  %v699_v30 = vmul.f32 %v7193_v38, %v658_v26 }
 0x3df   :  { %635 = vrot.lane.b32.xlu0 %v625_v27, %s6644_s30  ;;  %v811_v31 = vld [vmem:[#allocation2] sm:$0xf]  ;;  %v778_v32 = vmul.f32 %v7213_v47, %v737_v28 }
 0x3e0   :  { %v890_v11 = vld [vmem:[#allocation2] sm:$0xf]  ;;  %v709_v12 = vrot.slane %v699_v30, 4  ;;  %v852_v13 = vmul.f32 %v7197_v40, %v811_v31  ;;  %v619_v31 = vsel %vm616_vm8, %v7201_v42, %v7203_v43  ;;  %v772_v43 = vsel %vm769_vm9, %v7205_v44, %v7207_v45 }
 0x3e1   :  { %796 = vrot.lane.b32.xlu1 %v782_v29, %s6642_s27  ;;  %v930_v14 = vmul.f32 %v7241_v3, %v890_v11  ;;  %v1039_v15 = vld [vmem:[#allocation2] sm:$0xf] }
 0x3e2   :  { %v862_v18 = vrot.slane %v852_v13, 4  ;;  %v894_v19 = vld [vmem:[#allocation2 + $0x20] sm:$0xf]  ;;  %v1079_v21 = vmul.f32 %v7245_v5, %v1039_v15  ;;  %v628_v13 = vmul.f32 %v619_v31, %v588_v20  ;;  %v617_v31 = vsel %vm616_vm8, %v7209_v46, %v7211_v37  ;;  %v893_v46 = vld [vmem:[#allocation2 + $0x18] sm:$0xf] }
 0x3e3   :  { %788 = vrot.lane.b32.xlu0 %v778_v32, %s6642_s27  ;;  %v1043_v24 = vld [vmem:[#allocation2 + $0x20] sm:$0xf]  ;;  %v934_v30 = vmul.f32 %v7235_v0, %v894_v19 }
 0x3e4   :  { %v7275_v25 = vld [vmem:[#allocation2 + $0x20] sm:$0xf]  ;;  %v1083_v15 = vmul.f32 %v7239_v2, %v1043_v24 }
 0x3e5   :  { %714 = vrot.lane.b32.xlu1 %v709_v12, %s6640_s7  ;;  %v7277_v26 = vld [vmem:[#allocation2 + $0x20] sm:$0xf] }
 0x3e6   :  { %v7279_v27 = vld [vmem:[#allocation2 + $0x20] sm:$0xf] }
 0x3e7   :  { %940 = vrot.lane.b32.xlu0 %v930_v14, %s6641_s3  ;;  %v7281_v28 = vld [vmem:[#allocation2 + $0x20] sm:$0xf]  ;;  %v740_v14 = vld [vmem:[#allocation2 + $0x18] sm:$0xf] }
 0x3e8   :  { %v7283_v29 = vld [vmem:[#allocation2 + $0x20] sm:$0xf]  ;;  %v781_v19 = vmul.f32 %v772_v43, %v740_v14  ;;  %v587_v14 = vld [vmem:[#allocation2 + $0x10] sm:$0xf]  ;;  %v924_v43 = vsel %vm569_vm6, %v7233_v63, %v7235_v0 }
 0x3e9   :  { %867 = vrot.lane.b32.xlu1 %v862_v18, %s6639_s9  ;;  %1447 = vst [vmem:[#allocation2 + $0x20] sm:$0xff] %v6632_v36  ;;  %v962_v32 = vld [vmem:[#allocation2] sm:$0xf] }
 0x3ea   :  { %v1111_v11 = vld [vmem:[#allocation2] sm:$0xf]  ;;  %v1002_v18 = vmul.f32 %v7225_v55, %v962_v32  ;;  %v738_v32 = vld [vmem:[#allocation2 + $0x8] sm:$0xf] }
 0x3eb   :  { %1089 = vrot.lane.b32.xlu0 %v1079_v21, %s6638_s8  ;;  %v7291_v12 = vld [vmem:[#allocation2] sm:$0xf]  ;;  %v586_v21 = vld [vmem:[#allocation2 + $0x8] sm:$0xf] }
 0x3ec   :  { %1443 = vst [vmem:[#allocation2] sm:$0xff] %v6632_v36  ;;  %v1012_v20 = vrot.slane %v1002_v18, 4  ;;  %v626_v24 = vmul.f32 %v617_v31, %v586_v21  ;;  %v771_v21 = vsel %vm769_vm9, %v7215_v48, %v7205_v44  ;;  %v923_v31 = vsel %vm569_vm6, %v7243_v4, %v7233_v63 }
 0x3ed   :  { %948 = vrot.lane.b32.xlu1 %v934_v30, %s6641_s3  ;;  %v1151_v30 = vmul.f32 %v7229_v57, %v1111_v11  ;;  %v618_v11 = vsel %vm616_vm8, %v7211_v37, %v7201_v42  ;;  %v1073_v37 = vsel %vm798_vm10, %v7237_v1, %v7239_v2 }
 0x3ee   :  { %v627_v18 = vmul.f32 %v618_v11, %v587_v14  ;;  %v703_v14 = vmul.f32 %v7165_v61, %v7275_v25  ;;  %v661_v11 = vld [vmem:[#allocation2 + $0x18] sm:$0xf]  ;;  %v693_v25 = vsel %vm690_vm11, %v7189_v33, %v7165_v61  ;;  %v846_v61 = vsel %vm843_vm13, %v7191_v34, %v7167_v62 }
 0x3ef   :  { %641 = vrot.lane.b32.xlu0 %v628_v13, %s6644_s30  ;;  %v1161_v45 = vrot.slane %v1151_v30, 4  ;;  %v770_v13 = vsel %vm769_vm9, %v7213_v47, %v7215_v48  ;;  %v933_v47 = vmul.f32 %v924_v43, %v893_v46  ;;  %v892_v30 = vld [vmem:[#allocation2 + $0x10] sm:$0xf]  ;;  %v922_v48 = vsel %vm569_vm6, %v7241_v3, %v7243_v4  ;;  %v1191_v4 = vld [vmem:[#allocation2 + $0x18] sm:$0xf] }
 0x3f0   :  { %v932_v44 = vmul.f32 %v923_v31, %v892_v30  ;;  %v856_v46 = vmul.f32 %v7167_v62, %v7277_v26  ;;  %v814_v43 = vld [vmem:[#allocation2 + $0x18] sm:$0xf]  ;;  %v1006_v26 = vmul.f32 %v7219_v52, %v7279_v27  ;;  %v691_v30 = vsel %vm690_vm11, %v7193_v38, %v7195_v39  ;;  %v660_v27 = vld [vmem:[#allocation2 + $0x10] sm:$0xf] }
 0x3f1   :  { %1097 = vrot.lane.b32.xlu1 %v1083_v15, %s6638_s8  ;;  %v779_v15 = vmul.f32 %v770_v13, %v738_v32  ;;  %v1041_v32 = vld [vmem:[#allocation2 + $0x10] sm:$0xf]  ;;  %v1040_v13 = vld [vmem:[#allocation2 + $0x8] sm:$0xf]  ;;  %v692_v31 = vsel %vm690_vm11, %v7195_v39, %v7189_v33  ;;  %v965_v33 = vld [vmem:[#allocation2 + $0x18] sm:$0xf] }
 0x3f3   :  { %794 = vrot.lane.b32.xlu0 %v781_v19, %s6642_s27  ;;  %v739_v19 = vld [vmem:[#allocation2 + $0x10] sm:$0xf] }
 0x3f4   :  { %v780_v42 = vmul.f32 %v771_v21, %v739_v19  ;;  %v866_v19 = vrot.slane %v856_v46, 4  ;;  %v855_v21 = vmul.f32 %v846_v61, %v814_v43 }
 0x3f5   :  { %1017 = vrot.lane.b32.xlu1 %v1012_v20, %s6636_s11  ;;  %v1042_v20 = vld [vmem:[#allocation2 + $0x18] sm:$0xf] }
 0x3f6   :  { %v1082_v0 = vmul.f32 %v1073_v37, %v1042_v20  ;;  %v659_v20 = vld [vmem:[#allocation2 + $0x8] sm:$0xf]  ;;  %v1155_v37 = vmul.f32 %v7223_v54, %v7281_v28  ;;  %v844_v28 = vsel %vm843_vm13, %v7197_v40, %v7199_v41  ;;  %v964_v40 = vld [vmem:[#allocation2 + $0x10] sm:$0xf] }
 0x3f7   :  { %637 = vrot.lane.b32.xlu0 %v626_v24, %s6644_s30  ;;  %v891_v24 = vld [vmem:[#allocation2 + $0x8] sm:$0xf]  ;;  %v700_v62 = vmul.f32 %v691_v30, %v659_v20  ;;  %v1221_v20 = vsel %vm645_vm12, %v7255_v10, %v7249_v7 }
 0x3f8   :  { %v931_v2 = vmul.f32 %v922_v48, %v891_v24  ;;  %v812_v24 = vld [vmem:[#allocation2 + $0x8] sm:$0xf]  ;;  %v701_v48 = vmul.f32 %v692_v31, %v660_v27  ;;  %v2328_v31 = vsel %vm309_vm1, %v6963_v22, 0.0 }
 0x3f9   :  { %1166 = vrot.lane.b32.xlu1 %v1161_v45, %s6635_s28  ;;  %v1072_v45 = vsel %vm798_vm10, %v7247_v6, %v7237_v1  ;;  %v713_v1 = vrot.slane %v703_v14, 4  ;;  %v710_v38 = vrot.slane %v700_v62, 4  ;;  %v7437_v30 = vld [vmem:[%s10599_s6 + $0x1] ss:$8 sm:$0xf]  ;;  %v2327_v62 = vsel %vm309_vm1, %v6945_v16, 0.0 }
 0x3fa   :  { %v1081_v63 = vmul.f32 %v1072_v45, %v1041_v32  ;;  %v813_v32 = vld [vmem:[#allocation2 + $0x10] sm:$0xf]  ;;  %v845_v45 = vsel %vm843_vm13, %v7199_v41, %v7191_v34  ;;  %v711_v39 = vrot.slane %v701_v48, 4  ;;  %v1114_v34 = vld [vmem:[#allocation2 + $0x18] sm:$0xf]  ;;  %v2332_v16 = vsel %vm309_vm1, %v6967_v23, 0.0 }
 0x3fb   :  { %790 = vrot.lane.b32.xlu0 %v779_v15, %s6642_s27  ;;  %v1071_v15 = vsel %vm798_vm10, %v7245_v5, %v7247_v6  ;;  %v1222_v5 = vsel %vm645_vm12, %v7249_v7, %v7251_v8  ;;  %v1228_v7 = vmul.f32 %v7253_v9, %v7291_v12  ;;  %v1567_v12 = vrot.slane %v7437_v30, %v7027_v59 }
 0x3fc   :  { %v1080_v3 = vmul.f32 %v1071_v15, %v1040_v13  ;;  %v1231_v6 = vmul.f32 %v1222_v5, %v1191_v4  ;;  %v854_v13 = vmul.f32 %v845_v45, %v813_v32  ;;  %v963_v5 = vld [vmem:[#allocation2 + $0x8] sm:$0xf] }
 0x3fd   :  { %639 = vrot.lane.b32.xlu1 %v627_v18, %s6644_s30  ;;  %v702_v18 = vmul.f32 %v693_v25, %v661_v11  ;;  %v1145_v11 = vsel %vm724_vm15, %v7221_v53, %v7223_v54  ;;  %v1144_v25 = vsel %vm724_vm15, %v7231_v58, %v7221_v53  ;;  %v1143_v53 = vsel %vm724_vm15, %v7229_v57, %v7231_v58  ;;  %v7473_v45 = vld [vmem:[%s10599_s6 + $0x3] ss:$8 sm:$0xf] }
 0x3fe   :  { %v864_v41 = vrot.slane %v854_v13, 4  ;;  %v1154_v46 = vmul.f32 %v1145_v11, %v1114_v34  ;;  %v1220_v58 = vsel %vm645_vm12, %v7253_v9, %v7255_v10  ;;  %v1563_v9 = vrot.slane %v7437_v30, %v7030_v60 }
 0x3ff   :  { %946 = vrot.lane.b32.xlu0 %v933_v47, %s6641_s3  ;;  %v712_v47 = vrot.slane %v702_v18, 4  ;;  %v994_v18 = vsel %vm877_vm14, %v7225_v55, %v7227_v56  ;;  %v1232_v55 = vmul.f32 %v7251_v8, %v7283_v29  ;;  %v7424_v8 = vld [vmem:[%s10599_s6] ss:$8 sm:$0xf]  ;;  %v1701_v34 = vrot.slane %v7473_v45, %v7114_v35 }
 0x400   :  { %v1164_v54 = vrot.slane %v1154_v46, 4  ;;  %v1003_v43 = vmul.f32 %v994_v18, %v963_v5  ;;  %v1492_v29 = vrot.slane %v7424_v8, %v7030_v60  ;;  %v1496_v10 = vrot.slane %v7424_v8, %v7027_v59 }
 0x401   :  { %792 = vrot.lane.b32.xlu1 %v780_v42, %s6642_s27  ;;  %v1016_v42 = vrot.slane %v1006_v26, 4  ;;  %v1488_v27 = vrot.slane %v7424_v8, %v7114_v35 }
 0x402   :  { %v1013_v61 = vrot.slane %v1003_v43, 4 }
 0x403   :  { %1095 = vrot.lane.b32.xlu0 %v1082_v0, %s6638_s8  ;;  %v865_v0 = vrot.slane %v855_v21, 4 }
 0x405   :  { %944 = vrot.lane.b32.xlu1 %v932_v44, %s6641_s3  ;;  %v1165_v44 = vrot.slane %v1155_v37, 4 }
 0x407   :  { %942 = vrot.lane.b32.xlu0 %v931_v2, %s6641_s3  ;;  %v853_v2 = vmul.f32 %v844_v28, %v812_v24  ;;  %v7458_v24 = vld [vmem:[%s10599_s6 + $0x2] ss:$8 sm:$0xf]  ;;  %v2330_v28 = vsel %vm309_vm1, %v6950_v17, 0.0  ;;  %v1709_v17 = vrot.slane %v7473_v45, %v7027_v59 }
 0x408   :  { %v1634_v48 = vrot.slane %v7458_v24, %v7030_v60 }
 0x409   :  { %1093 = vrot.lane.b32.xlu1 %v1081_v63, %s6638_s8  ;;  %v996_v63 = vsel %vm877_vm14, %v7217_v49, %v7219_v52  ;;  %v863_v14 = vrot.slane %v853_v2, 4  ;;  %v1113_v52 = vld [vmem:[#allocation2 + $0x10] sm:$0xf]  ;;  %v1638_v2 = vrot.slane %v7458_v24, %v7027_v59 }
 0x40a   :  { %v1005_v15 = vmul.f32 %v996_v63, %v965_v33 }
 0x40b   :  { %1091 = vrot.lane.b32.xlu0 %v1080_v3, %s6638_s8  ;;  %v995_v3 = vsel %vm877_vm14, %v7227_v56, %v7217_v49  ;;  %v1190_v56 = vld [vmem:[#allocation2 + $0x10] sm:$0xf] }
 0x40c   :  { %v1004_v4 = vmul.f32 %v995_v3, %v964_v40  ;;  %v1230_v57 = vmul.f32 %v1221_v20, %v1190_v56 }
 0x40d   :  { %722 = vrot.lane.b32.xlu1 %v713_v1, %s6640_s7  ;;  %v1015_v1 = vrot.slane %v1005_v15, 4 }
 0x40e   :  { %v1014_v49 = vrot.slane %v1004_v4, 4 }
 0x40f   :  { %1244 = vrot.lane.b32.xlu0 %v1231_v6, %s10601_s29  ;;  %v1153_v6 = vmul.f32 %v1144_v25, %v1113_v52 }
 0x411   :  { %875 = vrot.lane.b32.xlu1 %v866_v19, %s6639_s9  ;;  %v1112_v19 = vld [vmem:[#allocation2 + $0x8] sm:$0xf]  ;;  %v1163_v26 = vrot.slane %v1153_v6, 4 }
 0x413   :  { %720 = vrot.lane.b32.xlu0 %v712_v47, %s6640_s7  ;;  %v1152_v47 = vmul.f32 %v1143_v53, %v1112_v19  ;;  %v1705_v19 = vrot.slane %v7473_v45, %v7030_v60 }
 0x415   :  { %1025 = vrot.lane.b32.xlu1 %v1016_v42, %s6636_s11  ;;  %v1162_v21 = vrot.slane %v1152_v47, 4  ;;  %v1189_v42 = vld [vmem:[#allocation2 + $0x8] sm:$0xf] }
 0x416   :  { %v1229_v37 = vmul.f32 %v1220_v58, %v1189_v42 }
 0x417   :  { %873 = vrot.lane.b32.xlu0 %v865_v0, %s6639_s9  ;;  %v1559_v0 = vrot.slane %v7437_v30, %v7114_v35 }
 0x419   :  { %1174 = vrot.lane.b32.xlu1 %v1165_v44, %s6635_s28  ;;  %v2329_v44 = vadd.f32 %v2328_v31, %v2327_v62 }
 0x41b   :  { %716 = vrot.lane.b32.xlu0 %v710_v38, %s6640_s7  ;;  %v2331_v32 = vadd.f32 %v2330_v28, %v2329_v44 }
 0x41d   :  { %718 = vrot.lane.b32.xlu1 %v711_v39, %s6640_s7  ;;  %v2333_v39 = vadd.f32 %v2332_v16, %v2331_v32  ;;  %v7563_v16 = vld [vmem:[%s10599_s6 + $0x20] ss:$8 sm:$0xf] }
 0x41f   :  { %869 = vrot.lane.b32.xlu0 %v863_v14, %s6639_s9  ;;  %v1630_v14 = vrot.slane %v7458_v24, %v7114_v35 }
 0x421   :  { %871 = vrot.lane.b32.xlu1 %v864_v41, %s6639_s9  ;;  %v7493_v41 = vld [vmem:[%s10599_s6 + $0x4] ss:$8 sm:$0xf] }
 0x422   :  { %v1776_v52 = vrot.slane %v7493_v41, %v7030_v60  ;;  %v1780_v5 = vrot.slane %v7493_v41, %v7027_v59  ;;  %v1772_v47 = vrot.slane %v7493_v41, %v7114_v35 }
 0x423   :  { %1023 = vrot.lane.b32.xlu0 %v1015_v1, %s6636_s11 }
 0x425   :  { %1021 = vrot.lane.b32.xlu1 %v1014_v49, %s6636_s11  ;;  %v7507_v49 = vld [vmem:[%s10599_s6 + $0x5] ss:$8 sm:$0xf] }
 0x426   :  { %v1847_v43 = vrot.slane %v7507_v49, %v7030_v60  ;;  %v1851_v56 = vrot.slane %v7507_v49, %v7027_v59 }
 0x427   :  { %1172 = vrot.lane.b32.xlu0 %v1164_v54, %s6635_s28 }
 0x429   :  { %1170 = vrot.lane.b32.xlu1 %v1163_v26, %s6635_s28 }
 0x42b   :  { %1019 = vrot.lane.b32.xlu0 %v1013_v61, %s6636_s11 }
 0x42d   :  { %1246 = vrot.lane.b32.xlu1 %v1232_v55, %s10601_s29  ;;  %v7527_v55 = vld [vmem:[%s10599_s6 + $0x6] ss:$8 sm:$0xf] }
 0x42e   :  { %v1922_v31 = vrot.slane %v7527_v55, %v7027_v59  ;;  %v1914_v32 = vrot.slane %v7527_v55, %v7114_v35 }
 0x42f   :  { %1168 = vrot.lane.b32.xlu0 %v1162_v21, %s6635_s28 }
 0x431   :  { %1242 = vrot.lane.b32.xlu1 %v1230_v57, %s10601_s29  ;;  %v1918_v57 = vrot.slane %v7527_v55, %v7030_v60 }
 0x433   :  { %1240 = vrot.lane.b32.xlu0 %v1229_v37, %s10601_s29 }
 0x435   :  { %1501 = vrot.lane.b32.xlu1 %v1492_v29, %s10601_s29  ;;  %v1843_v29 = vrot.slane %v7507_v49, %v7114_v35 }
 0x437   :  { %1238 = vrot.lane.b32.xlu0 %v1228_v7, %s10601_s29  ;;  %v7541_v7 = vld [vmem:[%s10599_s6 + $0x7] ss:$8 sm:$0xf] }
 0x439   :  { %1503 = vrot.lane.b32.xlu1 %v1496_v10, %s10601_s29 }
 0x43d   :  { %1572 = vrot.lane.b32.xlu1 %v1563_v9, %s6635_s28 }
 0x441   :  { %1574 = vrot.lane.b32.xlu1 %v1567_v12, %s6635_s28 }
 0x445   :  { %1499 = vrot.lane.b32.xlu1 %v1488_v27, %s10601_s29  ;;  %v1989_v27 = vrot.slane %v7541_v7, %v7030_v60 }
 0x449   :  { %1570 = vrot.lane.b32.xlu1 %v1559_v0, %s6635_s28 }
 0x44d   :  { %1643 = vrot.lane.b32.xlu1 %v1634_v48, %s6638_s8 }
 0x44f   :  { %v644_v38 = vpop.permute.xlu1 %643 }
 0x451   :  { %v636_v33 = vpop.permute.xlu0 %635  ;;  %1645 = vrot.lane.b32.xlu1 %v1638_v2, %s6638_s8  ;;  %v1993_v2 = vrot.slane %v7541_v7, %v7027_v59 }
 0x453   :  { %v797_v13 = vpop.permute.xlu1 %796 }
 0x455   :  { %v789_v63 = vpop.permute.xlu0 %788  ;;  %1716 = vrot.lane.b32.xlu1 %v1709_v17, %s6636_s11 }
 0x456   :  { %2334 = vadd.xlane.f32.xlu0 %v2333_v39 }
 0x457   :  { %v7478_v40 = vpop.permute.xlu1 %714 }
 0x459   :  { %v7483_v15 = vpop.permute.xlu0 %940  ;;  %1641 = vrot.lane.b32.xlu1 %v1630_v14, %s6638_s8 }
 0x45b   :  { %v7485_v3 = vpop.permute.xlu1 %867 }
 0x45d   :  { %v7495_v4 = vpop.permute.xlu0 %1089  ;;  %1712 = vrot.lane.b32.xlu1 %v1701_v34, %s6636_s11  ;;  %v1985_v34 = vrot.slane %v7541_v7, %v7114_v35 }
 0x45f   :  { %v949_v11 = vpop.permute.xlu1 %948 }
 0x461   :  { %v642_v1 = vpop.permute.xlu0 %641  ;;  %1785 = vrot.lane.b32.xlu1 %v1776_v52, %s6641_s3 }
 0x462   :  { %v649_v46 = vsel %vm645_vm12, %v642_v1, %v644_v38 }
 0x463   :  { %657 = vst [vmem:[#allocation3 + $0x18] sm:$0xf] %v649_v46  ;;  %v1098_v25 = vpop.permute.xlu1 %1097  ;;  %v2064_v46 = vrot.slane %v7563_v16, %v7027_v59  ;;  %v1626_v59 = vrot.slane %v7458_v24, %v7019_v51  ;;  %v1839_v24 = vrot.slane %v7507_v49, %v7019_v51  ;;  %v1981_v49 = vrot.slane %v7541_v7, %v7019_v51 }
 0x465   :  { %v795_v6 = vpop.permute.xlu0 %794  ;;  %1787 = vrot.lane.b32.xlu1 %v1780_v5, %s6641_s3 }
 0x466   :  { %v802_v18 = vsel %vm798_vm10, %v795_v6, %v797_v13 }
 0x467   :  { %810 = vst [vmem:[#allocation3 + $0x38] sm:$0xf] %v802_v18  ;;  %v7510_v54 = vpop.permute.xlu1 %1017 }
 0x469   :  { %v638_v26 = vpop.permute.xlu0 %637  ;;  %1856 = vrot.lane.b32.xlu1 %v1847_v43, %s6639_s9 }
 0x46a   :  { %v646_v53 = vsel %vm645_vm12, %v636_v33, %v638_v26 }
 0x46b   :  { %654 = vst [vmem:[#allocation3] sm:$0xf] %v646_v53  ;;  %v7518_v61 = vpop.permute.xlu1 %1166  ;;  %v1768_v53 = vrot.slane %v7493_v41, %v7019_v51 }
 0x46c   :  { %1714 = vrot.lane.b32.xlu0 %v1705_v19, %s6636_s11 }
 0x46d   :  { %v791_v21 = vpop.permute.xlu0 %790  ;;  %1783 = vrot.lane.b32.xlu1 %v1772_v47, %s6641_s3 }
 0x46e   :  { %v799_v20 = vsel %vm798_vm10, %v789_v63, %v791_v21  ;;  %v2060_v63 = vrot.slane %v7563_v16, %v7030_v60  ;;  %v2056_v60 = vrot.slane %v7563_v16, %v7114_v35 }
 0x46f   :  { %807 = vst [vmem:[#allocation3 + $0x20] sm:$0xf] %v799_v20  ;;  %v640_v42 = vpop.permute.xlu1 %639 }
 0x470   :  { %v647_v58 = vsel %vm645_vm12, %v638_v26, %v640_v42  ;;  %v648_v37 = vsel %vm645_vm12, %v640_v42, %v642_v1  ;;  %1858 = vrot.lane.b32.xlu0 %v1851_v56, %s6639_s9 }
 0x471   :  { %655 = vst [vmem:[#allocation3 + $0x8] sm:$0xf] %v647_v58  ;;  %656 = vst [vmem:[#allocation3 + $0x10] sm:$0xf] %v648_v37  ;;  %v947_v10 = vpop.permute.xlu0 %946  ;;  %1927 = vrot.lane.b32.xlu1 %v1918_v57, %s6642_s27 }
 0x472   :  { %v953_v9 = vsel %vm569_vm6, %v947_v10, %v949_v11 }
 0x473   :  { %961 = vst [vmem:[#allocation3 + $0x58] sm:$0xf] %v953_v9  ;;  %v793_v12 = vpop.permute.xlu1 %792 }
 0x474   :  { %v800_v0 = vsel %vm798_vm10, %v791_v21, %v793_v12  ;;  %v801_v62 = vsel %vm798_vm10, %v793_v12, %v795_v6  ;;  %1854 = vrot.lane.b32.xlu0 %v1843_v29, %s6639_s9  ;;  %v1555_v6 = vrot.slane %v7437_v30, %v7019_v51  ;;  %v1910_v21 = vrot.slane %v7527_v55, %v7019_v51 }
 0x475   :  { %808 = vst [vmem:[#allocation3 + $0x28] sm:$0xf] %v800_v0  ;;  %809 = vst [vmem:[#allocation3 + $0x30] sm:$0xf] %v801_v62  ;;  %v1096_v44 = vpop.permute.xlu0 %1095  ;;  %1998 = vrot.lane.b32.xlu1 %v1989_v27, %s6640_s7 }
 0x476   :  { %v1102_v48 = vsel %vm769_vm9, %v1096_v44, %v1098_v25 }
 0x477   :  { %1110 = vst [vmem:[#allocation3 + $0x78] sm:$0xf] %v1102_v48  ;;  %v945_v28 = vpop.permute.xlu1 %944 }
 0x478   :  { %v952_v38 = vsel %vm569_vm6, %v945_v28, %v947_v10  ;;  %1929 = vrot.lane.b32.xlu0 %v1922_v31, %s6642_s27 }
 0x479   :  { %960 = vst [vmem:[#allocation3 + $0x50] sm:$0xf] %v952_v38  ;;  %v943_v33 = vpop.permute.xlu0 %942  ;;  %1925 = vrot.lane.b32.xlu1 %v1914_v32, %s6642_s27 }
 0x47a   :  { %v950_v39 = vsel %vm569_vm6, %v7483_v15, %v943_v33  ;;  %v951_v13 = vsel %vm569_vm6, %v943_v33, %v945_v28 }
 0x47b   :  { %958 = vst [vmem:[#allocation3 + $0x40] sm:$0xf] %v950_v39  ;;  %959 = vst [vmem:[#allocation3 + $0x48] sm:$0xf] %v951_v13  ;;  %v1094_v17 = vpop.permute.xlu1 %1093 }
 0x47c   :  { %v1101_v14 = vsel %vm769_vm9, %v1094_v17, %v1096_v44  ;;  %2000 = vrot.lane.b32.xlu0 %v1993_v2, %s6640_s7 }
 0x47d   :  { %1109 = vst [vmem:[#allocation3 + $0x70] sm:$0xf] %v1101_v14  ;;  %v1092_v11 = vpop.permute.xlu0 %1091  ;;  %2069 = vrot.lane.b32.xlu1 %v2060_v63, %s6644_s30 }
 0x47e   :  { %v1099_v15 = vsel %vm769_vm9, %v7495_v4, %v1092_v11  ;;  %v1100_v52 = vsel %vm769_vm9, %v1092_v11, %v1094_v17  ;;  %v1484_v4 = vrot.slane %v7424_v8, %v7019_v51  ;;  %v1697_v8 = vrot.slane %v7473_v45, %v7019_v51 }
 0x47f   :  { %1107 = vst [vmem:[#allocation3 + $0x60] sm:$0xf] %v1099_v15  ;;  %1108 = vst [vmem:[#allocation3 + $0x68] sm:$0xf] %v1100_v52  ;;  %v723_v1 = vpop.permute.xlu1 %722 }
 0x480   :  { %1996 = vrot.lane.b32.xlu0 %v1985_v34, %s6640_s7 }
 0x481   :  { %v7586_v25 = vpop.permute.xlu0 %1244  ;;  %2067 = vrot.lane.b32.xlu1 %v2056_v60, %s6644_s30 }
 0x483   :  { %v876_v5 = vpop.permute.xlu1 %875 }
 0x484   :  { %2071 = vrot.lane.b32.xlu0 %v2064_v46, %s6644_s30 }
 0x485   :  { %v721_v18 = vpop.permute.xlu0 %720  ;;  %1497 = vrot.lane.b32.xlu1 %v1484_v4, %s10601_s29 }
 0x486   :  { %v728_v35 = vsel %vm724_vm15, %v721_v18, %v723_v1 }
 0x487   :  { %736 = vst [vmem:[#allocation3 + $0x18] sm:$0xf0] %v728_v35  ;;  %v1026_v43 = vpop.permute.xlu1 %1025 }
 0x488   :  { %1568 = vrot.lane.b32.xlu0 %v1555_v6, %s6635_s28 }
 0x489   :  { %v874_v19 = vpop.permute.xlu0 %873  ;;  %1639 = vrot.lane.b32.xlu1 %v1626_v59, %s6638_s8 }
 0x48a   :  { %v881_v26 = vsel %vm877_vm14, %v874_v19, %v876_v5 }
 0x48b   :  { %889 = vst [vmem:[#allocation3 + $0x38] sm:$0xf0] %v881_v26  ;;  %v1175_v30 = vpop.permute.xlu1 %1174 }
 0x48c   :  { %1710 = vrot.lane.b32.xlu0 %v1697_v8, %s6636_s11 }
 0x48d   :  { %v717_v47 = vpop.permute.xlu0 %716  ;;  %1781 = vrot.lane.b32.xlu1 %v1768_v53, %s6641_s3 }
 0x48e   :  { %v725_v56 = vsel %vm724_vm15, %v7478_v40, %v717_v47  ;;  %v1263_v57 = vld [vmem:[#allocation3 + $0x18] sm:$0xff] }
 0x48f   :  { %733 = vst [vmem:[#allocation3] sm:$0xf0] %v725_v56  ;;  %v719_v45 = vpop.permute.xlu1 %718  ;;  %v551_v56 = vld [vmem:[%s10602_s2] sm:$0xff]  ;;  %s10603_s2 = sld [smem:[#allocation14_spill]] }
 0x490   :  { %v726_v20 = vsel %vm724_vm15, %v717_v47, %v719_v45  ;;  %v727_v41 = vsel %vm724_vm15, %v719_v45, %v721_v18  ;;  %1852 = vrot.lane.b32.xlu0 %v1839_v24, %s6639_s9 }
 0x491   :  { %734 = vst [vmem:[#allocation3 + $0x8] sm:$0xf0] %v726_v20  ;;  %735 = vst [vmem:[#allocation3 + $0x10] sm:$0xf0] %v727_v41  ;;  %v870_v42 = vpop.permute.xlu0 %869  ;;  %1923 = vrot.lane.b32.xlu1 %v1910_v21, %s6642_s27 }
 0x492   :  { %v878_v40 = vsel %vm877_vm14, %v7485_v3, %v870_v42  ;;  %v1267_v58 = vld [vmem:[#allocation3 + $0x38] sm:$0xff] }
 0x493   :  { %886 = vst [vmem:[#allocation3 + $0x20] sm:$0xf0] %v878_v40  ;;  %v872_v37 = vpop.permute.xlu1 %871  ;;  %v5731_v55 = vpack.c.bf16 %v1267_v58, %v1263_v57 }
 0x494   :  { %v879_v29 = vsel %vm877_vm14, %v870_v42, %v872_v37  ;;  %v880_v10 = vsel %vm877_vm14, %v872_v37, %v874_v19  ;;  %1994 = vrot.lane.b32.xlu0 %v1981_v49, %s6640_s7 }
 0x495   :  { %887 = vst [vmem:[#allocation3 + $0x28] sm:$0xf0] %v879_v29  ;;  %888 = vst [vmem:[#allocation3 + $0x30] sm:$0xf0] %v880_v10  ;;  %v1024_v7 = vpop.permute.xlu0 %1023  ;;  %5732 = vmatprep.subr.bf16.mxu1 %v5731_v55 }
 0x496   :  { %v1030_v9 = vsel %vm843_vm13, %v1024_v7, %v1026_v43  ;;  %v1260_v13 = vld [vmem:[#allocation3] sm:$0xff] }
 0x497   :  { %1038 = vst [vmem:[#allocation3 + $0x58] sm:$0xf0] %v1030_v9  ;;  %v1022_v3 = vpop.permute.xlu1 %1021 }
 0x498   :  { %v1029_v12 = vsel %vm843_vm13, %v1022_v3, %v1024_v7  ;;  %v1261_v31 = vld [vmem:[#allocation3 + $0x8] sm:$0xff]  ;;  %v1262_v32 = vld [vmem:[#allocation3 + $0x10] sm:$0xff] }
 0x499   :  { %1037 = vst [vmem:[#allocation3 + $0x50] sm:$0xf0] %v1029_v12  ;;  %v1173_v27 = vpop.permute.xlu0 %1172 }
 0x49a   :  { %v1179_v0 = vsel %vm690_vm11, %v1173_v27, %v1175_v30  ;;  %v1264_v44 = vld [vmem:[#allocation3 + $0x20] sm:$0xff] }
 0x49b   :  { %1187 = vst [vmem:[#allocation3 + $0x78] sm:$0xf0] %v1179_v0  ;;  %v1171_v62 = vpop.permute.xlu1 %1170  ;;  %v5725_v14 = vpack.c.bf16 %v1264_v44, %v1260_v13 }
 0x49c   :  { %v1178_v48 = vsel %vm690_vm11, %v1171_v62, %v1173_v27  ;;  %v1265_v28 = vld [vmem:[#allocation3 + $0x28] sm:$0xff]  ;;  %v1266_v38 = vld [vmem:[#allocation3 + $0x30] sm:$0xff] }
 0x49d   :  { %1186 = vst [vmem:[#allocation3 + $0x70] sm:$0xf0] %v1178_v48  ;;  %v1020_v2 = vpop.permute.xlu0 %1019  ;;  %v5723_v33 = vpack.c.bf16 %v1265_v28, %v1261_v31  ;;  %v5733_v39 = vpack.c.bf16 %v1266_v38, %v1262_v32 }
 0x49e   :  { %v1027_v17 = vsel %vm843_vm13, %v7510_v54, %v1020_v2  ;;  %v1028_v63 = vsel %vm843_vm13, %v1020_v2, %v1022_v3  ;;  %v1271_v54 = vld [vmem:[#allocation3 + $0x58] sm:$0xff] }
 0x49f   :  { %1035 = vst [vmem:[#allocation3 + $0x40] sm:$0xf0] %v1027_v17  ;;  %1036 = vst [vmem:[#allocation3 + $0x48] sm:$0xf0] %v1028_v63  ;;  %5724 = vmatprep.subr.bf16.mxu0 %v5723_v33  ;;  %5734 = vmatpush1.bf16.msra.mxu1 %v5733_v39  ;;  %v1247_v34 = vpop.permute.xlu1 %1246 }
 0x4a0   :  { %v1251_v11 = vsel %vm616_vm8, %v7586_v25, %v1247_v34  ;;  %5726 = vmatpush1.bf16.msra.mxu0 %v5725_v14  ;;  %v1270_v6 = vld [vmem:[#allocation3 + $0x50] sm:$0xff] }
 0x4a1   :  { %1259 = vst [vmem:[#allocation3 + $0x98] sm:$0xf] %v1251_v11  ;;  %v1169_v15 = vpop.permute.xlu0 %1168 }
 0x4a2   :  { %v1176_v52 = vsel %vm690_vm11, %v7518_v61, %v1169_v15  ;;  %v1177_v1 = vsel %vm690_vm11, %v1169_v15, %v1171_v62  ;;  %v1275_v60 = vld [vmem:[#allocation3 + $0x78] sm:$0xff] }
 0x4a3   :  { %1184 = vst [vmem:[#allocation3 + $0x60] sm:$0xf0] %v1176_v52  ;;  %1185 = vst [vmem:[#allocation3 + $0x68] sm:$0xf0] %v1177_v1  ;;  %v1243_v46 = vpop.permute.xlu1 %1242  ;;  %v5735_v5 = vpack.c.bf16 %v1275_v60, %v1271_v54 }
 0x4a4   :  { %v1250_v4 = vsel %vm616_vm8, %v1243_v46, %v7586_v25  ;;  %v1274_v18 = vld [vmem:[#allocation3 + $0x70] sm:$0xff] }
 0x4a5   :  { %1258 = vst [vmem:[#allocation3 + $0x90] sm:$0xf] %v1250_v4  ;;  %v1241_v35 = vpop.permute.xlu0 %1240  ;;  %5736 = vmatprep.subr.bf16.mxu1 %v5735_v5  ;;  %v5737_v43 = vpack.c.bf16 %v1274_v18, %v1270_v6  ;;  %v2052_v5 = vrot.slane %v7563_v16, %v7019_v51 }
 0x4a6   :  { %v1249_v59 = vsel %vm616_vm8, %v1241_v35, %v1243_v46  ;;  %v1269_v19 = vld [vmem:[#allocation3 + $0x48] sm:$0xff]  ;;  %v1268_v53 = vld [vmem:[#allocation3 + $0x40] sm:$0xff] }
 0x4a7   :  { %1257 = vst [vmem:[#allocation3 + $0x88] sm:$0xf] %v1249_v59  ;;  %5738 = vmatpush1.bf16.msra.mxu1 %v5737_v43  ;;  %v7649_v41 = vpop.permute.xlu1 %1501 }
 0x4a8   :  { %v1279_v61 = vld [vmem:[#allocation3 + $0x98] sm:$0xf] }
 0x4a9   :  { %v1239_v8 = vpop.permute.xlu0 %1238  ;;  %5358 = vmatprep.subr.msk.mxu1 %vm309_vm1, %v1279_v61 }
 0x4aa   :  { %v1248_v26 = vsel %vm616_vm8, %v1239_v8, %v1241_v35  ;;  %v1273_v30 = vld [vmem:[#allocation3 + $0x68] sm:$0xff]  ;;  %v1272_v25 = vld [vmem:[#allocation3 + $0x60] sm:$0xff] }
 0x4ab   :  { %1256 = vst [vmem:[#allocation3 + $0x80] sm:$0xf] %v1248_v26  ;;  %v5727_v24 = vpack.c.bf16 %v1273_v30, %v1269_v19  ;;  %v5729_v47 = vpack.c.bf16 %v1272_v25, %v1268_v53  ;;  %v7651_v49 = vpop.permute.xlu1 %1503 }
 0x4ac   :  { %v1278_v45 = vld [vmem:[#allocation3 + $0x90] sm:$0xf] }
 0x4ad   :  { %5728 = vmatprep.subr.bf16.mxu0 %v5727_v24  ;;  %5359 = vmatpush1.msk.msra.mxu1 %vm309_vm1, %v1278_v45  ;;  %v1507_v45 = vsel %vm616_vm8, %v7649_v41, %v7651_v49 }
 0x4ae   :  { %5730 = vmatpush1.bf16.msra.mxu0 %v5729_v47  ;;  %v1277_v21 = vld [vmem:[#allocation3 + $0x88] sm:$0xf]  ;;  %5360 = vmatmul.mubr.msk.f32.vlgmr.msra.gmra.mrb[4].mxu1 %vm1280_vm3, %v551_v56 }
 0x4af   :  { %5355 = vmatprep.subr.msk.mxu0 %vm309_vm1, %v1277_v21  ;;  %2288 = vmatprep.mubr.f32.mxu1 %v6632_v36  ;;  %v7653_v42 = vpop.permute.xlu1 %1572 }
 0x4b2   :  { %v1276_v20 = vld [vmem:[#allocation3 + $0x80] sm:$0xf] }
 0x4b3   :  { %5356 = vmatpush1.msk.msra.mxu0 %vm309_vm1, %v1276_v20  ;;  %v7655_v40 = vpop.permute.xlu1 %1574 }
 0x4b4   :  { %5357 = vmatmul.mubr.msk.f32.vlgmr.msra.gmra.mrb[4].mxu0 %vm1280_vm3, %v551_v56 }
 0x4b5   :  { %2217 = vmatprep.mubr.f32.mxu0 %v6632_v36 }
 0x4b7   :  { %v7657_v57 = vpop.permute.xlu1 %1499 }
 0x4bb   :  { %v7659_v58 = vpop.permute.xlu1 %1570 }
 0x4bf   :  { %v7661_v37 = vpop.permute.xlu1 %1643 }
 0x4c3   :  { %v7663_v55 = vpop.permute.xlu1 %1645 }
 0x4c7   :  { %v7665_v29 = vpop.permute.xlu1 %1716 }
 0x4cb   :  { %v7667_v10 = vpop.permute.xlu1 %1641 }
 0x4cf   :  { %v7669_v7 = vpop.permute.xlu1 %1712 }
 0x4d3   :  { %v7671_v9 = vpop.permute.xlu1 %1785 }
 0x4d7   :  { %v7675_v12 = vpop.permute.xlu1 %1787 }
 0x4db   :  { %v7679_v0 = vpop.permute.xlu1 %1856 }
 0x4df   :  { %v1784_v44 = vpop.permute.xlu1 %1783 }
 0x4e0   :  { %v7690_v48 = vsel %vm569_vm6, %v1784_v44, %v7671_v9 }
 0x4e3   :  { %v7673_v3 = vpop.xlane.xlu0 %2334  ;;  %v7692_v32 = vpop.permute.xlu1 %1927 }
 0x4e7   :  { %v7677_v27 = vpop.permute.xlu0 %1714  ;;  %v7700_v33 = vpop.permute.xlu1 %1998 }
 0x4e8   :  { %v7684_v62 = vsel %vm843_vm13, %v7669_v7, %v7677_v27 }
 0x4eb   :  { %v7686_v31 = vpop.permute.xlu0 %1858  ;;  %v1926_v13 = vpop.permute.xlu1 %1925 }
 0x4ec   :  { %v7706_v17 = vsel %vm798_vm10, %v1926_v13, %v7692_v32 }
 0x4ef   :  { %v1855_v28 = vpop.permute.xlu0 %1854  ;;  %v2070_v4 = vpop.permute.xlu1 %2069 }
 0x4f0   :  { %v7696_v38 = vsel %vm877_vm14, %v1855_v28, %v7679_v0 }
 0x4f3   :  { %v7698_v2 = vpop.permute.xlu0 %1929  ;;  %v7719_v6 = vpop.permute.xlu1 %2067 }
 0x4f4   :  { %v2074_v47 = vsel %vm645_vm12, %v7719_v6, %v2070_v4 }
 0x4f7   :  { %v7702_v39 = vpop.permute.xlu0 %2000  ;;  %v7723_v35 = vpop.permute.xlu1 %1497 }
 0x4fb   :  { %v1997_v63 = vpop.permute.xlu0 %1996  ;;  %v7725_v43 = vpop.permute.xlu1 %1639 }
 0x4fc   :  { %v7710_v14 = vsel %vm724_vm15, %v1997_v63, %v7700_v33 }
 0x4ff   :  { %v7721_v18 = vpop.permute.xlu0 %2071  ;;  %v7729_v61 = vpop.permute.xlu1 %1781 }
 0x503   :  { %v7727_v59 = vpop.permute.xlu0 %1568  ;;  %v7733_v51 = vpop.permute.xlu1 %1923 }
 0x507   :  { %v7731_v8 = vpop.permute.xlu0 %1710 }
 0x50b   :  { %v7735_v16 = vpop.permute.xlu0 %1852 }
 0x50f   :  { %v7737_v26 = vpop.permute.xlu0 %1994 }
 0x581   :  { %v1433_v34 = vpop.f32.mrb[4].mxu1 }
 0x582   :  { %v1440_v11 = vmax.f32 %v1433_v34, 0.0  ;;  %v1435_v15 = vpop.f32.mrb[5].mxu1 }
 0x583   :  { %v1441_v46 = vmax.f32 %v1435_v15, 0.0 }
 0x584   :  { %1456 = vrot.lane.b32.xlu1 %v1440_v11, %s6641_s3  ;;  %v2075_v11 = vsel %vm645_vm12, %v2070_v4, %v7721_v18  ;;  %v1931_v4 = vsel %vm798_vm10, %v7733_v51, %v1926_v13  ;;  %v1506_v13 = vsel %vm616_vm8, %v7657_v57, %v7649_v41  ;;  %v1720_v41 = vsel %vm843_vm13, %v7677_v27, %v7665_v29 }
 0x587   :  { %v1362_v52 = vpop.f32.mrb[4].mxu0 }
 0x588   :  { %v1438_v1 = vmax.f32 %v1362_v52, 0.0  ;;  %v1364_v54 = vpop.f32.mrb[5].mxu0  ;;  %v1578_v52 = vsel %vm690_vm11, %v7653_v42, %v7655_v40 }
 0x589   :  { %v1439_v60 = vmax.f32 %v1364_v54, 0.0  ;;  %v1860_v54 = vsel %vm877_vm14, %v7735_v16, %v1855_v28 }
 0x58a   :  { %1452 = vrot.lane.b32.xlu0 %v1438_v1, %s6641_s3  ;;  %v1718_v1 = vsel %vm843_vm13, %v7731_v8, %v7669_v7 }
 0x58b   :  { %1454 = vrot.lane.b32.xlu1 %v1439_v60, %s6641_s3  ;;  %v1789_v60 = vsel %vm569_vm6, %v7729_v61, %v1784_v44 }
 0x58e   :  { %1458 = vrot.lane.b32.xlu0 %v1441_v46, %s6641_s3  ;;  %v2002_v46 = vsel %vm724_vm15, %v7737_v26, %v1997_v63 }
 0x58f   :  { %2065 = vrot.lane.b32.xlu1 %v2052_v5, %s6644_s30 }
 0x5f6   :  { %v1457_v19 = vpop.permute.xlu1 %1456 }
 0x5fc   :  { %v1453_v30 = vpop.permute.xlu0 %1452 }
 0x5fd   :  { %1469 = vst.msk [vmem:[#allocation2] sm:$0xff] %vm1468_vm4, %v1453_v30  ;;  %v1455_v53 = vpop.permute.xlu1 %1454 }
 0x5fe   :  { %v7740_v25 = vsel %vm569_vm6, %v1453_v30, %v1455_v53  ;;  %v7743_v24 = vsel %vm569_vm6, %v1455_v53, %v1457_v19 }
 0x5ff   :  { %1470 = vst [vmem:[#allocation2 + $0x8] sm:$0xff] %v7740_v25  ;;  %1471 = vst [vmem:[#allocation2 + $0x10] sm:$0xff] %v7743_v24  ;;  %v7757_v20 = vmul.f32 %v2074_v47, %v7743_v24  ;;  %v7786_v30 = vmul.f32 %v1860_v54, %v7740_v25  ;;  %v7789_v7 = vmul.f32 %v1789_v60, %v7740_v25 }
 0x600   :  { %v1459_v56 = vpop.permute.xlu0 %1458  ;;  %v7793_v44 = vmul.f32 %v1931_v4, %v7740_v25  ;;  %v7796_v63 = vmul.f32 %v2002_v46, %v7740_v25  ;;  %v1515_v47 = vmul.f32 %v1506_v13, %v7743_v24  ;;  %v1941_v13 = vmul.f32 %v7706_v17, %v7743_v24 }
 0x601   :  { %v7753_v21 = vsel %vm569_vm6, %v1457_v19, %v1459_v56  ;;  %1473 = vst.msk [vmem:[#allocation2 + $0x20] sm:$0xff] %vm569_vm6, %v1459_v56  ;;  %v7783_v19 = vmul.f32 %v1718_v1, %v7740_v25  ;;  %v1649_v56 = vsel %vm769_vm9, %v7661_v37, %v7663_v55  ;;  %v6645_v17 = vmov 839922192  }
 0x602   :  { %1472 = vst [vmem:[#allocation2 + $0x18] sm:$0xff] %v7753_v21  ;;  %v1516_v34 = vmul.f32 %v1507_v45, %v7753_v21  ;;  %v7765_v15 = vmul.f32 %v2075_v11, %v7753_v21  ;;  %v1587_v5 = vmul.f32 %v1578_v52, %v7753_v21  ;;  %v1729_v11 = vmul.f32 %v1720_v41, %v7753_v21 }
 0x604   :  { %1529 = vrot.lane.b32.xlu0 %v1516_v34, %s6644_s30  ;;  %v1658_v34 = vmul.f32 %v1649_v56, %v7753_v21  ;;  %v2337_v56 = vmul.f32 0.001953125, %v7673_v3 }
 0x608   :  { %v1478_v28 = vld [vmem:[#allocation2 + $0x20] sm:$0xff]  ;;  %1600 = vrot.lane.b32.xlu0 %v1587_v5, %s6640_s7 }
 0x609   :  { %v1517_v53 = vmul.f32 %v7651_v49, %v1478_v28  ;;  %v1588_v45 = vmul.f32 %v7655_v40, %v1478_v28  ;;  %v1659_v49 = vmul.f32 %v7663_v55, %v1478_v28  ;;  %v1648_v40 = vsel %vm769_vm9, %v7667_v10, %v7661_v37 }
 0x60a   :  { %v1730_v52 = vmul.f32 %v7665_v29, %v1478_v28  ;;  %v1657_v1 = vmul.f32 %v1648_v40, %v7743_v24  ;;  %v1791_v55 = vsel %vm569_vm6, %v7671_v9, %v7675_v12  ;;  %v1801_v27 = vmul.f32 %v7675_v12, %v1478_v28 }
 0x60b   :  { %1531 = vrot.lane.b32.xlu1 %v1517_v53, %s6644_s30  ;;  %v1800_v54 = vmul.f32 %v1791_v55, %v7753_v21  ;;  %v1862_v37 = vsel %vm877_vm14, %v7679_v0, %v7686_v31  ;;  %v1872_v29 = vmul.f32 %v7686_v31, %v1478_v28  ;;  %v1943_v9 = vmul.f32 %v7698_v2, %v1478_v28  ;;  %v7865_v53 = vld [vmem:[#allocation2] sm:$0xff] }
 0x60c   :  { %1527 = vrot.lane.b32.xlu0 %v1515_v47, %s6644_s30  ;;  %v1871_v60 = vmul.f32 %v1862_v37, %v7753_v21  ;;  %v1799_v12 = vmul.f32 %v7690_v48, %v7743_v24  ;;  %v1933_v0 = vsel %vm798_vm10, %v7692_v32, %v7698_v2  ;;  %v2014_v31 = vmul.f32 %v7702_v39, %v1478_v28 }
 0x60d   :  { %v1942_v46 = vmul.f32 %v1933_v0, %v7753_v21  ;;  %v2004_v48 = vsel %vm724_vm15, %v7700_v33, %v7702_v39  ;;  %v2085_v5 = vmul.f32 %v7721_v18, %v1478_v28  ;;  %v1577_v32 = vsel %vm690_vm11, %v7659_v58, %v7653_v42 }
 0x60e   :  { %v2013_v4 = vmul.f32 %v2004_v48, %v7753_v21  ;;  %v1586_v2 = vmul.f32 %v1577_v32, %v7743_v24  ;;  %v1728_v33 = vmul.f32 %v7684_v62, %v7743_v24  ;;  %v1513_v39 = vmul.f32 %v7865_v53, %v7723_v35 }
 0x60f   :  { %1602 = vrot.lane.b32.xlu1 %v1588_v45, %s6640_s7  ;;  %v1870_v42 = vmul.f32 %v7696_v38, %v7743_v24  ;;  %v2340_v18 = vunpack.c.l.s4 %v6645_v17  ;;  %v1584_v21 = vmul.f32 %v7865_v53, %v7727_v59  ;;  %v2012_v62 = vmul.f32 %v7710_v14, %v7743_v24 }
 0x610   :  { %1671 = vrot.lane.b32.xlu0 %v1658_v34, %s6642_s27  ;;  %v1655_v47 = vmul.f32 %v7865_v53, %v7725_v43  ;;  %v1726_v45 = vmul.f32 %v7865_v53, %v7731_v8  ;;  %v1797_v24 = vmul.f32 %v7865_v53, %v7729_v61  ;;  %v6628_v34 = vld [vmem:[%s10594_s4] sm:$0xff]  ;;  %v1868_v3 = vmul.f32 %v7865_v53, %v7735_v16  ;;  %v6629_v61 = vld [vmem:[%s10594_s4 + $0x8] sm:$0xff] }
 0x611   :  { %v2341_v28 = vunpack.c.0.s8 %v2340_v18  ;;  %v1939_v41 = vmul.f32 %v7865_v53, %v7733_v51  ;;  %v1505_v51 = vsel %vm616_vm8, %v7723_v35, %v7657_v57  ;;  %v1647_v57 = vsel %vm769_vm9, %v7725_v43, %v7667_v10  ;;  %v2380_v10 = vld [vmem:[%s10603_s2] sm:$0xf] }
 0x612   :  { %v2010_v43 = vmul.f32 %v7865_v53, %v7737_v26  ;;  %v4989_v26 = vld [vmem:[%s10562_s22] sm:$0xff] }
 0x613   :  { %1673 = vrot.lane.b32.xlu1 %v1659_v49, %s6642_s27  ;;  %v7888_v38 = vsub.s32 %v2341_v28, %v7016_v50 }
 0x614   :  { %1742 = vrot.lane.b32.xlu0 %v1729_v11, %s6639_s9 }
 0x615   :  { %v2345_v14 = vrot.slane %v2337_v56, %v7888_v38 }
 0x617   :  { %1744 = vrot.lane.b32.xlu1 %v1730_v52, %s6639_s9  ;;  %v7901_v50 = vsub.f32 %v6628_v34, %v2345_v14  ;;  %v7914_v49 = vsub.f32 %v6629_v61, %v2345_v14 }
 0x618   :  { %1669 = vrot.lane.b32.xlu0 %v1657_v1, %s6642_s27 }
 0x619   :  { %v2349_v8 = vmul.f32 %v7901_v50, %v7901_v50  ;;  %v2350_v16 = vmul.f32 %v7914_v49, %v7914_v49 }
 0x61b   :  { %1815 = vrot.lane.b32.xlu1 %v1801_v27, %s6641_s3  ;;  %v2353_v11 = vcombine.high %v2349_v8, %v2349_v8  ;;  %v2357_v40 = vsel %vm309_vm1, %v2349_v8, 0.0  ;;  %v2354_v55 = vcombine.high %v2350_v16, %v2350_v16  ;;  %v2360_v27 = vsel %vm309_vm1, %v2350_v16, 0.0 }
 0x61c   :  { %1813 = vrot.lane.b32.xlu0 %v1800_v54, %s6641_s3  ;;  %v1576_v54 = vsel %vm690_vm11, %v7727_v59, %v7659_v58  ;;  %v2066_v58 = vpop.permute.xlu1 %2065 }
 0x61d   :  { %v2358_v52 = vsel %vm309_vm1, %v2353_v11, 0.0  ;;  %v2073_v59 = vsel %vm645_vm12, %v2066_v58, %v7719_v6 }
 0x61e   :  { %v2359_v1 = vadd.f32 %v2358_v52, %v2357_v40 }
 0x61f   :  { %1886 = vrot.lane.b32.xlu1 %v1872_v29, %s6636_s11  ;;  %v2362_v29 = vsel %vm309_vm1, %v2354_v55, 0.0 }
 0x620   :  { %1884 = vrot.lane.b32.xlu0 %v1871_v60, %s6636_s11  ;;  %v2361_v37 = vadd.f32 %v2360_v27, %v2359_v1  ;;  %v1656_v60 = vmul.f32 %v1647_v57, %v7740_v25 }
 0x622   :  { %v2363_v35 = vadd.f32 %v2362_v29, %v2361_v37 }
 0x623   :  { %1957 = vrot.lane.b32.xlu1 %v1943_v9, %s6638_s8  ;;  %v4990_v9 = vld [vmem:[%s10562_s22 + $0x8] sm:$0xff] }
 0x624   :  { %1811 = vrot.lane.b32.xlu0 %v1799_v12, %s6641_s3 }
 0x627   :  { %2028 = vrot.lane.b32.xlu1 %v2014_v31, %s6635_s28 }
 0x628   :  { %1955 = vrot.lane.b32.xlu0 %v1942_v46, %s6638_s8 }
 0x62b   :  { %2099 = vrot.lane.b32.xlu1 %v2085_v5, %s10601_s29 }
 0x62c   :  { %2026 = vrot.lane.b32.xlu0 %v2013_v4, %s6635_s28 }
 0x62f   :  { %1598 = vrot.lane.b32.xlu1 %v1586_v2, %s6640_s7 }
 0x630   :  { %1953 = vrot.lane.b32.xlu0 %v1941_v13, %s6638_s8 }
 0x633   :  { %1740 = vrot.lane.b32.xlu1 %v1728_v33, %s6639_s9 }
 0x634   :  { %1523 = vrot.lane.b32.xlu0 %v1513_v39, %s6644_s30 }
 0x637   :  { %1882 = vrot.lane.b32.xlu1 %v1870_v42, %s6636_s11 }
 0x638   :  { %1594 = vrot.lane.b32.xlu0 %v1584_v21, %s6640_s7 }
 0x63b   :  { %2024 = vrot.lane.b32.xlu1 %v2012_v62, %s6635_s28 }
 0x63c   :  { %1665 = vrot.lane.b32.xlu0 %v1655_v47, %s6642_s27 }
 0x640   :  { %1736 = vrot.lane.b32.xlu0 %v1726_v45, %s6639_s9 }
 0x644   :  { %1807 = vrot.lane.b32.xlu0 %v1797_v24, %s6641_s3 }
 0x648   :  { %1878 = vrot.lane.b32.xlu0 %v1868_v3, %s6636_s11 }
 0x64c   :  { %1949 = vrot.lane.b32.xlu0 %v1939_v41, %s6638_s8 }
 0x650   :  { %2097 = vrot.lane.b32.xlu0 %v7765_v15, %s10601_s29  ;;  %v1514_v15 = vmul.f32 %v1505_v51, %v7740_v25 }
 0x654   :  { %2095 = vrot.lane.b32.xlu0 %v7757_v20, %s10601_s29  ;;  %v1585_v20 = vmul.f32 %v1576_v54, %v7740_v25 }
 0x658   :  { %1525 = vrot.lane.b32.xlu0 %v1514_v15, %s6644_s30 }
 0x65c   :  { %1596 = vrot.lane.b32.xlu0 %v1585_v20, %s6640_s7 }
 0x65f   :  { %2364 = vadd.xlane.f32.xlu1 %v2363_v35 }
 0x660   :  { %1667 = vrot.lane.b32.xlu0 %v1656_v60, %s6642_s27 }
 0x664   :  { %1738 = vrot.lane.b32.xlu0 %v7783_v19, %s6639_s9  ;;  %v2395_v19 = vld [vmem:[%s10561_s12] sm:$0xf] }
 0x668   :  { %1809 = vrot.lane.b32.xlu0 %v7789_v7, %s6641_s3 }
 0x66c   :  { %1951 = vrot.lane.b32.xlu0 %v7793_v44, %s6638_s8  ;;  %v2081_v44 = vmul.f32 %v2066_v58, %v7865_v53 }
 0x670   :  { %1880 = vrot.lane.b32.xlu1 %v7786_v30, %s6636_s11  ;;  %2022 = vrot.lane.b32.xlu0 %v7796_v63, %s6635_s28  ;;  %v2082_v30 = vmul.f32 %v2073_v59, %v7740_v25  ;;  %v5182_v25 = vld [vmem:[%s10563_s24] sm:$0xff] }
 0x674   :  { %2020 = vrot.lane.b32.xlu1 %v2010_v43, %s6635_s28  ;;  %2383 = vperm.xlu0 %6598, %v2380_v10  }
 0x676   :  { %v1530_v7 = vpop.permute.xlu0 %1529 }
 0x678   :  { %2398 = vperm.xlu1 %6601, %v2395_v19   ;;  %2093 = vrot.lane.b32.xlu0 %v2082_v30, %s10601_s29 }
 0x67a   :  { %v1601_v6 = vpop.permute.xlu0 %1600 }
 0x67c   :  { %2091 = vrot.lane.b32.xlu1 %v2081_v44, %s10601_s29  ;;  %4993 = vperm.xlu0 %6598, %v4989_v26  }
 0x67d   :  { %v1532_v63 = vpop.permute.xlu1 %1531 }
 0x67e   :  { %v1536_v12 = vsel %vm645_vm12, %v1530_v7, %v1532_v63  ;;  %v7976_v0 = vpop.permute.xlu0 %1527  ;;  %v2463_v63 = vld [vmem:[%s10564_s13 + $0x1a8] sm:$0xff] }
 0x67f   :  { %1544 = vst [vmem:[#allocation3 + $0x18] sm:$0xff] %v1536_v12  ;;  %v1535_v31 = vsel %vm645_vm12, %v7976_v0, %v1530_v7 }
 0x680   :  { %4998 = vperm.xlu1 %6601, %v4990_v9   ;;  %1543 = vst [vmem:[#allocation3 + $0x10] sm:$0xff] %v1535_v31  ;;  %5185 = vperm.xlu0 %6598, %v5182_v25   ;;  %v2412_v25 = vld [vmem:[%s10564_s13 + $0x10] sm:$0xff] }
 0x681   :  { %v1603_v46 = vpop.permute.xlu1 %1602 }
 0x682   :  { %v1607_v48 = vsel %vm724_vm15, %v1601_v6, %v1603_v46  ;;  %v1672_v5 = vpop.permute.xlu0 %1671  ;;  %v2469_v46 = vld [vmem:[%s10564_s13 + $0x1d8] sm:$0xff] }
 0x683   :  { %1615 = vst [vmem:[#allocation3 + $0x38] sm:$0xff] %v1607_v48  ;;  %v5755_v4 = vpack.c.bf16 %v1607_v48, %v1536_v12  ;;  %v2415_v12 = vld [vmem:[%s10564_s13 + $0x28] sm:$0xff] }
 0x685   :  { %v1674_v32 = vpop.permute.xlu1 %1673  ;;  %5756 = vmatprep.subr.bf16.mxu1 %v5755_v4  ;;  %v8049_v4 = vld [vmem:[%s10565_s10] sm:$0xf] }
 0x686   :  { %v1678_v2 = vsel %vm798_vm10, %v1672_v5, %v1674_v32  ;;  %v1743_v13 = vpop.permute.xlu0 %1742  ;;  %v5901_v32 = vpack.c.bf16 %v2415_v12, %v2412_v25  ;;  %v2445_v25 = vld [vmem:[%s10564_s13 + $0x118] sm:$0xff] }
 0x687   :  { %1686 = vst [vmem:[#allocation3 + $0x58] sm:$0xff] %v1678_v2 }
 0x689   :  { %v1745_v53 = vpop.permute.xlu1 %1744 }
 0x68a   :  { %v1749_v33 = vsel %vm877_vm14, %v1743_v13, %v1745_v53  ;;  %v7983_v39 = vpop.permute.xlu0 %1669  ;;  %v2418_v53 = vld [vmem:[%s10564_s13 + $0x40] sm:$0xff] }
 0x68b   :  { %1757 = vst [vmem:[#allocation3 + $0x78] sm:$0xff] %v1749_v33  ;;  %v1677_v42 = vsel %vm798_vm10, %v7983_v39, %v1672_v5  ;;  %v5759_v1 = vpack.c.bf16 %v1749_v33, %v1678_v2  ;;  %v2421_v33 = vld [vmem:[%s10564_s13 + $0x58] sm:$0xff] }
 0x68c   :  { %1685 = vst [vmem:[#allocation3 + $0x50] sm:$0xff] %v1677_v42 }
 0x68d   :  { %v1816_v17 = vpop.permute.xlu1 %1815 }
 0x68e   :  { %v1814_v18 = vpop.permute.xlu0 %1813 }
 0x68f   :  { %v1820_v21 = vsel %vm569_vm6, %v1814_v18, %v1816_v17  ;;  %v2475_v17 = vld [vmem:[%s10564_s13 + $0x208] sm:$0xff] }
 0x690   :  { %1828 = vst [vmem:[#allocation3 + $0x98] sm:$0xff] %v1820_v21 }
 0x691   :  { %v1887_v62 = vpop.permute.xlu1 %1886 }
 0x692   :  { %v1885_v28 = vpop.permute.xlu0 %1884 }
 0x693   :  { %v1891_v47 = vsel %vm843_vm13, %v1885_v28, %v1887_v62 }
 0x694   :  { %v5763_v37 = vpack.c.bf16 %v1891_v47, %v1820_v21  ;;  %v5905_v21 = vpack.c.bf16 %v2421_v33, %v2418_v53  ;;  %v2448_v53 = vld [vmem:[%s10564_s13 + $0x130] sm:$0xff]  ;;  %v2451_v33 = vld [vmem:[%s10564_s13 + $0x148] sm:$0xff] }
 0x695   :  { %v1958_v56 = vpop.permute.xlu1 %1957 }
 0x696   :  { %v7989_v45 = vpop.permute.xlu0 %1811 }
 0x697   :  { %v1819_v14 = vsel %vm569_vm6, %v7989_v45, %v1814_v18 }
 0x698   :  { %1827 = vst [vmem:[#allocation3 + $0x90] sm:$0xff] %v1819_v14 }
 0x699   :  { %v2029_v24 = vpop.permute.xlu1 %2028 }
 0x69a   :  { %v1956_v34 = vpop.permute.xlu0 %1955 }
 0x69b   :  { %v1962_v3 = vsel %vm769_vm9, %v1956_v34, %v1958_v56  ;;  %v2424_v56 = vld [vmem:[%s10564_s13 + $0x70] sm:$0xff] }
 0x69d   :  { %v2100_v8 = vpop.permute.xlu1 %2099 }
 0x69e   :  { %v2027_v41 = vpop.permute.xlu0 %2026 }
 0x69f   :  { %v2033_v61 = vsel %vm690_vm11, %v2027_v41, %v2029_v24  ;;  %v2478_v24 = vld [vmem:[%s10564_s13 + $0x220] sm:$0xff] }
 0x6a0   :  { %v5767_v60 = vpack.c.bf16 %v2033_v61, %v1962_v3 }
 0x6a1   :  { %v7995_v11 = vpop.permute.xlu1 %1598 }
 0x6a2   :  { %v1606_v16 = vsel %vm724_vm15, %v7995_v11, %v1601_v6  ;;  %v7999_v40 = vpop.permute.xlu0 %1953  ;;  %v2460_v6 = vld [vmem:[%s10564_s13 + $0x190] sm:$0xff] }
 0x6a3   :  { %1614 = vst [vmem:[#allocation3 + $0x30] sm:$0xff] %v1606_v16  ;;  %v1961_v52 = vsel %vm769_vm9, %v7999_v40, %v1956_v34  ;;  %v5757_v51 = vpack.c.bf16 %v1606_v16, %v1535_v31  ;;  %v2466_v31 = vld [vmem:[%s10564_s13 + $0x1c0] sm:$0xff]  ;;  %v5899_v48 = vpack.c.bf16 %v2463_v63, %v2460_v6 }
 0x6a4   :  { %v2430_v16 = vld [vmem:[%s10564_s13 + $0xa0] sm:$0xff] }
 0x6a5   :  { %v8003_v55 = vpop.permute.xlu1 %1740  ;;  %5758 = vmatpush1.bf16.msra.mxu1 %v5757_v51 }
 0x6a6   :  { %v1748_v27 = vsel %vm877_vm14, %v8003_v55, %v1743_v13  ;;  %v1524_v15 = vpop.permute.xlu0 %1523  ;;  %5760 = vmatprep.subr.bf16.mxu1 %v5759_v1  ;;  %v5903_v13 = vpack.c.bf16 %v2469_v46, %v2466_v31 }
 0x6a7   :  { %1756 = vst [vmem:[#allocation3 + $0x70] sm:$0xff] %v1748_v27  ;;  %v5761_v54 = vpack.c.bf16 %v1748_v27, %v1677_v42  ;;  %v2472_v42 = vld [vmem:[%s10564_s13 + $0x1f0] sm:$0xff] }
 0x6a8   :  { %v5907_v47 = vpack.c.bf16 %v2475_v17, %v2472_v42  ;;  %v2484_v27 = vld [vmem:[%s10564_s13 + $0x250] sm:$0xff]  ;;  %v5925_v17 = vpack.c.bf16 %v2451_v33, %v2448_v53 }
 0x6a9   :  { %v8007_v29 = vpop.permute.xlu1 %1882  ;;  %5762 = vmatpush1.bf16.msra.mxu1 %v5761_v54 }
 0x6aa   :  { %v1890_v20 = vsel %vm843_vm13, %v8007_v29, %v1885_v28  ;;  %v1595_v57 = vpop.permute.xlu0 %1594  ;;  %5764 = vmatprep.subr.bf16.mxu1 %v5763_v37 }
 0x6ab   :  { %v5765_v35 = vpack.c.bf16 %v1890_v20, %v1819_v14  ;;  %v2427_v14 = vld [vmem:[%s10564_s13 + $0x88] sm:$0xff] }
 0x6ac   :  { %v5909_v3 = vpack.c.bf16 %v2427_v14, %v2424_v56  ;;  %v2556_v56 = vld [vmem:[%s10564_s13 + $0x490] sm:$0xff] }
 0x6ad   :  { %v8011_v58 = vpop.permute.xlu1 %2024  ;;  %5766 = vmatpush1.bf16.msra.mxu1 %v5765_v35  ;;  %v2436_v35 = vld [vmem:[%s10564_s13 + $0xd0] sm:$0xff] }
 0x6ae   :  { %v2032_v10 = vsel %vm690_vm11, %v8011_v58, %v2027_v41  ;;  %v8015_v43 = vpop.permute.xlu0 %1665  ;;  %5768 = vmatprep.subr.bf16.mxu1 %v5767_v60  ;;  %v2439_v60 = vld [vmem:[%s10564_s13 + $0xe8] sm:$0xff] }
 0x6af   :  { %v5769_v59 = vpack.c.bf16 %v2032_v10, %v1961_v52  ;;  %v2433_v52 = vld [vmem:[%s10564_s13 + $0xb8] sm:$0xff]  ;;  %v2490_v10 = vld [vmem:[%s10564_s13 + $0x280] sm:$0xff] }
 0x6b0   :  { %v5913_v54 = vpack.c.bf16 %v2433_v52, %v2430_v16 }
 0x6b1   :  { %5770 = vmatpush1.bf16.msra.mxu1 %v5769_v59  ;;  %v5917_v59 = vpack.c.bf16 %v2439_v60, %v2436_v35  ;;  %v2413_v35 = vld [vmem:[%s10564_s13 + $0x18] sm:$0xff]  ;;  %v2420_v60 = vld [vmem:[%s10564_s13 + $0x50] sm:$0xff] }
 0x6b2   :  { %v8017_v19 = vpop.permute.xlu0 %1736 }
 0x6b6   :  { %v8019_v30 = vpop.permute.xlu0 %1807 }
 0x6ba   :  { %v8021_v7 = vpop.permute.xlu0 %1878 }
 0x6be   :  { %v8023_v26 = vpop.permute.xlu0 %1949 }
 0x6c2   :  { %v2098_v44 = vpop.permute.xlu0 %2097 }
 0x6c3   :  { %v2104_v9 = vsel %vm616_vm8, %v2098_v44, %v2100_v8 }
 0x6c4   :  { %2240 = vmatprep.subr.mxu1 %v2104_v9  ;;  %v2442_v9 = vld [vmem:[%s10564_s13 + $0x100] sm:$0xff] }
 0x6c6   :  { %v8044_v5 = vpop.permute.xlu0 %2095 }
 0x6c7   :  { %v2103_v2 = vsel %vm616_vm8, %v8044_v5, %v2098_v44 }
 0x6c8   :  { %2241 = vmatpush1.msra.mxu1 %v2103_v2 }
 0x6c9   :  { %5370 = vmatmul.mubr.msk.f32.vlgmr.msra.gmra.mrb[6].mxu1 %vm2149_vm5, %v8049_v4  ;;  %5900 = vmatprep.subr.bf16.mxu1 %v5899_v48  ;;  %v5921_v48 = vpack.c.bf16 %v2445_v25, %v2442_v9  ;;  %v2416_v9 = vld [vmem:[%s10564_s13 + $0x30] sm:$0xff]  ;;  %v2419_v25 = vld [vmem:[%s10564_s13 + $0x48] sm:$0xff] }
 0x6ca   :  { %v1526_v18 = vpop.permute.xlu0 %1525  ;;  %5902 = vmatpush3.bf16.msra.mxu1 %v5901_v32 }
 0x6cb   :  { %v1533_v62 = vsel %vm645_vm12, %v1524_v15, %v1526_v18  ;;  %v1534_v28 = vsel %vm645_vm12, %v1526_v18, %v7976_v0  ;;  %5904 = vmatprep.subr.bf16.mxu1 %v5903_v13  ;;  %v2481_v0 = vld [vmem:[%s10564_s13 + $0x238] sm:$0xff] }
 0x6cc   :  { %1541 = vst [vmem:[#allocation3] sm:$0xff] %v1533_v62  ;;  %1542 = vst [vmem:[#allocation3 + $0x8] sm:$0xff] %v1534_v28  ;;  %v5911_v61 = vpack.c.bf16 %v2481_v0, %v2478_v24 }
 0x6ce   :  { %v1597_v34 = vpop.permute.xlu0 %1596  ;;  %5906 = vmatpush3.bf16.msra.mxu1 %v5905_v21 }
 0x6cf   :  { %v1604_v8 = vsel %vm724_vm15, %v1595_v57, %v1597_v34  ;;  %v1605_v41 = vsel %vm724_vm15, %v1597_v34, %v7995_v11  ;;  %5908 = vmatprep.subr.bf16.mxu1 %v5907_v47  ;;  %v2487_v11 = vld [vmem:[%s10564_s13 + $0x268] sm:$0xff]  ;;  %v2457_v47 = vld [vmem:[%s10564_s13 + $0x178] sm:$0xff] }
 0x6d0   :  { %1612 = vst [vmem:[#allocation3 + $0x20] sm:$0xff] %v1604_v8  ;;  %1613 = vst [vmem:[#allocation3 + $0x28] sm:$0xff] %v1605_v41  ;;  %v5739_v51 = vpack.c.bf16 %v1605_v41, %v1534_v28  ;;  %v5741_v1 = vpack.c.bf16 %v1604_v8, %v1533_v62  ;;  %v5915_v57 = vpack.c.bf16 %v2487_v11, %v2484_v27  ;;  %v2454_v28 = vld [vmem:[%s10564_s13 + $0x160] sm:$0xff] }
 0x6d2   :  { %v1668_v15 = vpop.permute.xlu0 %1667  ;;  %5740 = vmatprep.subr.bf16.mxu0 %v5739_v51  ;;  %5910 = vmatpush3.bf16.msra.mxu1 %v5909_v3 }
 0x6d3   :  { %v1675_v37 = vsel %vm798_vm10, %v8015_v43, %v1668_v15  ;;  %v1676_v20 = vsel %vm798_vm10, %v1668_v15, %v7983_v39  ;;  %5742 = vmatpush1.bf16.msra.mxu0 %v5741_v1  ;;  %5912 = vmatprep.subr.bf16.mxu1 %v5911_v61  ;;  %v2493_v39 = vld [vmem:[%s10564_s13 + $0x298] sm:$0xff] }
 0x6d4   :  { %1683 = vst [vmem:[#allocation3 + $0x40] sm:$0xff] %v1675_v37  ;;  %1684 = vst [vmem:[#allocation3 + $0x48] sm:$0xff] %v1676_v20  ;;  %v5919_v63 = vpack.c.bf16 %v2493_v39, %v2490_v10 }
 0x6d6   :  { %v1739_v43 = vpop.permute.xlu0 %1738  ;;  %5914 = vmatpush3.bf16.msra.mxu1 %v5913_v54 }
 0x6d7   :  { %v1746_v44 = vsel %vm877_vm14, %v8017_v19, %v1739_v43  ;;  %v1747_v6 = vsel %vm877_vm14, %v1739_v43, %v8003_v55  ;;  %5916 = vmatprep.subr.bf16.mxu1 %v5915_v57  ;;  %v2496_v19 = vld [vmem:[%s10564_s13 + $0x2b0] sm:$0xff]  ;;  %v2499_v55 = vld [vmem:[%s10564_s13 + $0x2c8] sm:$0xff]  ;;  %v2410_v57 = vld [vmem:[%s10564_s13] sm:$0xff] }
 0x6d8   :  { %1754 = vst [vmem:[#allocation3 + $0x60] sm:$0xff] %v1746_v44  ;;  %1755 = vst [vmem:[#allocation3 + $0x68] sm:$0xff] %v1747_v6  ;;  %v5743_v12 = vpack.c.bf16 %v1747_v6, %v1676_v20  ;;  %v5745_v31 = vpack.c.bf16 %v1746_v44, %v1675_v37  ;;  %v5923_v13 = vpack.c.bf16 %v2499_v55, %v2496_v19 }
 0x6d9   :  { %v5773_v44 = vpack.c.bf16 %v2413_v35, %v2410_v57  ;;  %v2526_v57 = vld [vmem:[%s10564_s13 + $0x3a0] sm:$0xff]  ;;  %v2529_v35 = vld [vmem:[%s10564_s13 + $0x3b8] sm:$0xff] }
 0x6da   :  { %v1810_v46 = vpop.permute.xlu0 %1809  ;;  %5744 = vmatprep.subr.bf16.mxu0 %v5743_v12  ;;  %5918 = vmatpush3.bf16.msra.mxu1 %v5917_v59 }
 0x6db   :  { %v1817_v32 = vsel %vm569_vm6, %v8019_v30, %v1810_v46  ;;  %v1818_v2 = vsel %vm569_vm6, %v1810_v46, %v7989_v45  ;;  %5746 = vmatpush1.bf16.msra.mxu0 %v5745_v31  ;;  %5920 = vmatprep.subr.bf16.mxu1 %v5919_v63  ;;  %v2502_v30 = vld [vmem:[%s10564_s13 + $0x2e0] sm:$0xff]  ;;  %v2505_v45 = vld [vmem:[%s10564_s13 + $0x2f8] sm:$0xff]  ;;  %v2423_v46 = vld [vmem:[%s10564_s13 + $0x68] sm:$0xff]  ;;  %vm3709_vm6 = vcmask 130048  }
 0x6dc   :  { %1825 = vst [vmem:[#allocation3 + $0x80] sm:$0xff] %v1817_v32  ;;  %1826 = vst [vmem:[#allocation3 + $0x88] sm:$0xff] %v1818_v2  ;;  %v5927_v62 = vpack.c.bf16 %v2505_v45, %v2502_v30  ;;  %v2565_v30 = vld [vmem:[%s10564_s13 + $0x4d8] sm:$0xff]  ;;  %v2422_v45 = vld [vmem:[%s10564_s13 + $0x60] sm:$0xff] }
 0x6de   :  { %v1952_v42 = vpop.permute.xlu0 %1951  ;;  %5922 = vmatpush3.bf16.msra.mxu1 %v5921_v48  ;;  %v2426_v48 = vld [vmem:[%s10564_s13 + $0x80] sm:$0xff] }
 0x6df   :  { %v1959_v18 = vsel %vm769_vm9, %v8023_v26, %v1952_v42  ;;  %v1960_v21 = vsel %vm769_vm9, %v1952_v42, %v7999_v40  ;;  %5924 = vmatprep.subr.bf16.mxu1 %v5923_v13  ;;  %v2559_v26 = vld [vmem:[%s10564_s13 + $0x4a8] sm:$0xff]  ;;  %v5929_v40 = vpack.c.bf16 %v2457_v47, %v2454_v28  ;;  %v2562_v13 = vld [vmem:[%s10564_s13 + $0x4c0] sm:$0xff]  ;;  %v5779_v53 = vpack.c.bf16 %v2426_v48, %v2423_v46  ;;  %v2425_v42 = vld [vmem:[%s10564_s13 + $0x78] sm:$0xff] }
 0x6e0   :  { %v5931_v0 = vpack.c.bf16 %v2559_v26, %v2556_v56  ;;  %v5935_v28 = vpack.c.bf16 %v2565_v30, %v2562_v13  ;;  %v2514_v47 = vld [vmem:[%s10564_s13 + $0x340] sm:$0xff]  ;;  %v2517_v56 = vld [vmem:[%s10564_s13 + $0x358] sm:$0xff]  ;;  %v2568_v26 = vld [vmem:[%s10564_s13 + $0x4f0] sm:$0xff] }
 0x6e1   :  { %v2446_v48 = vld [vmem:[%s10564_s13 + $0x120] sm:$0xff]  ;;  %v2592_v30 = vld [vmem:[%s10564_s13 + $0x5b0] sm:$0xff] }
 0x6e2   :  { %v2023_v14 = vpop.permute.xlu0 %2022  ;;  %5926 = vmatpush3.bf16.msra.mxu1 %v5925_v17  ;;  %v2429_v17 = vld [vmem:[%s10564_s13 + $0x98] sm:$0xff]  ;;  %v2538_v13 = vld [vmem:[%s10564_s13 + $0x400] sm:$0xff] }
 0x6e3   :  { %v2031_v24 = vsel %vm690_vm11, %v2023_v14, %v8011_v58  ;;  %5928 = vmatprep.subr.bf16.mxu1 %v5927_v62 }
 0x6e4   :  { %v5751_v58 = vpack.c.bf16 %v2031_v24, %v1960_v21  ;;  %v2571_v24 = vld [vmem:[%s10564_s13 + $0x508] sm:$0xff] }
 0x6e6   :  { %5930 = vmatpush3.bf16.msra.mxu1 %v5929_v40 }
 0x6e7   :  { %5932 = vmatprep.subr.bf16.mxu1 %v5931_v0 }
 0x6ec   :  { %v2365_v34 = vpop.xlane.xlu1 %2364 }
 0x6ed   :  { %v2366_v3 = vmul.f32 0.001953125, %v2365_v34  ;;  %v2428_v34 = vld [vmem:[%s10564_s13 + $0x90] sm:$0xff] }
 0x6ef   :  { %v2367_v8 = vadd.f32 1e-05, %v2366_v3  ;;  %v2431_v3 = vld [vmem:[%s10564_s13 + $0xa8] sm:$0xff] }
 0x6f0   :  { %v1881_v41 = vpop.permute.xlu1 %1880 }
 0x6f1   :  { %6610 = vrsqrt.f32 %v2367_v8  ;;  %v1888_v61 = vsel %vm843_vm13, %v8021_v7, %v1881_v41  ;;  %v1889_v16 = vsel %vm843_vm13, %v1881_v41, %v8007_v29  ;;  %v2411_v29 = vld [vmem:[%s10564_s13 + $0x8] sm:$0xff]  ;;  %v2414_v7 = vld [vmem:[%s10564_s13 + $0x20] sm:$0xff] }
 0x6f2   :  { %v5747_v52 = vpack.c.bf16 %v1889_v16, %v1818_v2  ;;  %v5749_v51 = vpack.c.bf16 %v1888_v61, %v1817_v32  ;;  %v5771_v39 = vpack.c.bf16 %v2414_v7, %v2411_v29  ;;  %v2435_v8 = vld [vmem:[%s10564_s13 + $0xc8] sm:$0xff]  ;;  %v2438_v41 = vld [vmem:[%s10564_s13 + $0xe0] sm:$0xff]  ;;  %v5937_v61 = vpack.c.bf16 %v2517_v56, %v2514_v47 }
 0x6f3   :  { %v2384_v1 = vpop.permute.xlu0 %2383  ;;  %v5939_v16 = vpack.c.bf16 %v2571_v24, %v2568_v26  ;;  %v2462_v47 = vld [vmem:[%s10564_s13 + $0x1a0] sm:$0xff]  ;;  %v2547_v24 = vld [vmem:[%s10564_s13 + $0x448] sm:$0xff] }
 0x6f4   :  { %v2021_v27 = vpop.permute.xlu1 %2020  ;;  %5748 = vmatprep.subr.bf16.mxu0 %v5747_v52  ;;  %v2391_v55 = vrot.slane %v2384_v1, %v7888_v38  ;;  %v2520_v52 = vld [vmem:[%s10564_s13 + $0x370] sm:$0xff]  ;;  %v2574_v1 = vld [vmem:[%s10564_s13 + $0x520] sm:$0xff] }
 0x6f5   :  { %v2030_v11 = vsel %vm690_vm11, %v2021_v27, %v2023_v14  ;;  %5750 = vmatpush1.bf16.msra.mxu0 %v5749_v51  ;;  %v5781_v14 = vpack.c.bf16 %v2425_v42, %v2422_v45  ;;  %v2523_v51 = vld [vmem:[%s10564_s13 + $0x388] sm:$0xff]  ;;  %v5785_v27 = vpack.c.bf16 %v2431_v3, %v2428_v34  ;;  %v2601_v3 = vld [vmem:[%s10564_s13 + $0x5f8] sm:$0xff] }
 0x6f6   :  { %5752 = vmatprep.subr.bf16.mxu0 %v5751_v58  ;;  %v5753_v15 = vpack.c.bf16 %v2030_v11, %v1959_v18  ;;  %v2432_v18 = vld [vmem:[%s10564_s13 + $0xb0] sm:$0xff]  ;;  %v2577_v58 = vld [vmem:[%s10564_s13 + $0x538] sm:$0xff]  ;;  %v5787_v11 = vpack.c.bf16 %v2438_v41, %v2435_v8  ;;  %v5941_v29 = vpack.c.bf16 %v2523_v51, %v2520_v52  ;;  %v2595_v42 = vld [vmem:[%s10564_s13 + $0x5c8] sm:$0xff] }
 0x6f7   :  { %v2094_v54 = vpop.permute.xlu0 %2093  ;;  %v5783_v0 = vpack.c.bf16 %v2432_v18, %v2429_v17  ;;  %v5943_v7 = vpack.c.bf16 %v2577_v58, %v2574_v1  ;;  %v2452_v18 = vld [vmem:[%s10564_s13 + $0x150] sm:$0xff]  ;;  %v5955_v26 = vpack.c.bf16 %v2595_v42, %v2592_v30  ;;  %v2458_v41 = vld [vmem:[%s10564_s13 + $0x180] sm:$0xff]  ;;  %v2553_v58 = vld [vmem:[%s10564_s13 + $0x478] sm:$0xff] }
 0x6f8   :  { %v2399_v37 = vpop.permute.xlu1 %2398  ;;  %v2102_v20 = vsel %vm616_vm8, %v2094_v54, %v8044_v5  ;;  %v2417_v5 = vld [vmem:[%s10564_s13 + $0x38] sm:$0xff]  ;;  %v2468_v52 = vld [vmem:[%s10564_s13 + $0x1d0] sm:$0xff] }
 0x6f9   :  { %5754 = vmatpush1.bf16.msra.mxu0 %v5753_v15  ;;  %v5775_v63 = vpack.c.bf16 %v2420_v60, %v2417_v5  ;;  %v2406_v12 = vrot.slane %v2399_v37, %v7888_v38  ;;  %v2434_v15 = vld [vmem:[%s10564_s13 + $0xc0] sm:$0xff]  ;;  %v2441_v37 = vld [vmem:[%s10564_s13 + $0xf8] sm:$0xff]  ;;  %v2580_v5 = vld [vmem:[%s10564_s13 + $0x550] sm:$0xff] }
 0x6fa   :  { %2169 = vmatprep.subr.mxu0 %v2102_v20  ;;  %v2444_v20 = vld [vmem:[%s10564_s13 + $0x110] sm:$0xff]  ;;  %v2905_v42 = vld [vmem:[%s10566_s14 + $0x78] sm:$0xff] }
 0x6fb   :  { %v6611_v10 = vpop.eup %6610 }
 0x6fc   :  { %v2376_v43 = vrot.slane %v6611_v10, %v7888_v38  ;;  %v2092_v59 = vpop.permute.xlu1 %2091  ;;  %v2508_v38 = vld [vmem:[%s10564_s13 + $0x310] sm:$0xff]  ;;  %v2583_v10 = vld [vmem:[%s10564_s13 + $0x568] sm:$0xff] }
 0x6fd   :  { %v2101_v6 = vsel %vm616_vm8, %v2092_v59, %v2094_v54  ;;  %v2437_v54 = vld [vmem:[%s10564_s13 + $0xd8] sm:$0xff]  ;;  %v2443_v59 = vld [vmem:[%s10564_s13 + $0x108] sm:$0xff] }
 0x6fe   :  { %v2378_v31 = vmul.f32 %v2376_v43, %v7901_v50  ;;  %v2379_v19 = vmul.f32 %v2376_v43, %v7914_v49  ;;  %2170 = vmatpush1.msra.mxu0 %v2101_v6  ;;  %v5777_v50 = vpack.c.bf16 %v2419_v25, %v2416_v9  ;;  %v2511_v49 = vld [vmem:[%s10564_s13 + $0x328] sm:$0xff]  ;;  %v5789_v60 = vpack.c.bf16 %v2437_v54, %v2434_v15  ;;  %v2440_v43 = vld [vmem:[%s10564_s13 + $0xf0] sm:$0xff]  ;;  %v2450_v6 = vld [vmem:[%s10564_s13 + $0x140] sm:$0xff] }
 0x6ff   :  { %5369 = vmatmul.mubr.msk.f32.vlgmr.msra.gmra.mrb[6].mxu0 %vm2149_vm5, %v8049_v4  ;;  %5772 = vmatprep.subr.bf16.mxu0 %v5771_v39  ;;  %v5933_v62 = vpack.c.bf16 %v2511_v49, %v2508_v38  ;;  %v5791_v39 = vpack.c.bf16 %v2444_v20, %v2441_v37  ;;  %v5947_v9 = vpack.c.bf16 %v2583_v10, %v2580_v5  ;;  %v2532_v25 = vld [vmem:[%s10564_s13 + $0x3d0] sm:$0xff]  ;;  %v2894_v54 = vld [vmem:[%s10566_s14 + $0x20] sm:$0xff]  ;;  %v2893_v10 = vld [vmem:[%s10566_s14 + $0x18] sm:$0xff] }
 0x700   :  { %v2393_v32 = vmul.f32 %v2391_v55, %v2378_v31  ;;  %v2394_v2 = vmul.f32 %v2391_v55, %v2379_v19  ;;  %5774 = vmatpush1.bf16.msra.mxu0 %v5773_v44  ;;  %v2447_v44 = vld [vmem:[%s10564_s13 + $0x128] sm:$0xff]  ;;  %v2586_v31 = vld [vmem:[%s10564_s13 + $0x580] sm:$0xff]  ;;  %v5793_v19 = vpack.c.bf16 %v2443_v59, %v2440_v43  ;;  %v2589_v55 = vld [vmem:[%s10564_s13 + $0x598] sm:$0xff] }
 0x701   :  { %5776 = vmatprep.subr.bf16.mxu0 %v5775_v63  ;;  %v5945_v63 = vpack.c.bf16 %v2529_v35, %v2526_v57  ;;  %v5795_v46 = vpack.c.bf16 %v2450_v6, %v2447_v44  ;;  %v5951_v49 = vpack.c.bf16 %v2589_v55, %v2586_v31  ;;  %v2464_v20 = vld [vmem:[%s10564_s13 + $0x1b0] sm:$0xff]  ;;  %v2474_v57 = vld [vmem:[%s10564_s13 + $0x200] sm:$0xff]  ;;  %v2899_v55 = vld [vmem:[%s10566_s14 + $0x48] sm:$0xff] }
 0x702   :  { %v8217_v4 = vadd.f32 %v2406_v12, %v2393_v32  ;;  %v8219_v33 = vadd.f32 %v2406_v12, %v2394_v2  ;;  %v2535_v12 = vld [vmem:[%s10564_s13 + $0x3e8] sm:$0xff]  ;;  %v2449_v32 = vld [vmem:[%s10564_s13 + $0x138] sm:$0xff]  ;;  %v2900_v59 = vld [vmem:[%s10566_s14 + $0x50] sm:$0xff] }
 0x703   :  { %v2453_v2 = vld [vmem:[%s10564_s13 + $0x158] sm:$0xff]  ;;  %v5949_v38 = vpack.c.bf16 %v2535_v12, %v2532_v25  ;;  %v5797_v45 = vpack.c.bf16 %v2449_v32, %v2446_v48  ;;  %v2470_v6 = vld [vmem:[%s10564_s13 + $0x1e0] sm:$0xff]  ;;  %v2480_v25 = vld [vmem:[%s10564_s13 + $0x230] sm:$0xff] }
 0x704   :  { %v8238_v21 = vcombine.high %v8217_v4, %v8217_v4  ;;  %5778 = vmatpush1.bf16.msra.mxu0 %v5777_v50  ;;  %v8252_v40 = vcombine.high %v8219_v33, %v8219_v33  ;;  %v2456_v50 = vld [vmem:[%s10564_s13 + $0x170] sm:$0xff]  ;;  %v2906_v32 = vld [vmem:[%s10566_s14 + $0x80] sm:$0xff] }
 0x705   :  { %5780 = vmatprep.subr.bf16.mxu0 %v5779_v53  ;;  %v2541_v53 = vld [vmem:[%s10564_s13 + $0x418] sm:$0xff]  ;;  %v5799_v17 = vpack.c.bf16 %v2456_v50, %v2453_v2  ;;  %v2476_v50 = vld [vmem:[%s10564_s13 + $0x210] sm:$0xff] }
 0x706   :  { %2814 = vmatprep.mubr.f32.mxu1 %v8238_v21  ;;  %2672 = vmatprep.mubr.f32.mxu0 %v8238_v21  ;;  %v5953_v56 = vpack.c.bf16 %v2541_v53, %v2538_v13  ;;  %v2486_v13 = vld [vmem:[%s10564_s13 + $0x260] sm:$0xff] }
 0x707   :  { %2815 = vmatmul.mubr.f32.vlgmr.msra.gmra.mrb[8].mxu1 %v8217_v4 }
 0x708   :  { %5934 = vmatpush3.bf16.msra.mxu1 %v5933_v62  ;;  %2884 = vmatprep.mubr.f32.mxu1 %v8252_v40  ;;  %v2455_v62 = vld [vmem:[%s10564_s13 + $0x168] sm:$0xff] }
 0x709   :  { %5936 = vmatprep.subr.bf16.mxu1 %v5935_v28  ;;  %5782 = vmatpush1.bf16.msra.mxu0 %v5781_v14  ;;  %v2459_v28 = vld [vmem:[%s10564_s13 + $0x188] sm:$0xff]  ;;  %v2544_v14 = vld [vmem:[%s10564_s13 + $0x430] sm:$0xff]  ;;  %v5801_v34 = vpack.c.bf16 %v2455_v62, %v2452_v18 }
 0x70a   :  { %5784 = vmatprep.subr.bf16.mxu0 %v5783_v0  ;;  %v2598_v0 = vld [vmem:[%s10564_s13 + $0x5e0] sm:$0xff]  ;;  %v5803_v8 = vpack.c.bf16 %v2462_v47, %v2459_v28  ;;  %v5957_v51 = vpack.c.bf16 %v2547_v24, %v2544_v14  ;;  %v2912_v62 = vld [vmem:[%s10566_s14 + $0xb0] sm:$0xff] }
 0x70b   :  { %v5959_v1 = vpack.c.bf16 %v2601_v3, %v2598_v0  ;;  %v2482_v47 = vld [vmem:[%s10564_s13 + $0x240] sm:$0xff]  ;;  %v2492_v14 = vld [vmem:[%s10564_s13 + $0x290] sm:$0xff]  ;;  %v2911_v3 = vld [vmem:[%s10566_s14 + $0xa8] sm:$0xff] }
 0x70c   :  { %5938 = vmatpush3.bf16.msra.mxu1 %v5937_v61  ;;  %v2461_v61 = vld [vmem:[%s10564_s13 + $0x198] sm:$0xff] }
 0x70d   :  { %5940 = vmatprep.subr.bf16.mxu1 %v5939_v16  ;;  %5786 = vmatpush1.bf16.msra.mxu0 %v5785_v27  ;;  %v2465_v16 = vld [vmem:[%s10564_s13 + $0x1b8] sm:$0xff]  ;;  %v2550_v27 = vld [vmem:[%s10564_s13 + $0x460] sm:$0xff]  ;;  %v5805_v15 = vpack.c.bf16 %v2461_v61, %v2458_v41 }
 0x70e   :  { %5788 = vmatprep.subr.bf16.mxu0 %v5787_v11  ;;  %v2891_v11 = vld [vmem:[%s10566_s14 + $0x8] sm:$0xff]  ;;  %v5807_v37 = vpack.c.bf16 %v2468_v52, %v2465_v16  ;;  %v5961_v35 = vpack.c.bf16 %v2553_v58, %v2550_v27  ;;  %v2918_v61 = vld [vmem:[%s10566_s14 + $0xe0] sm:$0xff]  ;;  %v2488_v52 = vld [vmem:[%s10564_s13 + $0x270] sm:$0xff] }
 0x70f   :  { %v5963_v5 = vpack.c.bf16 %v2894_v54, %v2891_v11  ;;  %v2498_v27 = vld [vmem:[%s10564_s13 + $0x2c0] sm:$0xff]  ;;  %v2917_v54 = vld [vmem:[%s10566_s14 + $0xd8] sm:$0xff] }
 0x710   :  { %5942 = vmatpush3.bf16.msra.mxu1 %v5941_v29  ;;  %v2467_v29 = vld [vmem:[%s10564_s13 + $0x1c8] sm:$0xff] }
 0x711   :  { %5944 = vmatprep.subr.bf16.mxu1 %v5943_v7  ;;  %5790 = vmatpush1.bf16.msra.mxu0 %v5789_v60  ;;  %v2471_v7 = vld [vmem:[%s10564_s13 + $0x1e8] sm:$0xff]  ;;  %v2890_v60 = vld [vmem:[%s10566_s14] sm:$0xff]  ;;  %v5809_v43 = vpack.c.bf16 %v2467_v29, %v2464_v20  ;;  %v2924_v29 = vld [vmem:[%s10566_s14 + $0x110] sm:$0xff] }
 0x712   :  { %5792 = vmatprep.subr.bf16.mxu0 %v5791_v39  ;;  %v2897_v39 = vld [vmem:[%s10566_s14 + $0x38] sm:$0xff]  ;;  %v5811_v44 = vpack.c.bf16 %v2474_v57, %v2471_v7  ;;  %v5965_v12 = vpack.c.bf16 %v2893_v10, %v2890_v60  ;;  %v2494_v57 = vld [vmem:[%s10564_s13 + $0x2a0] sm:$0xff]  ;;  %v2504_v60 = vld [vmem:[%s10564_s13 + $0x2f0] sm:$0xff] }
 0x713   :  { %v5967_v31 = vpack.c.bf16 %v2900_v59, %v2897_v39  ;;  %v2923_v59 = vld [vmem:[%s10566_s14 + $0x108] sm:$0xff] }
 0x714   :  { %5946 = vmatpush3.bf16.msra.mxu1 %v5945_v63  ;;  %v2473_v63 = vld [vmem:[%s10564_s13 + $0x1f8] sm:$0xff] }
 0x715   :  { %5948 = vmatprep.subr.bf16.mxu1 %v5947_v9  ;;  %5794 = vmatpush1.bf16.msra.mxu0 %v5793_v19  ;;  %v2477_v9 = vld [vmem:[%s10564_s13 + $0x218] sm:$0xff]  ;;  %v2896_v19 = vld [vmem:[%s10566_s14 + $0x30] sm:$0xff]  ;;  %v5813_v48 = vpack.c.bf16 %v2473_v63, %v2470_v6  ;;  %v2930_v63 = vld [vmem:[%s10566_s14 + $0x140] sm:$0xff] }
 0x716   :  { %5796 = vmatprep.subr.bf16.mxu0 %v5795_v46  ;;  %v2903_v46 = vld [vmem:[%s10566_s14 + $0x68] sm:$0xff]  ;;  %v5815_v2 = vpack.c.bf16 %v2480_v25, %v2477_v9  ;;  %v5969_v53 = vpack.c.bf16 %v2899_v55, %v2896_v19  ;;  %v2500_v25 = vld [vmem:[%s10564_s13 + $0x2d0] sm:$0xff]  ;;  %v2510_v19 = vld [vmem:[%s10564_s13 + $0x320] sm:$0xff] }
 0x717   :  { %v5971_v30 = vpack.c.bf16 %v2906_v32, %v2903_v46  ;;  %v2929_v32 = vld [vmem:[%s10566_s14 + $0x138] sm:$0xff] }
 0x718   :  { %5950 = vmatpush3.bf16.msra.mxu1 %v5949_v38  ;;  %v2479_v38 = vld [vmem:[%s10564_s13 + $0x228] sm:$0xff] }
 0x719   :  { %5952 = vmatprep.subr.bf16.mxu1 %v5951_v49  ;;  %5798 = vmatpush1.bf16.msra.mxu0 %v5797_v45  ;;  %v2483_v49 = vld [vmem:[%s10564_s13 + $0x248] sm:$0xff]  ;;  %v2902_v45 = vld [vmem:[%s10566_s14 + $0x60] sm:$0xff]  ;;  %v5817_v18 = vpack.c.bf16 %v2479_v38, %v2476_v50  ;;  %v2936_v38 = vld [vmem:[%s10566_s14 + $0x170] sm:$0xff] }
 0x71a   :  { %5800 = vmatprep.subr.bf16.mxu0 %v5799_v17  ;;  %v2909_v17 = vld [vmem:[%s10566_s14 + $0x98] sm:$0xff]  ;;  %v5819_v28 = vpack.c.bf16 %v2486_v13, %v2483_v49  ;;  %v5973_v24 = vpack.c.bf16 %v2905_v42, %v2902_v45  ;;  %v2506_v13 = vld [vmem:[%s10564_s13 + $0x300] sm:$0xff]  ;;  %v2516_v45 = vld [vmem:[%s10564_s13 + $0x350] sm:$0xff] }
 0x71b   :  { %v5975_v0 = vpack.c.bf16 %v2912_v62, %v2909_v17  ;;  %v2935_v62 = vld [vmem:[%s10566_s14 + $0x168] sm:$0xff] }
 0x71c   :  { %5954 = vmatpush3.bf16.msra.mxu1 %v5953_v56  ;;  %v2485_v56 = vld [vmem:[%s10564_s13 + $0x258] sm:$0xff] }
 0x71d   :  { %5956 = vmatprep.subr.bf16.mxu1 %v5955_v26  ;;  %5802 = vmatpush1.bf16.msra.mxu0 %v5801_v34  ;;  %v2489_v26 = vld [vmem:[%s10564_s13 + $0x278] sm:$0xff]  ;;  %v2908_v34 = vld [vmem:[%s10566_s14 + $0x90] sm:$0xff]  ;;  %v5821_v41 = vpack.c.bf16 %v2485_v56, %v2482_v47  ;;  %v2942_v56 = vld [vmem:[%s10566_s14 + $0x1a0] sm:$0xff] }
 0x71e   :  { %5804 = vmatprep.subr.bf16.mxu0 %v5803_v8  ;;  %v2915_v8 = vld [vmem:[%s10566_s14 + $0xc8] sm:$0xff]  ;;  %v5823_v16 = vpack.c.bf16 %v2492_v14, %v2489_v26  ;;  %v5977_v58 = vpack.c.bf16 %v2911_v3, %v2908_v34  ;;  %v2512_v14 = vld [vmem:[%s10564_s13 + $0x330] sm:$0xff]  ;;  %v2522_v34 = vld [vmem:[%s10564_s13 + $0x380] sm:$0xff] }
 0x71f   :  { %v5979_v11 = vpack.c.bf16 %v2918_v61, %v2915_v8  ;;  %v2941_v61 = vld [vmem:[%s10566_s14 + $0x198] sm:$0xff] }
 0x720   :  { %5958 = vmatpush3.bf16.msra.mxu1 %v5957_v51  ;;  %v2491_v51 = vld [vmem:[%s10564_s13 + $0x288] sm:$0xff] }
 0x721   :  { %5960 = vmatprep.subr.bf16.mxu1 %v5959_v1  ;;  %5806 = vmatpush1.bf16.msra.mxu0 %v5805_v15  ;;  %v2495_v1 = vld [vmem:[%s10564_s13 + $0x2a8] sm:$0xff]  ;;  %v2914_v15 = vld [vmem:[%s10566_s14 + $0xc0] sm:$0xff]  ;;  %v5825_v20 = vpack.c.bf16 %v2491_v51, %v2488_v52  ;;  %v2948_v51 = vld [vmem:[%s10566_s14 + $0x1d0] sm:$0xff] }
 0x722   :  { %5808 = vmatprep.subr.bf16.mxu0 %v5807_v37  ;;  %v2921_v37 = vld [vmem:[%s10566_s14 + $0xf8] sm:$0xff]  ;;  %v5827_v7 = vpack.c.bf16 %v2498_v27, %v2495_v1  ;;  %v5981_v10 = vpack.c.bf16 %v2917_v54, %v2914_v15  ;;  %v2518_v27 = vld [vmem:[%s10564_s13 + $0x360] sm:$0xff]  ;;  %v2528_v15 = vld [vmem:[%s10564_s13 + $0x3b0] sm:$0xff] }
 0x723   :  { %v5983_v39 = vpack.c.bf16 %v2924_v29, %v2921_v37  ;;  %v2947_v29 = vld [vmem:[%s10566_s14 + $0x1c8] sm:$0xff] }
 0x724   :  { %5962 = vmatpush3.bf16.msra.mxu1 %v5961_v35  ;;  %v2497_v35 = vld [vmem:[%s10564_s13 + $0x2b8] sm:$0xff] }
 0x725   :  { %5964 = vmatprep.subr.bf16.mxu1 %v5963_v5  ;;  %5810 = vmatpush1.bf16.msra.mxu0 %v5809_v43  ;;  %v2501_v5 = vld [vmem:[%s10564_s13 + $0x2d8] sm:$0xff]  ;;  %v2920_v43 = vld [vmem:[%s10566_s14 + $0xf0] sm:$0xff]  ;;  %v5829_v6 = vpack.c.bf16 %v2497_v35, %v2494_v57  ;;  %v2954_v35 = vld [vmem:[%s10566_s14 + $0x200] sm:$0xff] }
 0x726   :  { %5812 = vmatprep.subr.bf16.mxu0 %v5811_v44  ;;  %v2927_v44 = vld [vmem:[%s10566_s14 + $0x128] sm:$0xff]  ;;  %v5831_v9 = vpack.c.bf16 %v2504_v60, %v2501_v5  ;;  %v5985_v55 = vpack.c.bf16 %v2923_v59, %v2920_v43  ;;  %v2524_v60 = vld [vmem:[%s10564_s13 + $0x390] sm:$0xff]  ;;  %v2534_v43 = vld [vmem:[%s10564_s13 + $0x3e0] sm:$0xff] }
 0x727   :  { %2885 = vmatmul.mubr.f32.vlgmr.msra.gmra.mrb[10].mxu1 %v8219_v33  ;;  %v5987_v46 = vpack.c.bf16 %v2930_v63, %v2927_v44  ;;  %v2953_v63 = vld [vmem:[%s10566_s14 + $0x1f8] sm:$0xff] }
 0x728   :  { %5966 = vmatpush1.bf16.msra.mxu1 %v5965_v12  ;;  %3146 = vmatprep.mubr.f32.mxu1 %v8238_v21  ;;  %v2503_v12 = vld [vmem:[%s10564_s13 + $0x2e8] sm:$0xff] }
 0x729   :  { %5968 = vmatprep.subr.bf16.mxu1 %v5967_v31  ;;  %5814 = vmatpush1.bf16.msra.mxu0 %v5813_v48  ;;  %v2507_v31 = vld [vmem:[%s10564_s13 + $0x308] sm:$0xff]  ;;  %v2926_v48 = vld [vmem:[%s10566_s14 + $0x120] sm:$0xff]  ;;  %v5833_v50 = vpack.c.bf16 %v2503_v12, %v2500_v25  ;;  %v2960_v12 = vld [vmem:[%s10566_s14 + $0x230] sm:$0xff] }
 0x72a   :  { %5816 = vmatprep.subr.bf16.mxu0 %v5815_v2  ;;  %v2933_v2 = vld [vmem:[%s10566_s14 + $0x158] sm:$0xff]  ;;  %v5835_v49 = vpack.c.bf16 %v2510_v19, %v2507_v31  ;;  %v5989_v42 = vpack.c.bf16 %v2929_v32, %v2926_v48  ;;  %v2530_v19 = vld [vmem:[%s10564_s13 + $0x3c0] sm:$0xff]  ;;  %v2540_v48 = vld [vmem:[%s10564_s13 + $0x410] sm:$0xff] }
 0x72b   :  { %v5991_v17 = vpack.c.bf16 %v2936_v38, %v2933_v2  ;;  %v2959_v38 = vld [vmem:[%s10566_s14 + $0x228] sm:$0xff] }
 0x72c   :  { %5970 = vmatpush1.bf16.msra.mxu1 %v5969_v53  ;;  %v2509_v53 = vld [vmem:[%s10564_s13 + $0x318] sm:$0xff] }
 0x72d   :  { %5972 = vmatprep.subr.bf16.mxu1 %v5971_v30  ;;  %5818 = vmatpush1.bf16.msra.mxu0 %v5817_v18  ;;  %v2513_v30 = vld [vmem:[%s10564_s13 + $0x338] sm:$0xff]  ;;  %v2932_v18 = vld [vmem:[%s10566_s14 + $0x150] sm:$0xff]  ;;  %v5837_v47 = vpack.c.bf16 %v2509_v53, %v2506_v13  ;;  %v2966_v53 = vld [vmem:[%s10566_s14 + $0x260] sm:$0xff] }
 0x72e   :  { %5820 = vmatprep.subr.bf16.mxu0 %v5819_v28  ;;  %v2939_v28 = vld [vmem:[%s10566_s14 + $0x188] sm:$0xff]  ;;  %v5839_v26 = vpack.c.bf16 %v2516_v45, %v2513_v30  ;;  %v5993_v3 = vpack.c.bf16 %v2935_v62, %v2932_v18  ;;  %v2536_v45 = vld [vmem:[%s10564_s13 + $0x3f0] sm:$0xff]  ;;  %v2546_v18 = vld [vmem:[%s10564_s13 + $0x440] sm:$0xff] }
 0x72f   :  { %v5995_v8 = vpack.c.bf16 %v2942_v56, %v2939_v28  ;;  %v2965_v56 = vld [vmem:[%s10566_s14 + $0x258] sm:$0xff] }
 0x730   :  { %5974 = vmatpush1.bf16.msra.mxu1 %v5973_v24  ;;  %v2515_v24 = vld [vmem:[%s10564_s13 + $0x348] sm:$0xff] }
 0x731   :  { %5976 = vmatprep.subr.bf16.mxu1 %v5975_v0  ;;  %5822 = vmatpush1.bf16.msra.mxu0 %v5821_v41  ;;  %v2519_v0 = vld [vmem:[%s10564_s13 + $0x368] sm:$0xff]  ;;  %v2938_v41 = vld [vmem:[%s10566_s14 + $0x180] sm:$0xff]  ;;  %v5841_v52 = vpack.c.bf16 %v2515_v24, %v2512_v14  ;;  %v2972_v24 = vld [vmem:[%s10566_s14 + $0x290] sm:$0xff] }
 0x732   :  { %5824 = vmatprep.subr.bf16.mxu0 %v5823_v16  ;;  %v2945_v16 = vld [vmem:[%s10566_s14 + $0x1b8] sm:$0xff]  ;;  %v5843_v1 = vpack.c.bf16 %v2522_v34, %v2519_v0  ;;  %v5997_v54 = vpack.c.bf16 %v2941_v61, %v2938_v41  ;;  %v2542_v34 = vld [vmem:[%s10564_s13 + $0x420] sm:$0xff]  ;;  %v2552_v41 = vld [vmem:[%s10564_s13 + $0x470] sm:$0xff] }
 0x733   :  { %v5999_v37 = vpack.c.bf16 %v2948_v51, %v2945_v16  ;;  %v2971_v51 = vld [vmem:[%s10566_s14 + $0x288] sm:$0xff] }
 0x734   :  { %5978 = vmatpush1.bf16.msra.mxu1 %v5977_v58  ;;  %v2521_v58 = vld [vmem:[%s10564_s13 + $0x378] sm:$0xff] }
 0x735   :  { %5980 = vmatprep.subr.bf16.mxu1 %v5979_v11  ;;  %5826 = vmatpush1.bf16.msra.mxu0 %v5825_v20  ;;  %v2525_v11 = vld [vmem:[%s10564_s13 + $0x398] sm:$0xff]  ;;  %v2944_v20 = vld [vmem:[%s10566_s14 + $0x1b0] sm:$0xff]  ;;  %v5845_v57 = vpack.c.bf16 %v2521_v58, %v2518_v27  ;;  %v2978_v58 = vld [vmem:[%s10566_s14 + $0x2c0] sm:$0xff] }
 0x736   :  { %5828 = vmatprep.subr.bf16.mxu0 %v5827_v7  ;;  %v2951_v7 = vld [vmem:[%s10566_s14 + $0x1e8] sm:$0xff]  ;;  %v5847_v5 = vpack.c.bf16 %v2528_v15, %v2525_v11  ;;  %v6001_v59 = vpack.c.bf16 %v2947_v29, %v2944_v20  ;;  %v2548_v15 = vld [vmem:[%s10564_s13 + $0x450] sm:$0xff]  ;;  %v2558_v20 = vld [vmem:[%s10564_s13 + $0x4a0] sm:$0xff] }
 0x737   :  { %v6003_v44 = vpack.c.bf16 %v2954_v35, %v2951_v7  ;;  %v2977_v35 = vld [vmem:[%s10566_s14 + $0x2b8] sm:$0xff] }
 0x738   :  { %5982 = vmatpush1.bf16.msra.mxu1 %v5981_v10  ;;  %v2527_v10 = vld [vmem:[%s10564_s13 + $0x3a8] sm:$0xff] }
 0x739   :  { %5984 = vmatprep.subr.bf16.mxu1 %v5983_v39  ;;  %5830 = vmatpush1.bf16.msra.mxu0 %v5829_v6  ;;  %v2531_v39 = vld [vmem:[%s10564_s13 + $0x3c8] sm:$0xff]  ;;  %v2950_v6 = vld [vmem:[%s10566_s14 + $0x1e0] sm:$0xff]  ;;  %v5849_v25 = vpack.c.bf16 %v2527_v10, %v2524_v60  ;;  %v2984_v10 = vld [vmem:[%s10566_s14 + $0x2f0] sm:$0xff] }
 0x73a   :  { %5832 = vmatprep.subr.bf16.mxu0 %v5831_v9  ;;  %v2957_v9 = vld [vmem:[%s10566_s14 + $0x218] sm:$0xff]  ;;  %v5851_v31 = vpack.c.bf16 %v2534_v43, %v2531_v39  ;;  %v6005_v32 = vpack.c.bf16 %v2953_v63, %v2950_v6  ;;  %v2554_v43 = vld [vmem:[%s10564_s13 + $0x480] sm:$0xff]  ;;  %v2564_v6 = vld [vmem:[%s10564_s13 + $0x4d0] sm:$0xff] }
 0x73b   :  { %v6007_v2 = vpack.c.bf16 %v2960_v12, %v2957_v9  ;;  %v2983_v12 = vld [vmem:[%s10566_s14 + $0x2e8] sm:$0xff] }
 0x73c   :  { %5986 = vmatpush1.bf16.msra.mxu1 %v5985_v55  ;;  %v2533_v55 = vld [vmem:[%s10564_s13 + $0x3d8] sm:$0xff] }
 0x73d   :  { %5988 = vmatprep.subr.bf16.mxu1 %v5987_v46  ;;  %5834 = vmatpush1.bf16.msra.mxu0 %v5833_v50  ;;  %v2537_v46 = vld [vmem:[%s10564_s13 + $0x3f8] sm:$0xff]  ;;  %v2956_v50 = vld [vmem:[%s10566_s14 + $0x210] sm:$0xff]  ;;  %v5853_v13 = vpack.c.bf16 %v2533_v55, %v2530_v19  ;;  %v2990_v55 = vld [vmem:[%s10566_s14 + $0x320] sm:$0xff] }
 0x73e   :  { %5836 = vmatprep.subr.bf16.mxu0 %v5835_v49  ;;  %v2963_v49 = vld [vmem:[%s10566_s14 + $0x248] sm:$0xff]  ;;  %v5855_v30 = vpack.c.bf16 %v2540_v48, %v2537_v46  ;;  %v6009_v62 = vpack.c.bf16 %v2959_v38, %v2956_v50  ;;  %v2560_v48 = vld [vmem:[%s10564_s13 + $0x4b0] sm:$0xff]  ;;  %v2570_v50 = vld [vmem:[%s10564_s13 + $0x500] sm:$0xff] }
 0x73f   :  { %v6011_v28 = vpack.c.bf16 %v2966_v53, %v2963_v49  ;;  %v2989_v53 = vld [vmem:[%s10566_s14 + $0x318] sm:$0xff] }
 0x740   :  { %5990 = vmatpush1.bf16.msra.mxu1 %v5989_v42  ;;  %2673 = vmatmul.mubr.f32.vlgmr.msra.gmra.mrb[8].mxu0 %v8217_v4  ;;  %v2539_v42 = vld [vmem:[%s10564_s13 + $0x408] sm:$0xff] }
 0x741   :  { %5992 = vmatprep.subr.bf16.mxu1 %v5991_v17  ;;  %5838 = vmatpush1.bf16.msra.mxu0 %v5837_v47  ;;  %v2543_v17 = vld [vmem:[%s10564_s13 + $0x428] sm:$0xff]  ;;  %v2962_v47 = vld [vmem:[%s10566_s14 + $0x240] sm:$0xff]  ;;  %v5857_v14 = vpack.c.bf16 %v2539_v42, %v2536_v45  ;;  %v2996_v42 = vld [vmem:[%s10566_s14 + $0x350] sm:$0xff] }
 0x742   :  { %2743 = vmatprep.mubr.f32.mxu0 %v8252_v40  ;;  %5840 = vmatprep.subr.bf16.mxu0 %v5839_v26  ;;  %v2969_v26 = vld [vmem:[%s10566_s14 + $0x278] sm:$0xff]  ;;  %v5859_v0 = vpack.c.bf16 %v2546_v18, %v2543_v17  ;;  %v6013_v61 = vpack.c.bf16 %v2965_v56, %v2962_v47  ;;  %v2566_v18 = vld [vmem:[%s10564_s13 + $0x4e0] sm:$0xff]  ;;  %v2576_v47 = vld [vmem:[%s10564_s13 + $0x530] sm:$0xff] }
 0x743   :  { %v6015_v16 = vpack.c.bf16 %v2972_v24, %v2969_v26  ;;  %v2995_v24 = vld [vmem:[%s10566_s14 + $0x348] sm:$0xff] }
 0x744   :  { %5994 = vmatpush1.bf16.msra.mxu1 %v5993_v3  ;;  %v2545_v3 = vld [vmem:[%s10564_s13 + $0x438] sm:$0xff] }
 0x745   :  { %5996 = vmatprep.subr.bf16.mxu1 %v5995_v8  ;;  %5842 = vmatpush1.bf16.msra.mxu0 %v5841_v52  ;;  %v2549_v8 = vld [vmem:[%s10564_s13 + $0x458] sm:$0xff]  ;;  %v2968_v52 = vld [vmem:[%s10566_s14 + $0x270] sm:$0xff]  ;;  %v5861_v27 = vpack.c.bf16 %v2545_v3, %v2542_v34  ;;  %v3002_v3 = vld [vmem:[%s10566_s14 + $0x380] sm:$0xff] }
 0x746   :  { %5844 = vmatprep.subr.bf16.mxu0 %v5843_v1  ;;  %v2975_v1 = vld [vmem:[%s10566_s14 + $0x2a8] sm:$0xff]  ;;  %v5863_v11 = vpack.c.bf16 %v2552_v41, %v2549_v8  ;;  %v6017_v29 = vpack.c.bf16 %v2971_v51, %v2968_v52  ;;  %v2572_v41 = vld [vmem:[%s10564_s13 + $0x510] sm:$0xff]  ;;  %v2582_v52 = vld [vmem:[%s10564_s13 + $0x560] sm:$0xff] }
 0x747   :  { %v6019_v7 = vpack.c.bf16 %v2978_v58, %v2975_v1  ;;  %v3001_v58 = vld [vmem:[%s10566_s14 + $0x378] sm:$0xff] }
 0x748   :  { %5998 = vmatpush1.bf16.msra.mxu1 %v5997_v54  ;;  %v2551_v54 = vld [vmem:[%s10564_s13 + $0x468] sm:$0xff] }
 0x749   :  { %6000 = vmatprep.subr.bf16.mxu1 %v5999_v37  ;;  %5846 = vmatpush1.bf16.msra.mxu0 %v5845_v57  ;;  %v2555_v37 = vld [vmem:[%s10564_s13 + $0x488] sm:$0xff]  ;;  %v2974_v57 = vld [vmem:[%s10566_s14 + $0x2a0] sm:$0xff]  ;;  %v5865_v60 = vpack.c.bf16 %v2551_v54, %v2548_v15  ;;  %v3008_v54 = vld [vmem:[%s10566_s14 + $0x3b0] sm:$0xff] }
 0x74a   :  { %5848 = vmatprep.subr.bf16.mxu0 %v5847_v5  ;;  %v2981_v5 = vld [vmem:[%s10566_s14 + $0x2d8] sm:$0xff]  ;;  %v5867_v39 = vpack.c.bf16 %v2558_v20, %v2555_v37  ;;  %v6021_v63 = vpack.c.bf16 %v2977_v35, %v2974_v57  ;;  %v2578_v20 = vld [vmem:[%s10564_s13 + $0x540] sm:$0xff]  ;;  %v2588_v57 = vld [vmem:[%s10564_s13 + $0x590] sm:$0xff] }
 0x74b   :  { %v6023_v9 = vpack.c.bf16 %v2984_v10, %v2981_v5  ;;  %v3007_v10 = vld [vmem:[%s10566_s14 + $0x3a8] sm:$0xff] }
 0x74c   :  { %6002 = vmatpush1.bf16.msra.mxu1 %v6001_v59  ;;  %v2557_v59 = vld [vmem:[%s10564_s13 + $0x498] sm:$0xff] }
 0x74d   :  { %6004 = vmatprep.subr.bf16.mxu1 %v6003_v44  ;;  %5850 = vmatpush1.bf16.msra.mxu0 %v5849_v25  ;;  %v2561_v44 = vld [vmem:[%s10564_s13 + $0x4b8] sm:$0xff]  ;;  %v2980_v25 = vld [vmem:[%s10566_s14 + $0x2d0] sm:$0xff]  ;;  %v5869_v19 = vpack.c.bf16 %v2557_v59, %v2554_v43  ;;  %v3014_v59 = vld [vmem:[%s10566_s14 + $0x3e0] sm:$0xff] }
 0x74e   :  { %5852 = vmatprep.subr.bf16.mxu0 %v5851_v31  ;;  %v2987_v31 = vld [vmem:[%s10566_s14 + $0x308] sm:$0xff]  ;;  %v5871_v46 = vpack.c.bf16 %v2564_v6, %v2561_v44  ;;  %v6025_v38 = vpack.c.bf16 %v2983_v12, %v2980_v25  ;;  %v2584_v6 = vld [vmem:[%s10564_s13 + $0x570] sm:$0xff]  ;;  %v2594_v25 = vld [vmem:[%s10564_s13 + $0x5c0] sm:$0xff] }
 0x74f   :  { %v6027_v49 = vpack.c.bf16 %v2990_v55, %v2987_v31  ;;  %v3013_v55 = vld [vmem:[%s10566_s14 + $0x3d8] sm:$0xff] }
 0x750   :  { %6006 = vmatpush1.bf16.msra.mxu1 %v6005_v32  ;;  %v2563_v32 = vld [vmem:[%s10564_s13 + $0x4c8] sm:$0xff] }
 0x751   :  { %6008 = vmatprep.subr.bf16.mxu1 %v6007_v2  ;;  %5854 = vmatpush1.bf16.msra.mxu0 %v5853_v13  ;;  %v2567_v2 = vld [vmem:[%s10564_s13 + $0x4e8] sm:$0xff]  ;;  %v2986_v13 = vld [vmem:[%s10566_s14 + $0x300] sm:$0xff]  ;;  %v5873_v45 = vpack.c.bf16 %v2563_v32, %v2560_v48  ;;  %v3020_v32 = vld [vmem:[%s10566_s14 + $0x410] sm:$0xff] }
 0x752   :  { %5856 = vmatprep.subr.bf16.mxu0 %v5855_v30  ;;  %v2993_v30 = vld [vmem:[%s10566_s14 + $0x338] sm:$0xff]  ;;  %v5875_v17 = vpack.c.bf16 %v2570_v50, %v2567_v2  ;;  %v6029_v56 = vpack.c.bf16 %v2989_v53, %v2986_v13  ;;  %v2590_v50 = vld [vmem:[%s10564_s13 + $0x5a0] sm:$0xff]  ;;  %v2600_v13 = vld [vmem:[%s10564_s13 + $0x5f0] sm:$0xff] }
 0x753   :  { %v6031_v26 = vpack.c.bf16 %v2996_v42, %v2993_v30  ;;  %v3019_v42 = vld [vmem:[%s10566_s14 + $0x408] sm:$0xff] }
 0x754   :  { %6010 = vmatpush1.bf16.msra.mxu1 %v6009_v62  ;;  %v2569_v62 = vld [vmem:[%s10564_s13 + $0x4f8] sm:$0xff] }
 0x755   :  { %6012 = vmatprep.subr.bf16.mxu1 %v6011_v28  ;;  %5858 = vmatpush1.bf16.msra.mxu0 %v5857_v14  ;;  %v2573_v28 = vld [vmem:[%s10564_s13 + $0x518] sm:$0xff]  ;;  %v2992_v14 = vld [vmem:[%s10566_s14 + $0x330] sm:$0xff]  ;;  %v5877_v34 = vpack.c.bf16 %v2569_v62, %v2566_v18  ;;  %v3026_v62 = vld [vmem:[%s10566_s14 + $0x440] sm:$0xff] }
 0x756   :  { %5860 = vmatprep.subr.bf16.mxu0 %v5859_v0  ;;  %v2999_v0 = vld [vmem:[%s10566_s14 + $0x368] sm:$0xff]  ;;  %v5879_v8 = vpack.c.bf16 %v2576_v47, %v2573_v28  ;;  %v6033_v51 = vpack.c.bf16 %v2995_v24, %v2992_v14  ;;  %v2596_v47 = vld [vmem:[%s10564_s13 + $0x5d0] sm:$0xff] }
 0x757   :  { %v6035_v1 = vpack.c.bf16 %v3002_v3, %v2999_v0  ;;  %v2943_v14 = vld [vmem:[%s10566_s14 + $0x1a8] sm:$0xff]  ;;  %v3025_v3 = vld [vmem:[%s10566_s14 + $0x438] sm:$0xff] }
 0x758   :  { %6014 = vmatpush1.bf16.msra.mxu1 %v6013_v61  ;;  %v2575_v61 = vld [vmem:[%s10564_s13 + $0x528] sm:$0xff] }
 0x759   :  { %6016 = vmatprep.subr.bf16.mxu1 %v6015_v16  ;;  %5862 = vmatpush1.bf16.msra.mxu0 %v5861_v27  ;;  %v2579_v16 = vld [vmem:[%s10564_s13 + $0x548] sm:$0xff]  ;;  %v2998_v27 = vld [vmem:[%s10566_s14 + $0x360] sm:$0xff]  ;;  %v5881_v15 = vpack.c.bf16 %v2575_v61, %v2572_v41  ;;  %v3032_v61 = vld [vmem:[%s10566_s14 + $0x470] sm:$0xff] }
 0x75a   :  { %5864 = vmatprep.subr.bf16.mxu0 %v5863_v11  ;;  %v3005_v11 = vld [vmem:[%s10566_s14 + $0x398] sm:$0xff]  ;;  %v5883_v37 = vpack.c.bf16 %v2582_v52, %v2579_v16  ;;  %v6037_v35 = vpack.c.bf16 %v3001_v58, %v2998_v27  ;;  %v2892_v52 = vld [vmem:[%s10566_s14 + $0x10] sm:$0xff] }
 0x75b   :  { %v6039_v5 = vpack.c.bf16 %v3008_v54, %v3005_v11  ;;  %v2949_v27 = vld [vmem:[%s10566_s14 + $0x1d8] sm:$0xff]  ;;  %v3031_v54 = vld [vmem:[%s10566_s14 + $0x468] sm:$0xff] }
 0x75c   :  { %6018 = vmatpush1.bf16.msra.mxu1 %v6017_v29  ;;  %v2581_v29 = vld [vmem:[%s10564_s13 + $0x558] sm:$0xff] }
 0x75d   :  { %6020 = vmatprep.subr.bf16.mxu1 %v6019_v7  ;;  %5866 = vmatpush1.bf16.msra.mxu0 %v5865_v60  ;;  %v2585_v7 = vld [vmem:[%s10564_s13 + $0x578] sm:$0xff]  ;;  %v3004_v60 = vld [vmem:[%s10566_s14 + $0x390] sm:$0xff]  ;;  %v5885_v43 = vpack.c.bf16 %v2581_v29, %v2578_v20  ;;  %v3038_v29 = vld [vmem:[%s10566_s14 + $0x4a0] sm:$0xff] }
 0x75e   :  { %5868 = vmatprep.subr.bf16.mxu0 %v5867_v39  ;;  %v3011_v39 = vld [vmem:[%s10566_s14 + $0x3c8] sm:$0xff]  ;;  %v5887_v44 = vpack.c.bf16 %v2588_v57, %v2585_v7  ;;  %v6041_v12 = vpack.c.bf16 %v3007_v10, %v3004_v60  ;;  %v2898_v57 = vld [vmem:[%s10566_s14 + $0x40] sm:$0xff] }
 0x75f   :  { %v6043_v31 = vpack.c.bf16 %v3014_v59, %v3011_v39  ;;  %v2955_v60 = vld [vmem:[%s10566_s14 + $0x208] sm:$0xff]  ;;  %v3037_v59 = vld [vmem:[%s10566_s14 + $0x498] sm:$0xff] }
 0x760   :  { %6022 = vmatpush1.bf16.msra.mxu1 %v6021_v63  ;;  %v2587_v63 = vld [vmem:[%s10564_s13 + $0x588] sm:$0xff] }
 0x761   :  { %6024 = vmatprep.subr.bf16.mxu1 %v6023_v9  ;;  %5870 = vmatpush1.bf16.msra.mxu0 %v5869_v19  ;;  %v2591_v9 = vld [vmem:[%s10564_s13 + $0x5a8] sm:$0xff]  ;;  %v3010_v19 = vld [vmem:[%s10566_s14 + $0x3c0] sm:$0xff]  ;;  %v5889_v48 = vpack.c.bf16 %v2587_v63, %v2584_v6  ;;  %v3044_v63 = vld [vmem:[%s10566_s14 + $0x4d0] sm:$0xff] }
 0x762   :  { %5872 = vmatprep.subr.bf16.mxu0 %v5871_v46  ;;  %v3017_v46 = vld [vmem:[%s10566_s14 + $0x3f8] sm:$0xff]  ;;  %v5891_v2 = vpack.c.bf16 %v2594_v25, %v2591_v9  ;;  %v6045_v53 = vpack.c.bf16 %v3013_v55, %v3010_v19  ;;  %v2904_v25 = vld [vmem:[%s10566_s14 + $0x70] sm:$0xff] }
 0x763   :  { %v6047_v30 = vpack.c.bf16 %v3020_v32, %v3017_v46  ;;  %v2961_v19 = vld [vmem:[%s10566_s14 + $0x238] sm:$0xff]  ;;  %v3040_v46 = vld [vmem:[%s10566_s14 + $0x4b0] sm:$0xff]  ;;  %v3047_v32 = vld [vmem:[%s10566_s14 + $0x4e8] sm:$0xff] }
 0x764   :  { %6026 = vmatpush1.bf16.msra.mxu1 %v6025_v38  ;;  %v2593_v38 = vld [vmem:[%s10564_s13 + $0x5b8] sm:$0xff] }
 0x765   :  { %6028 = vmatprep.subr.bf16.mxu1 %v6027_v49  ;;  %5874 = vmatpush1.bf16.msra.mxu0 %v5873_v45  ;;  %v2597_v49 = vld [vmem:[%s10564_s13 + $0x5d8] sm:$0xff]  ;;  %v3016_v45 = vld [vmem:[%s10566_s14 + $0x3f0] sm:$0xff]  ;;  %v5893_v18 = vpack.c.bf16 %v2593_v38, %v2590_v50  ;;  %v3050_v50 = vld [vmem:[%s10566_s14 + $0x500] sm:$0xff] }
 0x766   :  { %5876 = vmatprep.subr.bf16.mxu0 %v5875_v17  ;;  %v3023_v17 = vld [vmem:[%s10566_s14 + $0x428] sm:$0xff]  ;;  %v5895_v28 = vpack.c.bf16 %v2600_v13, %v2597_v49  ;;  %v6049_v24 = vpack.c.bf16 %v3019_v42, %v3016_v45  ;;  %v2910_v49 = vld [vmem:[%s10566_s14 + $0xa0] sm:$0xff]  ;;  %v2913_v13 = vld [vmem:[%s10566_s14 + $0xb8] sm:$0xff]  ;;  %v6067_v42 = vpack.c.bf16 %v3050_v50, %v3047_v32 }
 0x767   :  { %3147 = vmatmul.mubr.f32.vlgmr.msra.gmra.mrb[12].mxu1 %v8217_v4  ;;  %v6051_v0 = vpack.c.bf16 %v3026_v62, %v3023_v17  ;;  %v3046_v17 = vld [vmem:[%s10566_s14 + $0x4e0] sm:$0xff]  ;;  %v3053_v62 = vld [vmem:[%s10566_s14 + $0x518] sm:$0xff] }
 0x768   :  { %6030 = vmatpush1.bf16.msra.mxu1 %v6029_v56  ;;  %3217 = vmatprep.mubr.f32.mxu1 %v8252_v40  ;;  %v2599_v56 = vld [vmem:[%s10564_s13 + $0x5e8] sm:$0xff]  ;;  %v3070_v32 = vld [vmem:[%s10566_s14 + $0x5a0] sm:$0xff]  ;;  %v3077_v50 = vld [vmem:[%s10566_s14 + $0x5d8] sm:$0xff] }
 0x769   :  { %6032 = vmatprep.subr.bf16.mxu1 %v6031_v26  ;;  %5878 = vmatpush1.bf16.msra.mxu0 %v5877_v34  ;;  %v2940_v26 = vld [vmem:[%s10566_s14 + $0x190] sm:$0xff]  ;;  %v3022_v34 = vld [vmem:[%s10566_s14 + $0x420] sm:$0xff]  ;;  %v5897_v41 = vpack.c.bf16 %v2599_v56, %v2596_v47 }
 0x76a   :  { %5880 = vmatprep.subr.bf16.mxu0 %v5879_v8  ;;  %v3029_v8 = vld [vmem:[%s10566_s14 + $0x458] sm:$0xff]  ;;  %v6091_v16 = vpack.c.bf16 %v2943_v14, %v2940_v26  ;;  %v6053_v58 = vpack.c.bf16 %v3025_v3, %v3022_v34  ;;  %v3056_v47 = vld [vmem:[%s10566_s14 + $0x530] sm:$0xff]  ;;  %v2919_v14 = vld [vmem:[%s10566_s14 + $0xe8] sm:$0xff] }
 0x76b   :  { %v6055_v11 = vpack.c.bf16 %v3032_v61, %v3029_v8  ;;  %v2916_v26 = vld [vmem:[%s10566_s14 + $0xd0] sm:$0xff]  ;;  %v6071_v3 = vpack.c.bf16 %v3056_v47, %v3053_v62  ;;  %v3059_v61 = vld [vmem:[%s10566_s14 + $0x548] sm:$0xff] }
 0x76c   :  { %6034 = vmatpush1.bf16.msra.mxu1 %v6033_v51  ;;  %v2895_v51 = vld [vmem:[%s10566_s14 + $0x28] sm:$0xff]  ;;  %v3052_v8 = vld [vmem:[%s10566_s14 + $0x510] sm:$0xff] }
 0x76d   :  { %6036 = vmatprep.subr.bf16.mxu1 %v6035_v1  ;;  %5882 = vmatpush1.bf16.msra.mxu0 %v5881_v15  ;;  %v2946_v1 = vld [vmem:[%s10566_s14 + $0x1c0] sm:$0xff]  ;;  %v3028_v15 = vld [vmem:[%s10566_s14 + $0x450] sm:$0xff]  ;;  %v6093_v20 = vpack.c.bf16 %v2895_v51, %v2892_v52  ;;  %v3079_v47 = vld [vmem:[%s10566_s14 + $0x5e8] sm:$0xff] }
 0x76e   :  { %5884 = vmatprep.subr.bf16.mxu0 %v5883_v37  ;;  %v3035_v37 = vld [vmem:[%s10566_s14 + $0x488] sm:$0xff]  ;;  %v6095_v7 = vpack.c.bf16 %v2949_v27, %v2946_v1  ;;  %v6057_v10 = vpack.c.bf16 %v3031_v54, %v3028_v15  ;;  %v3062_v52 = vld [vmem:[%s10566_s14 + $0x560] sm:$0xff]  ;;  %v2925_v27 = vld [vmem:[%s10566_s14 + $0x118] sm:$0xff] }
 0x76f   :  { %v6059_v39 = vpack.c.bf16 %v3038_v29, %v3035_v37  ;;  %v2922_v1 = vld [vmem:[%s10566_s14 + $0x100] sm:$0xff]  ;;  %v6075_v54 = vpack.c.bf16 %v3062_v52, %v3059_v61  ;;  %v3065_v29 = vld [vmem:[%s10566_s14 + $0x578] sm:$0xff]  ;;  %v3003_v52 = vld [vmem:[%s10566_s14 + $0x388] sm:$0xff] }
 0x770   :  { %6038 = vmatpush1.bf16.msra.mxu1 %v6037_v35  ;;  %v2901_v35 = vld [vmem:[%s10566_s14 + $0x58] sm:$0xff]  ;;  %v3058_v37 = vld [vmem:[%s10566_s14 + $0x540] sm:$0xff] }
 0x771   :  { %6040 = vmatprep.subr.bf16.mxu1 %v6039_v5  ;;  %5886 = vmatpush1.bf16.msra.mxu0 %v5885_v43  ;;  %v2952_v5 = vld [vmem:[%s10566_s14 + $0x1f0] sm:$0xff]  ;;  %v3034_v43 = vld [vmem:[%s10566_s14 + $0x480] sm:$0xff]  ;;  %v6097_v6 = vpack.c.bf16 %v2901_v35, %v2898_v57 }
 0x772   :  { %5888 = vmatprep.subr.bf16.mxu0 %v5887_v44  ;;  %v3041_v44 = vld [vmem:[%s10566_s14 + $0x4b8] sm:$0xff]  ;;  %v6099_v9 = vpack.c.bf16 %v2955_v60, %v2952_v5  ;;  %v3068_v57 = vld [vmem:[%s10566_s14 + $0x590] sm:$0xff]  ;;  %v2931_v60 = vld [vmem:[%s10566_s14 + $0x148] sm:$0xff] }
 0x773   :  { %v6063_v55 = vpack.c.bf16 %v3044_v63, %v3041_v44  ;;  %v2928_v5 = vld [vmem:[%s10566_s14 + $0x130] sm:$0xff]  ;;  %v3071_v63 = vld [vmem:[%s10566_s14 + $0x5a8] sm:$0xff] }
 0x774   :  { %6042 = vmatpush1.bf16.msra.mxu1 %v6041_v12  ;;  %v2907_v12 = vld [vmem:[%s10566_s14 + $0x88] sm:$0xff]  ;;  %v3064_v44 = vld [vmem:[%s10566_s14 + $0x570] sm:$0xff] }
 0x775   :  { %6044 = vmatprep.subr.bf16.mxu1 %v6043_v31  ;;  %5890 = vmatpush1.bf16.msra.mxu0 %v5889_v48  ;;  %v2958_v31 = vld [vmem:[%s10566_s14 + $0x220] sm:$0xff]  ;;  %v3043_v48 = vld [vmem:[%s10566_s14 + $0x4c8] sm:$0xff] }
 0x776   :  { %5892 = vmatprep.subr.bf16.mxu0 %v5891_v2  ;;  %v6101_v2 = vpack.c.bf16 %v2907_v12, %v2904_v25  ;;  %v6103_v38 = vpack.c.bf16 %v2961_v19, %v2958_v31  ;;  %v6065_v45 = vpack.c.bf16 %v3043_v48, %v3040_v46  ;;  %v3074_v25 = vld [vmem:[%s10566_s14 + $0x5c0] sm:$0xff]  ;;  %v2937_v19 = vld [vmem:[%s10566_s14 + $0x178] sm:$0xff] }
 0x777   :  { %v2934_v31 = vld [vmem:[%s10566_s14 + $0x160] sm:$0xff]  ;;  %v6083_v48 = vpack.c.bf16 %v3074_v25, %v3071_v63  ;;  %v3027_v63 = vld [vmem:[%s10566_s14 + $0x448] sm:$0xff]  ;;  %v3081_v25 = vld [vmem:[%s10566_s14 + $0x5f8] sm:$0xff] }
 0x778   :  { %6046 = vmatpush1.bf16.msra.mxu1 %v6045_v53  ;;  %v2964_v53 = vld [vmem:[%s10566_s14 + $0x250] sm:$0xff] }
 0x779   :  { %6048 = vmatprep.subr.bf16.mxu1 %v6047_v30  ;;  %5894 = vmatpush1.bf16.msra.mxu0 %v5893_v18  ;;  %v2967_v30 = vld [vmem:[%s10566_s14 + $0x268] sm:$0xff]  ;;  %v3049_v18 = vld [vmem:[%s10566_s14 + $0x4f8] sm:$0xff] }
 0x77a   :  { %5896 = vmatprep.subr.bf16.mxu0 %v5895_v28  ;;  %v6105_v28 = vpack.c.bf16 %v2913_v13, %v2910_v49  ;;  %v6107_v56 = vpack.c.bf16 %v2967_v30, %v2964_v53  ;;  %v6069_v34 = vpack.c.bf16 %v3049_v18, %v3046_v17  ;;  %v3080_v49 = vld [vmem:[%s10566_s14 + $0x5f0] sm:$0xff]  ;;  %v2991_v30 = vld [vmem:[%s10566_s14 + $0x328] sm:$0xff] }
 0x77b   :  { %v2988_v53 = vld [vmem:[%s10566_s14 + $0x310] sm:$0xff]  ;;  %v6087_v62 = vpack.c.bf16 %v3080_v49, %v3077_v50 }
 0x77c   :  { %6050 = vmatpush1.bf16.msra.mxu1 %v6049_v24  ;;  %v2970_v24 = vld [vmem:[%s10566_s14 + $0x280] sm:$0xff] }
 0x77d   :  { %6052 = vmatprep.subr.bf16.mxu1 %v6051_v0  ;;  %5898 = vmatpush1.bf16.msra.mxu0 %v5897_v41  ;;  %v2973_v0 = vld [vmem:[%s10566_s14 + $0x298] sm:$0xff]  ;;  %v3055_v41 = vld [vmem:[%s10566_s14 + $0x528] sm:$0xff] }
 0x77e   :  { %6092 = vmatprep.subr.bf16.mxu0 %v6091_v16  ;;  %v6109_v16 = vpack.c.bf16 %v2919_v14, %v2916_v26  ;;  %v6111_v51 = vpack.c.bf16 %v2973_v0, %v2970_v24  ;;  %v6073_v15 = vpack.c.bf16 %v3055_v41, %v3052_v8  ;;  %v2994_v24 = vld [vmem:[%s10566_s14 + $0x340] sm:$0xff]  ;;  %v2997_v0 = vld [vmem:[%s10566_s14 + $0x358] sm:$0xff] }
 0x77f   :  { %v6129_v41 = vpack.c.bf16 %v2997_v0, %v2994_v24  ;;  %v3365_v24 = vld [vmem:[%s10568_s15 + $0x8] sm:$0xff] }
 0x780   :  { %6054 = vmatpush1.bf16.msra.mxu1 %v6053_v58  ;;  %2744 = vmatmul.mubr.f32.vlgmr.msra.gmra.mrb[8].mxu0 %v8219_v33  ;;  %v2976_v58 = vld [vmem:[%s10566_s14 + $0x2b0] sm:$0xff] }
 0x781   :  { %6056 = vmatprep.subr.bf16.mxu1 %v6055_v11  ;;  %6094 = vmatpush3.bf16.msra.mxu0 %v6093_v20  ;;  %v2979_v11 = vld [vmem:[%s10566_s14 + $0x2c8] sm:$0xff]  ;;  %v3061_v20 = vld [vmem:[%s10566_s14 + $0x558] sm:$0xff] }
 0x782   :  { %3288 = vmatprep.mubr.f32.mxu0 %v8238_v21  ;;  %6096 = vmatprep.subr.bf16.mxu0 %v6095_v7  ;;  %v6061_v21 = vpack.c.bf16 %v3037_v59, %v3034_v43  ;;  %v6113_v7 = vpack.c.bf16 %v2925_v27, %v2922_v1  ;;  %v6115_v35 = vpack.c.bf16 %v2979_v11, %v2976_v58  ;;  %v3006_v27 = vld [vmem:[%s10566_s14 + $0x3a0] sm:$0xff]  ;;  %v3009_v58 = vld [vmem:[%s10566_s14 + $0x3b8] sm:$0xff]  ;;  %v3060_v11 = vld [vmem:[%s10566_s14 + $0x550] sm:$0xff] }
 0x783   :  { %v6077_v43 = vpack.c.bf16 %v3061_v20, %v3058_v37  ;;  %v6079_v59 = vpack.c.bf16 %v3068_v57, %v3065_v29  ;;  %v3012_v20 = vld [vmem:[%s10566_s14 + $0x3d0] sm:$0xff]  ;;  %v3015_v29 = vld [vmem:[%s10566_s14 + $0x3e8] sm:$0xff]  ;;  %v3069_v57 = vld [vmem:[%s10566_s14 + $0x598] sm:$0xff] }
 0x784   :  { %6058 = vmatpush1.bf16.msra.mxu1 %v6057_v10  ;;  %v2982_v10 = vld [vmem:[%s10566_s14 + $0x2e0] sm:$0xff] }
 0x785   :  { %6060 = vmatprep.subr.bf16.mxu1 %v6059_v39  ;;  %6098 = vmatpush3.bf16.msra.mxu0 %v6097_v6  ;;  %v2985_v39 = vld [vmem:[%s10566_s14 + $0x2f8] sm:$0xff]  ;;  %v3067_v6 = vld [vmem:[%s10566_s14 + $0x588] sm:$0xff] }
 0x786   :  { %6100 = vmatprep.subr.bf16.mxu0 %v6099_v9  ;;  %v6117_v9 = vpack.c.bf16 %v2931_v60, %v2928_v5  ;;  %v6119_v12 = vpack.c.bf16 %v2985_v39, %v2982_v10  ;;  %v6081_v46 = vpack.c.bf16 %v3067_v6, %v3064_v44  ;;  %v3018_v60 = vld [vmem:[%s10566_s14 + $0x400] sm:$0xff]  ;;  %v3021_v10 = vld [vmem:[%s10566_s14 + $0x418] sm:$0xff]  ;;  %v3072_v39 = vld [vmem:[%s10566_s14 + $0x5b0] sm:$0xff] }
 0x787   :  { %v3024_v6 = vld [vmem:[%s10566_s14 + $0x430] sm:$0xff] }
 0x788   :  { %6062 = vmatpush1.bf16.msra.mxu1 %v6061_v21  ;;  %v3036_v21 = vld [vmem:[%s10566_s14 + $0x490] sm:$0xff] }
 0x789   :  { %6064 = vmatprep.subr.bf16.mxu1 %v6063_v55  ;;  %6102 = vmatpush3.bf16.msra.mxu0 %v6101_v2  ;;  %v3039_v55 = vld [vmem:[%s10566_s14 + $0x4a8] sm:$0xff]  ;;  %v3073_v2 = vld [vmem:[%s10566_s14 + $0x5b8] sm:$0xff] }
 0x78a   :  { %6104 = vmatprep.subr.bf16.mxu0 %v6103_v38  ;;  %v6121_v38 = vpack.c.bf16 %v2937_v19, %v2934_v31  ;;  %v6123_v13 = vpack.c.bf16 %v3039_v55, %v3036_v21  ;;  %v6085_v17 = vpack.c.bf16 %v3073_v2, %v3070_v32  ;;  %v3030_v19 = vld [vmem:[%s10566_s14 + $0x460] sm:$0xff]  ;;  %v3033_v21 = vld [vmem:[%s10566_s14 + $0x478] sm:$0xff] }
 0x78b   :  { %v6153_v55 = vpack.c.bf16 %v3033_v21, %v3030_v19 }
 0x78c   :  { %6066 = vmatpush1.bf16.msra.mxu1 %v6065_v45  ;;  %v3042_v45 = vld [vmem:[%s10566_s14 + $0x4c0] sm:$0xff] }
 0x78d   :  { %6068 = vmatprep.subr.bf16.mxu1 %v6067_v42  ;;  %6106 = vmatpush3.bf16.msra.mxu0 %v6105_v28  ;;  %v3045_v42 = vld [vmem:[%s10566_s14 + $0x4d8] sm:$0xff]  ;;  %v3076_v28 = vld [vmem:[%s10566_s14 + $0x5d0] sm:$0xff] }
 0x78e   :  { %6108 = vmatprep.subr.bf16.mxu0 %v6107_v56  ;;  %v6125_v56 = vpack.c.bf16 %v2991_v30, %v2988_v53  ;;  %v6127_v14 = vpack.c.bf16 %v3045_v42, %v3042_v45  ;;  %v6089_v8 = vpack.c.bf16 %v3079_v47, %v3076_v28  ;;  %v3366_v30 = vld [vmem:[%s10567_s16] sm:$0xff] }
 0x790   :  { %6070 = vmatpush1.bf16.msra.mxu1 %v6069_v34  ;;  %v3048_v34 = vld [vmem:[%s10566_s14 + $0x4f0] sm:$0xff] }
 0x791   :  { %6072 = vmatprep.subr.bf16.mxu1 %v6071_v3  ;;  %6110 = vmatpush3.bf16.msra.mxu0 %v6109_v16  ;;  %v3051_v3 = vld [vmem:[%s10566_s14 + $0x508] sm:$0xff]  ;;  %v3000_v16 = vld [vmem:[%s10566_s14 + $0x370] sm:$0xff] }
 0x792   :  { %6112 = vmatprep.subr.bf16.mxu0 %v6111_v51  ;;  %v6131_v61 = vpack.c.bf16 %v3051_v3, %v3048_v34  ;;  %v3054_v51 = vld [vmem:[%s10566_s14 + $0x520] sm:$0xff] }
 0x794   :  { %6074 = vmatpush1.bf16.msra.mxu1 %v6073_v15  ;;  %v3063_v15 = vld [vmem:[%s10566_s14 + $0x568] sm:$0xff] }
 0x795   :  { %6076 = vmatprep.subr.bf16.mxu1 %v6075_v54  ;;  %6114 = vmatpush3.bf16.msra.mxu0 %v6113_v7  ;;  %v6137_v54 = vpack.c.bf16 %v3009_v58, %v3006_v27  ;;  %v6139_v37 = vpack.c.bf16 %v3063_v15, %v3060_v11  ;;  %v3066_v7 = vld [vmem:[%s10566_s14 + $0x580] sm:$0xff] }
 0x796   :  { %6116 = vmatprep.subr.bf16.mxu0 %v6115_v35  ;;  %v6141_v35 = vpack.c.bf16 %v3015_v29, %v3012_v20  ;;  %v6143_v5 = vpack.c.bf16 %v3069_v57, %v3066_v7  ;;  %v4195_v20 = vld [vmem:[%s10569_s20 + $0x20] sm:$0xff]  ;;  %v4200_v29 = vld [vmem:[%s10569_s20 + $0x48] sm:$0xff] }
 0x797   :  { %v4204_v7 = vld [vmem:[%s10569_s20 + $0x68] sm:$0xff]  ;;  %v9319_v57 = vld [vmem:[%s10570_s18] sm:$0xf] }
 0x798   :  { %6078 = vmatpush1.bf16.msra.mxu1 %v6077_v43  ;;  %v3075_v43 = vld [vmem:[%s10566_s14 + $0x5c8] sm:$0xff] }
 0x799   :  { %6080 = vmatprep.subr.bf16.mxu1 %v6079_v59  ;;  %6118 = vmatpush3.bf16.msra.mxu0 %v6117_v9  ;;  %v6145_v59 = vpack.c.bf16 %v3021_v10, %v3018_v60  ;;  %v6147_v44 = vpack.c.bf16 %v3075_v43, %v3072_v39  ;;  %v3078_v9 = vld [vmem:[%s10566_s14 + $0x5e0] sm:$0xff]  ;;  %v6646_v60 = vmov 0.0|0.0   ;;  %v6173_v10 = vpack.c.bf16 %v4204_v7, %v4200_v29  ;;  %v4256_v29 = vld [vmem:[%s10569_s20 + $0x208] sm:$0xff] }
 0x79a   :  { %6120 = vmatprep.subr.bf16.mxu0 %v6119_v12  ;;  %v6149_v12 = vpack.c.bf16 %v3027_v63, %v3024_v6  ;;  %v6151_v31 = vpack.c.bf16 %v3081_v25, %v3078_v9  ;;  %v4199_v39 = vld [vmem:[%s10569_s20 + $0x40] sm:$0xff]  ;;  %v4260_v7 = vld [vmem:[%s10569_s20 + $0x228] sm:$0xff] }
 0x79b   :  { %v4203_v43 = vld [vmem:[%s10569_s20 + $0x60] sm:$0xff] }
 0x79c   :  { %6082 = vmatpush1.bf16.msra.mxu1 %v6081_v46  ;;  %v9168_v18 = vpop.f32.mrb[6].mxu1  ;;  %v6175_v6 = vpack.c.bf16 %v4203_v43, %v4199_v39  ;;  %v4207_v9 = vld [vmem:[%s10569_s20 + $0x80] sm:$0xff]  ;;  %v4210_v39 = vld [vmem:[%s10569_s20 + $0x98] sm:$0xff] }
 0x79d   :  { %6084 = vmatprep.subr.bf16.mxu1 %v6083_v48  ;;  %6122 = vmatpush3.bf16.msra.mxu0 %v6121_v38  ;;  %v9176_v26 = vpop.f32.mrb[7].mxu1  ;;  %v4211_v25 = vld [vmem:[%s10569_s20 + $0xa0] sm:$0xff] }
 0x79e   :  { %6124 = vmatprep.subr.bf16.mxu0 %v6123_v13  ;;  %v6179_v19 = vpack.c.bf16 %v4211_v25, %v4207_v9  ;;  %v4264_v9 = vld [vmem:[%s10569_s20 + $0x248] sm:$0xff] }
 0x79f   :  { %v4268_v25 = vld [vmem:[%s10569_s20 + $0x268] sm:$0xff] }
 0x7a0   :  { %6086 = vmatpush1.bf16.msra.mxu1 %v6085_v17  ;;  %3289 = vmatmul.mubr.f32.vlgmr.msra.gmra.mrb[10].mxu0 %v8217_v4  ;;  %v3057_v4 = vld [vmem:[%s10566_s14 + $0x538] sm:$0xff] }
 0x7a1   :  { %6088 = vmatprep.subr.bf16.mxu1 %v6087_v62  ;;  %6126 = vmatpush3.bf16.msra.mxu0 %v6125_v56  ;;  %v6135_v1 = vpack.c.bf16 %v3057_v4, %v3054_v51  ;;  %v3367_v56 = vld [vmem:[%s10567_s16 + $0x8] sm:$0xff] }
 0x7a2   :  { %3358 = vmatprep.mubr.f32.mxu0 %v8252_v40  ;;  %6128 = vmatprep.subr.bf16.mxu0 %v6127_v14  ;;  %v6133_v40 = vpack.c.bf16 %v3003_v52, %v3000_v16  ;;  %v3364_v14 = vld [vmem:[%s10568_s15] sm:$0xff] }
 0x7a4   :  { %6090 = vmatpush1.bf16.msra.mxu1 %v6089_v8 }
 0x7a5   :  { %6130 = vmatpush3.bf16.msra.mxu0 %v6129_v41 }
 0x7a6   :  { %6132 = vmatprep.subr.bf16.mxu0 %v6131_v61 }
 0x7a7   :  { %3218 = vmatmul.mubr.f32.vlgmr.msra.gmra.mrb[12].mxu1 %v8219_v33 }
 0x7a8   :  { %5637 = vmatprep.mubr.msk.f32.mxu1 %vm305_vm2, %v3366_v30 }
 0x7a9   :  { %6134 = vmatpush3.bf16.msra.mxu0 %v6133_v40  ;;  %v4192_v40 = vld [vmem:[%s10569_s20 + $0x8] sm:$0xff] }
 0x7aa   :  { %6136 = vmatprep.subr.bf16.mxu0 %v6135_v1  ;;  %v4196_v1 = vld [vmem:[%s10569_s20 + $0x28] sm:$0xff] }
 0x7ad   :  { %6138 = vmatpush3.bf16.msra.mxu0 %v6137_v54  ;;  %v6169_v54 = vpack.c.bf16 %v4196_v1, %v4192_v40  ;;  %v4193_v1 = vld [vmem:[%s10569_s20 + $0x10] sm:$0xff] }
 0x7ae   :  { %6140 = vmatprep.subr.bf16.mxu0 %v6139_v37  ;;  %v4191_v37 = vld [vmem:[%s10569_s20] sm:$0xff] }
 0x7b1   :  { %6142 = vmatpush3.bf16.msra.mxu0 %v6141_v35  ;;  %v9324_v35 = vld [vmem:[%s10571_s17] sm:$0xf] }
 0x7b2   :  { %6144 = vmatprep.subr.bf16.mxu0 %v6143_v5  ;;  %v6171_v5 = vpack.c.bf16 %v4195_v20, %v4191_v37  ;;  %v4247_v37 = vld [vmem:[%s10569_s20 + $0x1c0] sm:$0xff] }
 0x7b3   :  { %v4251_v20 = vld [vmem:[%s10569_s20 + $0x1e0] sm:$0xff] }
 0x7b4   :  { %v6199_v43 = vpack.c.bf16 %v4251_v20, %v4247_v37  ;;  %v4246_v20 = vld [vmem:[%s10569_s20 + $0x1b8] sm:$0xff] }
 0x7b5   :  { %6146 = vmatpush3.bf16.msra.mxu0 %v6145_v59  ;;  %v4208_v59 = vld [vmem:[%s10569_s20 + $0x88] sm:$0xff] }
 0x7b6   :  { %6148 = vmatprep.subr.bf16.mxu0 %v6147_v44  ;;  %v4212_v44 = vld [vmem:[%s10569_s20 + $0xa8] sm:$0xff] }
 0x7b7   :  { %v6177_v63 = vpack.c.bf16 %v4212_v44, %v4208_v59  ;;  %v4214_v59 = vld [vmem:[%s10569_s20 + $0xb8] sm:$0xff]  ;;  %v6201_v44 = vpack.c.bf16 %v4260_v7, %v4256_v29  ;;  %v4287_v7 = vld [vmem:[%s10569_s20 + $0x300] sm:$0xff] }
 0x7b9   :  { %6150 = vmatpush3.bf16.msra.mxu0 %v6149_v12  ;;  %v4216_v12 = vld [vmem:[%s10569_s20 + $0xc8] sm:$0xff] }
 0x7ba   :  { %6152 = vmatprep.subr.bf16.mxu0 %v6151_v31  ;;  %v4220_v31 = vld [vmem:[%s10569_s20 + $0xe8] sm:$0xff] }
 0x7bb   :  { %v6181_v21 = vpack.c.bf16 %v4220_v31, %v4216_v12  ;;  %v6273_v31 = vpack.c.bf16 %v4214_v59, %v4210_v39  ;;  %v4245_v59 = vld [vmem:[%s10569_s20 + $0x1b0] sm:$0xff] }
 0x7bd   :  { %6154 = vmatpush3.bf16.msra.mxu0 %v6153_v55  ;;  %v4215_v55 = vld [vmem:[%s10569_s20 + $0xc0] sm:$0xff] }
 0x7c0   :  { %3359 = vmatmul.mubr.f32.vlgmr.msra.gmra.mrb[12].mxu0 %v8219_v33 }
 0x7c1   :  { %3447 = vmatprep.mubr.f32.mxu0 %v6632_v36 }
 0x7d2   :  { %v9261_v46 = vpop.f32.mrb[6].mxu0 }
 0x7d3   :  { %v9263_v48 = vpop.f32.mrb[7].mxu0 }
 0x7da   :  { %v5505_v32 = vpop.f32.mrb[8].mxu1 }
 0x7db   :  { %v5506_v2 = vpop.f32.mrb[9].mxu1 }
 0x7dc   :  { %v5507_v50 = vadd.f32 %v5506_v2, %v5505_v32  ;;  %v4219_v32 = vld [vmem:[%s10569_s20 + $0xe0] sm:$0xff]  ;;  %v4224_v2 = vld [vmem:[%s10569_s20 + $0x108] sm:$0xff] }
 0x7fa   :  { %v5540_v38 = vpop.f32.mrb[10].mxu1 }
 0x7fb   :  { %v5541_v49 = vpop.f32.mrb[11].mxu1 }
 0x7fc   :  { %v5542_v13 = vadd.f32 %v5541_v49, %v5540_v38  ;;  %v6183_v38 = vpack.c.bf16 %v4219_v32, %v4215_v55  ;;  %v4222_v32 = vld [vmem:[%s10569_s20 + $0xf8] sm:$0xff] }
 0x7fe   :  { %v2887_v53 = vadd.f32 %v5542_v13, %v5507_v50  ;;  %v4228_v50 = vld [vmem:[%s10569_s20 + $0x128] sm:$0xff]  ;;  %v4223_v13 = vld [vmem:[%s10569_s20 + $0x100] sm:$0xff] }
 0x7ff   :  { %v6185_v49 = vpack.c.bf16 %v4228_v50, %v4224_v2  ;;  %v6205_v2 = vpack.c.bf16 %v4268_v25, %v4264_v9  ;;  %v4263_v50 = vld [vmem:[%s10569_s20 + $0x240] sm:$0xff] }
 0x800   :  { %v4295_v25 = vld [vmem:[%s10569_s20 + $0x340] sm:$0xff] }
 0x853   :  { %v2745_v33 = vpop.f32.mrb[8].mxu0 }
 0x854   :  { %v2747_v45 = vpop.f32.mrb[9].mxu0 }
 0x873   :  { %v5575_v42 = vpop.f32.mrb[10].mxu0 }
 0x874   :  { %v5576_v17 = vpop.f32.mrb[11].mxu0 }
 0x875   :  { %v5577_v62 = vadd.f32 %v5576_v17, %v5575_v42  ;;  %v4231_v17 = vld [vmem:[%s10569_s20 + $0x140] sm:$0xff] }
 0x87a   :  { %v3219_v28 = vpop.f32.mrb[12].mxu1 }
 0x87b   :  { %v3221_v47 = vpop.f32.mrb[13].mxu1 }
 0x87c   :  { %5371 = vmatprep.subr.msk.mxu0 %vm309_vm1, %v3221_v47  ;;  %v4240_v47 = vld [vmem:[%s10569_s20 + $0x188] sm:$0xff] }
 0x87d   :  { %5372 = vmatpush1.msk.msra.mxu0 %vm309_vm1, %v3219_v28 }
 0x87e   :  { %5373 = vmatmul.mubr.msk.f32.vlgmr.msra.gmra.mrb[14].mxu0 %vm305_vm2, %v3366_v30  ;;  %5378 = vmatprep.subr.msk.mxu0 %vm309_vm1, %v2747_v45  ;;  %v4232_v30 = vld [vmem:[%s10569_s20 + $0x148] sm:$0xff] }
 0x87f   :  { %5379 = vmatpush1.msk.msra.mxu0 %vm309_vm1, %v2745_v33  ;;  %3453 = vmatprep.mubr.f32.mxu0 %v6632_v36  ;;  %v4236_v33 = vld [vmem:[%s10569_s20 + $0x168] sm:$0xff] }
 0x880   :  { %v6189_v42 = vpack.c.bf16 %v4236_v33, %v4232_v30  ;;  %v4217_v33 = vld [vmem:[%s10569_s20 + $0xd0] sm:$0xff] }
 0x882   :  { %5374 = vmatmul.mubr.msk.f32.gmra.mrb[16].mxu0 %vm305_vm2, %v3367_v56 }
 0x883   :  { %3614 = vmatprep.mubr.f32.mxu0 %v6632_v36 }
 0x886   :  { %5380 = vmatmul.mubr.msk.f32.vlgmr.msra.gmra.mrb[14].mxu0 %vm305_vm2, %v3364_v14 }
 0x887   :  { %3620 = vmatprep.mubr.f32.mxu0 %v6632_v36 }
 0x88a   :  { %5381 = vmatmul.mubr.msk.f32.gmra.mrb[16].mxu0 %vm305_vm2, %v3365_v24 }
 0x88b   :  { %3922 = vmatprep.mubr.f32.mxu0 %v6632_v36 }
 0x893   :  { %v5610_v0 = vpop.f32.mrb[12].mxu0 }
 0x894   :  { %v5611_v34 = vpop.f32.mrb[13].mxu0 }
 0x895   :  { %v5612_v3 = vadd.f32 %v5611_v34, %v5610_v0 }
 0x897   :  { %v3361_v8 = vadd.f32 %v5612_v3, %v5577_v62  ;;  %v4235_v62 = vld [vmem:[%s10569_s20 + $0x160] sm:$0xff]  ;;  %v4194_v3 = vld [vmem:[%s10569_s20 + $0x18] sm:$0xff] }
 0x898   :  { %v6191_v34 = vpack.c.bf16 %v4235_v62, %v4231_v17  ;;  %v4230_v62 = vld [vmem:[%s10569_s20 + $0x138] sm:$0xff] }
 0x899   :  { %5635 = vmatprep.subr.msk.mxu1 %vm309_vm1, %v3361_v8 }
 0x89a   :  { %5636 = vmatpush3.msk.msra.mxu1 %vm309_vm1, %v3361_v8 }
 0x89b   :  { %5638 = vmatmul.mubr.msk.f32.vlgmr.msra.gmra.mrb[14].mxu1 %vm305_vm2, %v3367_v56  ;;  %5640 = vmatprep.subr.msk.mxu1 %vm309_vm1, %v2887_v53  ;;  %v4244_v56 = vld [vmem:[%s10569_s20 + $0x1a8] sm:$0xff] }
 0x89c   :  { %5641 = vmatpush3.msk.msra.mxu1 %vm309_vm1, %v2887_v53  ;;  %5642 = vmatprep.mubr.msk.f32.mxu1 %vm305_vm2, %v3364_v14  ;;  %v4227_v53 = vld [vmem:[%s10569_s20 + $0x120] sm:$0xff]  ;;  %v6193_v8 = vpack.c.bf16 %v4244_v56, %v4240_v47 }
 0x89d   :  { %v6187_v45 = vpack.c.bf16 %v4227_v53, %v4223_v13  ;;  %v4276_v13 = vld [vmem:[%s10569_s20 + $0x2a8] sm:$0xff]  ;;  %v4271_v47 = vld [vmem:[%s10569_s20 + $0x280] sm:$0xff] }
 0x89e   :  { %v4275_v56 = vld [vmem:[%s10569_s20 + $0x2a0] sm:$0xff] }
 0x8a3   :  { %5643 = vmatmul.mubr.msk.f32.vlgmr.msra.gmra.mrb[14].mxu1 %vm305_vm2, %v3365_v24 }
 0x8a4   :  { %3777 = vmatprep.mubr.f32.mxu1 %v6632_v36 }
 0x959   :  { %v3616_v41 = vpop.f32.mrb[14].mxu0 }
 0x95a   :  { %v3618_v61 = vpop.f32.mrb[15].mxu0  ;;  %v3702_v52 = vmax.f32 %v3616_v41, 0.0 }
 0x95b   :  { %v3703_v27 = vmax.f32 %v3618_v61, 0.0  ;;  %v4198_v61 = vld [vmem:[%s10569_s20 + $0x38] sm:$0xff] }
 0x95c   :  { %v6265_v40 = vpack.c.bf16 %v4198_v61, %v4194_v3  ;;  %v4225_v3 = vld [vmem:[%s10569_s20 + $0x110] sm:$0xff]  ;;  %v6211_v61 = vpack.c.bf16 %v4275_v56, %v4271_v47  ;;  %v4266_v47 = vld [vmem:[%s10569_s20 + $0x258] sm:$0xff] }
 0x95d   :  { %v3622_v16 = vpop.f32.mrb[16].mxu0  ;;  %v4270_v56 = vld [vmem:[%s10569_s20 + $0x278] sm:$0xff] }
 0x95e   :  { %v3705_v51 = vmax.f32 %v3622_v16, 0.0  ;;  %v3624_v4 = vpop.f32.mrb[17].mxu0  ;;  %v4239_v16 = vld [vmem:[%s10569_s20 + $0x180] sm:$0xff] }
 0x95f   :  { %v3706_v58 = vmax.f32 %v3624_v4, 0.0  ;;  %v4252_v4 = vld [vmem:[%s10569_s20 + $0x1e8] sm:$0xff] }
 0x960   :  { %v6157_v11 = vpack.c.bf16 %v3705_v51, %v3702_v52  ;;  %v4243_v52 = vld [vmem:[%s10569_s20 + $0x1a0] sm:$0xff]  ;;  %v4248_v51 = vld [vmem:[%s10569_s20 + $0x1c8] sm:$0xff] }
 0x961   :  { %v6155_v15 = vpack.c.bf16 %v3706_v58, %v3703_v27  ;;  %v4197_v27 = vld [vmem:[%s10569_s20 + $0x30] sm:$0xff]  ;;  %v4202_v58 = vld [vmem:[%s10569_s20 + $0x58] sm:$0xff] }
 0x963   :  { %6156 = vmatprep.subr.bf16.mxu1 %v6155_v15  ;;  %6163 = vmatprep.subr.bf16.mxu0 %v6155_v15  ;;  %v4206_v15 = vld [vmem:[%s10569_s20 + $0x78] sm:$0xff] }
 0x964   :  { %6158 = vmatpush1.bf16.msra.mxu1 %v6157_v11  ;;  %6165 = vmatpush1.bf16.msra.mxu0 %v6157_v11  ;;  %v6195_v11 = vpack.c.bf16 %v4243_v52, %v4239_v16  ;;  %v4238_v16 = vld [vmem:[%s10569_s20 + $0x178] sm:$0xff] }
 0x965   :  { %6159 = vmatprep.subr.bf16.mxu1 %v6646_v60  ;;  %6170 = vmatprep.subr.bf16.mxu0 %v6169_v54  ;;  %v6197_v54 = vpack.c.bf16 %v4252_v4, %v4248_v51  ;;  %v4279_v51 = vld [vmem:[%s10569_s20 + $0x2c0] sm:$0xff] }
 0x966   :  { %v4283_v4 = vld [vmem:[%s10569_s20 + $0x2e0] sm:$0xff] }
 0x967   :  { %5387 = vmatmul.mubr.msk.f32.vlgmr.msra.gmra.mrb[18].mxu0 %vm3709_vm6, %v9319_v57  ;;  %5385 = vmatmul.mubr.msk.f32.vlgmr.msra.gmra.mrb[16].mxu1 %vm3709_vm6, %v9324_v35  ;;  %v6215_v37 = vpack.c.bf16 %v4283_v4, %v4279_v51  ;;  %v4277_v51 = vld [vmem:[%s10569_s20 + $0x2b0] sm:$0xff]  ;;  %v4282_v4 = vld [vmem:[%s10569_s20 + $0x2d8] sm:$0xff] }
 0x968   :  { %5649 = vmatprep.mubr.msk.f32.mxu1 %vm6633_vm0, %v6632_v36  ;;  %6172 = vmatpush1.bf16.msra.mxu0 %v6171_v5  ;;  %v6267_v5 = vpack.c.bf16 %v4197_v27, %v4193_v1  ;;  %v4292_v1 = vld [vmem:[%s10569_s20 + $0x328] sm:$0xff] }
 0x969   :  { %6174 = vmatprep.subr.bf16.mxu0 %v6173_v10  ;;  %v4201_v10 = vld [vmem:[%s10569_s20 + $0x50] sm:$0xff] }
 0x96c   :  { %6176 = vmatpush1.bf16.msra.mxu0 %v6175_v6  ;;  %v4255_v6 = vld [vmem:[%s10569_s20 + $0x200] sm:$0xff] }
 0x96d   :  { %6178 = vmatprep.subr.bf16.mxu0 %v6177_v63  ;;  %v4259_v63 = vld [vmem:[%s10569_s20 + $0x220] sm:$0xff] }
 0x96e   :  { %v6203_v55 = vpack.c.bf16 %v4259_v63, %v4255_v6  ;;  %v4254_v63 = vld [vmem:[%s10569_s20 + $0x1f8] sm:$0xff] }
 0x970   :  { %6180 = vmatpush1.bf16.msra.mxu0 %v6179_v19  ;;  %v4209_v19 = vld [vmem:[%s10569_s20 + $0x90] sm:$0xff] }
 0x971   :  { %6182 = vmatprep.subr.bf16.mxu0 %v6181_v21  ;;  %v4218_v21 = vld [vmem:[%s10569_s20 + $0xd8] sm:$0xff] }
 0x972   :  { %v6277_v30 = vpack.c.bf16 %v4222_v32, %v4218_v21  ;;  %v4253_v32 = vld [vmem:[%s10569_s20 + $0x1f0] sm:$0xff] }
 0x974   :  { %6184 = vmatpush1.bf16.msra.mxu0 %v6183_v38  ;;  %v4267_v38 = vld [vmem:[%s10569_s20 + $0x260] sm:$0xff] }
 0x975   :  { %6186 = vmatprep.subr.bf16.mxu0 %v6185_v49  ;;  %v4272_v49 = vld [vmem:[%s10569_s20 + $0x288] sm:$0xff]  ;;  %v6207_v17 = vpack.c.bf16 %v4267_v38, %v4263_v50  ;;  %v4262_v38 = vld [vmem:[%s10569_s20 + $0x238] sm:$0xff] }
 0x976   :  { %v5644_v28 = vpop.f32.mrb[14].mxu1 }
 0x977   :  { %v3707_v14 = vmax.f32 %v5644_v28, 0.0  ;;  %v3693_v24 = vpop.f32.mrb[15].mxu1  ;;  %v6209_v28 = vpack.c.bf16 %v4276_v13, %v4272_v49  ;;  %v4303_v13 = vld [vmem:[%s10569_s20 + $0x380] sm:$0xff] }
 0x978   :  { %v3704_v0 = vmax.f32 %v3693_v24, 0.0  ;;  %6188 = vmatpush1.bf16.msra.mxu0 %v6187_v45  ;;  %v4221_v45 = vld [vmem:[%s10569_s20 + $0xf0] sm:$0xff]  ;;  %v4284_v24 = vld [vmem:[%s10569_s20 + $0x2e8] sm:$0xff] }
 0x979   :  { %6190 = vmatprep.subr.bf16.mxu0 %v6189_v42  ;;  %v4226_v42 = vld [vmem:[%s10569_s20 + $0x118] sm:$0xff] }
 0x97a   :  { %v6160_v41 = vpack.c.bf16 %v3707_v14, %v3704_v0  ;;  %v4280_v14 = vld [vmem:[%s10569_s20 + $0x2c8] sm:$0xff]  ;;  %v6279_v0 = vpack.c.bf16 %v4221_v45, %v4217_v33 }
 0x97b   :  { %v6213_v52 = vpack.c.bf16 %v4284_v24, %v4280_v14  ;;  %v4316_v33 = vld [vmem:[%s10569_s20 + $0x3e8] sm:$0xff] }
 0x97c   :  { %6161 = vmatpush3.bf16.msra.mxu1 %v6160_v41  ;;  %6192 = vmatpush1.bf16.msra.mxu0 %v6191_v34  ;;  %v6281_v34 = vpack.c.bf16 %v4230_v62, %v4226_v42  ;;  %v4261_v62 = vld [vmem:[%s10569_s20 + $0x230] sm:$0xff] }
 0x97d   :  { %6166 = vmatprep.subr.bf16.mxu1 %v6646_v60  ;;  %6194 = vmatprep.subr.bf16.mxu0 %v6193_v8  ;;  %v6269_v60 = vpack.c.bf16 %v4206_v15, %v4202_v58  ;;  %v4229_v8 = vld [vmem:[%s10569_s20 + $0x130] sm:$0xff] }
 0x97e   :  { %v6283_v27 = vpack.c.bf16 %v4229_v8, %v4225_v3  ;;  %v4237_v15 = vld [vmem:[%s10569_s20 + $0x170] sm:$0xff]  ;;  %v4274_v8 = vld [vmem:[%s10569_s20 + $0x298] sm:$0xff] }
 0x97f   :  { %5650 = vmatmul.mubr.msk.f32.vlgmr.msra.gmra.mrb[18].mxu1 %vm3709_vm6, %v9324_v35  ;;  %v4205_v35 = vld [vmem:[%s10569_s20 + $0x70] sm:$0xff] }
 0x980   :  { %6168 = vmatpush3.bf16.msra.mxu1 %v6160_v41  ;;  %5656 = vmatprep.mubr.msk.f32.mxu1 %vm6633_vm0, %v6632_v36  ;;  %v6271_v12 = vpack.c.bf16 %v4205_v35, %v4201_v10  ;;  %v4234_v41 = vld [vmem:[%s10569_s20 + $0x158] sm:$0xff]  ;;  %v4300_v10 = vld [vmem:[%s10569_s20 + $0x368] sm:$0xff]  ;;  %v4269_v3 = vld [vmem:[%s10569_s20 + $0x270] sm:$0xff] }
 0x981   :  { %6266 = vmatprep.subr.bf16.mxu1 %v6265_v40  ;;  %6196 = vmatpush1.bf16.msra.mxu0 %v6195_v11  ;;  %v4288_v40 = vld [vmem:[%s10569_s20 + $0x308] sm:$0xff]  ;;  %v6285_v58 = vpack.c.bf16 %v4238_v16, %v4234_v41  ;;  %v4233_v11 = vld [vmem:[%s10569_s20 + $0x150] sm:$0xff]  ;;  %v4278_v41 = vld [vmem:[%s10569_s20 + $0x2b8] sm:$0xff] }
 0x982   :  { %6198 = vmatprep.subr.bf16.mxu0 %v6197_v54  ;;  %v4242_v54 = vld [vmem:[%s10569_s20 + $0x198] sm:$0xff]  ;;  %v6217_v29 = vpack.c.bf16 %v4292_v1, %v4288_v40  ;;  %v6287_v35 = vpack.c.bf16 %v4237_v15, %v4233_v11  ;;  %v6305_v16 = vpack.c.bf16 %v4278_v41, %v4274_v8  ;;  %v4285_v11 = vld [vmem:[%s10569_s20 + $0x2f0] sm:$0xff]  ;;  %v4327_v8 = vld [vmem:[%s10569_s20 + $0x440] sm:$0xff] }
 0x983   :  { %5657 = vmatmul.mubr.msk.f32.vlgmr.msra.gmra.mrb[20].mxu1 %vm3709_vm6, %v9319_v57  ;;  %v4213_v57 = vld [vmem:[%s10569_s20 + $0xb0] sm:$0xff]  ;;  %v6289_v39 = vpack.c.bf16 %v4246_v20, %v4242_v54  ;;  %v4286_v40 = vld [vmem:[%s10569_s20 + $0x2f8] sm:$0xff]  ;;  %v4331_v41 = vld [vmem:[%s10569_s20 + $0x460] sm:$0xff] }
 0x984   :  { %6268 = vmatpush1.bf16.msra.mxu1 %v6267_v5  ;;  %v6275_v53 = vpack.c.bf16 %v4213_v57, %v4209_v19  ;;  %v4291_v5 = vld [vmem:[%s10569_s20 + $0x320] sm:$0xff]  ;;  %v4308_v19 = vld [vmem:[%s10569_s20 + $0x3a8] sm:$0xff]  ;;  %v4290_v15 = vld [vmem:[%s10569_s20 + $0x318] sm:$0xff] }
 0x985   :  { %6270 = vmatprep.subr.bf16.mxu1 %v6269_v60  ;;  %6200 = vmatpush1.bf16.msra.mxu0 %v6199_v43  ;;  %v4296_v60 = vld [vmem:[%s10569_s20 + $0x348] sm:$0xff]  ;;  %v4241_v43 = vld [vmem:[%s10569_s20 + $0x190] sm:$0xff]  ;;  %v6219_v6 = vpack.c.bf16 %v4291_v5, %v4287_v7  ;;  %v4294_v54 = vld [vmem:[%s10569_s20 + $0x338] sm:$0xff] }
 0x986   :  { %6202 = vmatprep.subr.bf16.mxu0 %v6201_v44  ;;  %v4250_v44 = vld [vmem:[%s10569_s20 + $0x1d8] sm:$0xff]  ;;  %v6221_v9 = vpack.c.bf16 %v4300_v10, %v4296_v60  ;;  %v6291_v57 = vpack.c.bf16 %v4245_v59, %v4241_v43  ;;  %v6313_v20 = vpack.c.bf16 %v4294_v54, %v4290_v15  ;;  %v4293_v7 = vld [vmem:[%s10569_s20 + $0x330] sm:$0xff]  ;;  %v6239_v54 = vpack.c.bf16 %v4331_v41, %v4327_v8  ;;  %v4368_v8 = vld [vmem:[%s10569_s20 + $0x588] sm:$0xff] }
 0x987   :  { %v6293_v21 = vpack.c.bf16 %v4254_v63, %v4250_v44  ;;  %v4298_v5 = vld [vmem:[%s10569_s20 + $0x358] sm:$0xff]  ;;  %v4301_v43 = vld [vmem:[%s10569_s20 + $0x370] sm:$0xff]  ;;  %v4372_v41 = vld [vmem:[%s10569_s20 + $0x5a8] sm:$0xff] }
 0x988   :  { %6272 = vmatpush1.bf16.msra.mxu1 %v6271_v12  ;;  %v4299_v12 = vld [vmem:[%s10569_s20 + $0x360] sm:$0xff]  ;;  %v4302_v60 = vld [vmem:[%s10569_s20 + $0x378] sm:$0xff] }
 0x989   :  { %6274 = vmatprep.subr.bf16.mxu1 %v6273_v31  ;;  %6204 = vmatpush1.bf16.msra.mxu0 %v6203_v55  ;;  %v4304_v31 = vld [vmem:[%s10569_s20 + $0x388] sm:$0xff]  ;;  %v4249_v55 = vld [vmem:[%s10569_s20 + $0x1d0] sm:$0xff]  ;;  %v6223_v50 = vpack.c.bf16 %v4299_v12, %v4295_v25  ;;  %v4306_v59 = vld [vmem:[%s10569_s20 + $0x398] sm:$0xff] }
 0x98a   :  { %6206 = vmatprep.subr.bf16.mxu0 %v6205_v2  ;;  %v4258_v2 = vld [vmem:[%s10569_s20 + $0x218] sm:$0xff]  ;;  %v6225_v49 = vpack.c.bf16 %v4308_v19, %v4304_v31  ;;  %v6295_v45 = vpack.c.bf16 %v4253_v32, %v4249_v55  ;;  %v4309_v25 = vld [vmem:[%s10569_s20 + $0x3b0] sm:$0xff]  ;;  %v4315_v55 = vld [vmem:[%s10569_s20 + $0x3e0] sm:$0xff] }
 0x98b   :  { %v6297_v42 = vpack.c.bf16 %v4262_v38, %v4258_v2  ;;  %v4310_v44 = vld [vmem:[%s10569_s20 + $0x3b8] sm:$0xff]  ;;  %v4313_v32 = vld [vmem:[%s10569_s20 + $0x3d0] sm:$0xff] }
 0x98c   :  { %6276 = vmatpush1.bf16.msra.mxu1 %v6275_v53  ;;  %v4307_v53 = vld [vmem:[%s10569_s20 + $0x3a0] sm:$0xff]  ;;  %v6321_v63 = vpack.c.bf16 %v4310_v44, %v4306_v59  ;;  %v4314_v12 = vld [vmem:[%s10569_s20 + $0x3d8] sm:$0xff] }
 0x98d   :  { %6278 = vmatprep.subr.bf16.mxu1 %v6277_v30  ;;  %6208 = vmatpush1.bf16.msra.mxu0 %v6207_v17  ;;  %v4312_v30 = vld [vmem:[%s10569_s20 + $0x3c8] sm:$0xff]  ;;  %v4257_v17 = vld [vmem:[%s10569_s20 + $0x210] sm:$0xff]  ;;  %v4318_v31 = vld [vmem:[%s10569_s20 + $0x3f8] sm:$0xff] }
 0x98e   :  { %6210 = vmatprep.subr.bf16.mxu0 %v6209_v28  ;;  %v6227_v28 = vpack.c.bf16 %v4307_v53, %v4303_v13  ;;  %v6229_v14 = vpack.c.bf16 %v4316_v33, %v4312_v30  ;;  %v6299_v24 = vpack.c.bf16 %v4261_v62, %v4257_v17  ;;  %v4324_v13 = vld [vmem:[%s10569_s20 + $0x428] sm:$0xff]  ;;  %v4322_v53 = vld [vmem:[%s10569_s20 + $0x418] sm:$0xff]  ;;  %v4323_v17 = vld [vmem:[%s10569_s20 + $0x420] sm:$0xff] }
 0x98f   :  { %v4326_v33 = vld [vmem:[%s10569_s20 + $0x438] sm:$0xff]  ;;  %v4321_v62 = vld [vmem:[%s10569_s20 + $0x410] sm:$0xff] }
 0x990   :  { %6280 = vmatpush1.bf16.msra.mxu1 %v6279_v0  ;;  %v6301_v0 = vpack.c.bf16 %v4270_v56, %v4266_v47  ;;  %v4328_v47 = vld [vmem:[%s10569_s20 + $0x448] sm:$0xff]  ;;  %v4342_v15 = vld [vmem:[%s10569_s20 + $0x4b8] sm:$0xff] }
 0x991   :  { %6282 = vmatprep.subr.bf16.mxu1 %v6281_v34  ;;  %6212 = vmatpush1.bf16.msra.mxu0 %v6211_v61  ;;  %v4265_v34 = vld [vmem:[%s10569_s20 + $0x250] sm:$0xff]  ;;  %v4332_v56 = vld [vmem:[%s10569_s20 + $0x468] sm:$0xff]  ;;  %v4350_v59 = vld [vmem:[%s10569_s20 + $0x4f8] sm:$0xff] }
 0x992   :  { %6214 = vmatprep.subr.bf16.mxu0 %v6213_v52  ;;  %v6303_v61 = vpack.c.bf16 %v4269_v3, %v4265_v34  ;;  %v4273_v52 = vld [vmem:[%s10569_s20 + $0x290] sm:$0xff] }
 0x993   :  { %v6307_v1 = vpack.c.bf16 %v4277_v51, %v4273_v52  ;;  %v6237_v52 = vpack.c.bf16 %v4332_v56, %v4328_v47  ;;  %v4359_v56 = vld [vmem:[%s10569_s20 + $0x540] sm:$0xff] }
 0x994   :  { %6284 = vmatpush1.bf16.msra.mxu1 %v6283_v27  ;;  %v6309_v27 = vpack.c.bf16 %v4286_v40, %v4282_v4  ;;  %v4329_v4 = vld [vmem:[%s10569_s20 + $0x450] sm:$0xff] }
 0x995   :  { %6286 = vmatprep.subr.bf16.mxu1 %v6285_v58  ;;  %6216 = vmatpush1.bf16.msra.mxu0 %v6215_v37  ;;  %v4281_v58 = vld [vmem:[%s10569_s20 + $0x2d0] sm:$0xff] }
 0x996   :  { %6218 = vmatprep.subr.bf16.mxu0 %v6217_v29  ;;  %v6311_v37 = vpack.c.bf16 %v4285_v11, %v4281_v58  ;;  %v4289_v29 = vld [vmem:[%s10569_s20 + $0x310] sm:$0xff]  ;;  %v4340_v58 = vld [vmem:[%s10569_s20 + $0x4a8] sm:$0xff]  ;;  %v4338_v11 = vld [vmem:[%s10569_s20 + $0x498] sm:$0xff] }
 0x997   :  { %v6315_v10 = vpack.c.bf16 %v4293_v7, %v4289_v29  ;;  %v4333_v40 = vld [vmem:[%s10569_s20 + $0x470] sm:$0xff]  ;;  %v4339_v29 = vld [vmem:[%s10569_s20 + $0x4a0] sm:$0xff] }
 0x998   :  { %6288 = vmatpush1.bf16.msra.mxu1 %v6287_v35  ;;  %v6317_v35 = vpack.c.bf16 %v4302_v60, %v4298_v5  ;;  %v6337_v5 = vpack.c.bf16 %v4342_v15, %v4338_v11  ;;  %v4337_v60 = vld [vmem:[%s10569_s20 + $0x490] sm:$0xff] }
 0x999   :  { %6290 = vmatprep.subr.bf16.mxu1 %v6289_v39  ;;  %6220 = vmatpush1.bf16.msra.mxu0 %v6219_v6  ;;  %v4297_v39 = vld [vmem:[%s10569_s20 + $0x350] sm:$0xff] }
 0x99a   :  { %6222 = vmatprep.subr.bf16.mxu0 %v6221_v9  ;;  %v6319_v6 = vpack.c.bf16 %v4301_v43, %v4297_v39  ;;  %v4305_v9 = vld [vmem:[%s10569_s20 + $0x390] sm:$0xff]  ;;  %v4348_v39 = vld [vmem:[%s10569_s20 + $0x4e8] sm:$0xff]  ;;  %v4346_v43 = vld [vmem:[%s10569_s20 + $0x4d8] sm:$0xff] }
 0x99b   :  { %v6323_v19 = vpack.c.bf16 %v4309_v25, %v4305_v9  ;;  %v4347_v9 = vld [vmem:[%s10569_s20 + $0x4e0] sm:$0xff]  ;;  %v4369_v15 = vld [vmem:[%s10569_s20 + $0x590] sm:$0xff] }
 0x99c   :  { %6292 = vmatpush1.bf16.msra.mxu1 %v6291_v57  ;;  %v6325_v57 = vpack.c.bf16 %v4318_v31, %v4314_v12  ;;  %v6341_v12 = vpack.c.bf16 %v4350_v59, %v4346_v43  ;;  %v4345_v31 = vld [vmem:[%s10569_s20 + $0x4d0] sm:$0xff] }
 0x99d   :  { %6294 = vmatprep.subr.bf16.mxu1 %v6293_v21  ;;  %6224 = vmatpush1.bf16.msra.mxu0 %v6223_v50  ;;  %v4311_v21 = vld [vmem:[%s10569_s20 + $0x3c0] sm:$0xff]  ;;  %v4317_v50 = vld [vmem:[%s10569_s20 + $0x3f0] sm:$0xff] }
 0x99e   :  { %6226 = vmatprep.subr.bf16.mxu0 %v6225_v49  ;;  %v6231_v2 = vpack.c.bf16 %v4315_v55, %v4311_v21  ;;  %v6327_v38 = vpack.c.bf16 %v4317_v50, %v4313_v32  ;;  %v4320_v49 = vld [vmem:[%s10569_s20 + $0x408] sm:$0xff]  ;;  %v4354_v55 = vld [vmem:[%s10569_s20 + $0x518] sm:$0xff] }
 0x99f   :  { %v6233_v30 = vpack.c.bf16 %v4324_v13, %v4320_v49  ;;  %v4356_v21 = vld [vmem:[%s10569_s20 + $0x528] sm:$0xff]  ;;  %v4358_v32 = vld [vmem:[%s10569_s20 + $0x538] sm:$0xff]  ;;  %v4355_v49 = vld [vmem:[%s10569_s20 + $0x520] sm:$0xff] }
 0x9a0   :  { %6296 = vmatpush1.bf16.msra.mxu1 %v6295_v45  ;;  %v6329_v45 = vpack.c.bf16 %v4326_v33, %v4322_v53  ;;  %v6345_v53 = vpack.c.bf16 %v4358_v32, %v4354_v55  ;;  %v4357_v33 = vld [vmem:[%s10569_s20 + $0x530] sm:$0xff]  ;;  %v3999_v55 = vld [vmem:[%s10572_s19] sm:$0xff] }
 0x9a1   :  { %6298 = vmatprep.subr.bf16.mxu1 %v6297_v42  ;;  %6228 = vmatpush1.bf16.msra.mxu0 %v6227_v28  ;;  %v4319_v42 = vld [vmem:[%s10569_s20 + $0x400] sm:$0xff]  ;;  %v4325_v28 = vld [vmem:[%s10569_s20 + $0x430] sm:$0xff] }
 0x9a2   :  { %6230 = vmatprep.subr.bf16.mxu0 %v6229_v14  ;;  %v4330_v14 = vld [vmem:[%s10569_s20 + $0x458] sm:$0xff]  ;;  %v6235_v34 = vpack.c.bf16 %v4323_v17, %v4319_v42  ;;  %v6331_v3 = vpack.c.bf16 %v4325_v28, %v4321_v62  ;;  %v4364_v42 = vld [vmem:[%s10569_s20 + $0x568] sm:$0xff] }
 0x9a3   :  { %v4362_v17 = vld [vmem:[%s10569_s20 + $0x558] sm:$0xff] }
 0x9a4   :  { %6300 = vmatpush1.bf16.msra.mxu1 %v6299_v24  ;;  %v4334_v24 = vld [vmem:[%s10569_s20 + $0x478] sm:$0xff] }
 0x9a5   :  { %6302 = vmatprep.subr.bf16.mxu1 %v6301_v0  ;;  %6232 = vmatpush1.bf16.msra.mxu0 %v6231_v2  ;;  %v6333_v51 = vpack.c.bf16 %v4334_v24, %v4330_v14  ;;  %v4366_v62 = vld [vmem:[%s10569_s20 + $0x578] sm:$0xff]  ;;  %v4363_v14 = vld [vmem:[%s10569_s20 + $0x560] sm:$0xff] }
 0x9a6   :  { %6234 = vmatprep.subr.bf16.mxu0 %v6233_v30  ;;  %v4353_v30 = vld [vmem:[%s10569_s20 + $0x510] sm:$0xff] }
 0x9a7   :  { %v6347_v47 = vpack.c.bf16 %v4357_v33, %v4353_v30  ;;  %v4012_v30 = vld [vmem:[%s10572_s19 + $0x68] sm:$0xff]  ;;  %v4010_v33 = vld [vmem:[%s10572_s19 + $0x58] sm:$0xff] }
 0x9a8   :  { %6304 = vmatpush1.bf16.msra.mxu1 %v6303_v61 }
 0x9a9   :  { %6306 = vmatprep.subr.bf16.mxu1 %v6305_v16 }
 0x9ac   :  { %6308 = vmatpush1.bf16.msra.mxu1 %v6307_v1  ;;  %v4336_v1 = vld [vmem:[%s10569_s20 + $0x488] sm:$0xff] }
 0x9ad   :  { %6310 = vmatprep.subr.bf16.mxu1 %v6309_v27  ;;  %v6241_v7 = vpack.c.bf16 %v4340_v58, %v4336_v1  ;;  %v4371_v1 = vld [vmem:[%s10569_s20 + $0x5a0] sm:$0xff]  ;;  %v6257_v58 = vpack.c.bf16 %v4372_v41, %v4368_v8  ;;  %v4022_v8 = vld [vmem:[%s10572_s19 + $0xb8] sm:$0xff] }
 0x9b0   :  { %6312 = vmatpush1.bf16.msra.mxu1 %v6311_v37  ;;  %v6335_v37 = vpack.c.bf16 %v4333_v40, %v4329_v4  ;;  %v4367_v40 = vld [vmem:[%s10569_s20 + $0x580] sm:$0xff] }
 0x9b1   :  { %6314 = vmatprep.subr.bf16.mxu1 %v6313_v20  ;;  %v4335_v20 = vld [vmem:[%s10569_s20 + $0x480] sm:$0xff] }
 0x9b2   :  { %v6243_v44 = vpack.c.bf16 %v4339_v29, %v4335_v20  ;;  %v4380_v20 = vld [vmem:[%s10569_s20 + $0x5e8] sm:$0xff]  ;;  %v4378_v29 = vld [vmem:[%s10569_s20 + $0x5d8] sm:$0xff] }
 0x9b4   :  { %6316 = vmatpush1.bf16.msra.mxu1 %v6315_v10  ;;  %v4341_v10 = vld [vmem:[%s10569_s20 + $0x4b0] sm:$0xff] }
 0x9b5   :  { %6318 = vmatprep.subr.bf16.mxu1 %v6317_v35  ;;  %v4344_v35 = vld [vmem:[%s10569_s20 + $0x4c8] sm:$0xff] }
 0x9b6   :  { %v6245_v25 = vpack.c.bf16 %v4348_v39, %v4344_v35  ;;  %v4375_v35 = vld [vmem:[%s10569_s20 + $0x5c0] sm:$0xff] }
 0x9b7   :  { %v4379_v39 = vld [vmem:[%s10569_s20 + $0x5e0] sm:$0xff] }
 0x9b8   :  { %6320 = vmatpush1.bf16.msra.mxu1 %v6319_v6  ;;  %v6339_v6 = vpack.c.bf16 %v4341_v10, %v4337_v60 }
 0x9b9   :  { %6322 = vmatprep.subr.bf16.mxu1 %v6321_v63  ;;  %v4343_v63 = vld [vmem:[%s10569_s20 + $0x4c0] sm:$0xff] }
 0x9ba   :  { %v6247_v2 = vpack.c.bf16 %v4347_v9, %v4343_v63  ;;  %v4381_v63 = vld [vmem:[%s10569_s20 + $0x5f0] sm:$0xff]  ;;  %v4000_v9 = vld [vmem:[%s10572_s19 + $0x8] sm:$0xff] }
 0x9bc   :  { %6324 = vmatpush1.bf16.msra.mxu1 %v6323_v19  ;;  %v4349_v19 = vld [vmem:[%s10569_s20 + $0x4f0] sm:$0xff] }
 0x9bd   :  { %6326 = vmatprep.subr.bf16.mxu1 %v6325_v57  ;;  %v4352_v57 = vld [vmem:[%s10569_s20 + $0x508] sm:$0xff]  ;;  %v6343_v50 = vpack.c.bf16 %v4349_v19, %v4345_v31  ;;  %v4006_v31 = vld [vmem:[%s10572_s19 + $0x38] sm:$0xff]  ;;  %v6263_v19 = vpack.c.bf16 %v4379_v39, %v4375_v35  ;;  %v4025_v35 = vld [vmem:[%s10572_s19 + $0xd0] sm:$0xff] }
 0x9be   :  { %v6249_v13 = vpack.c.bf16 %v4356_v21, %v4352_v57  ;;  %v4029_v39 = vld [vmem:[%s10572_s19 + $0xf0] sm:$0xff] }
 0x9c0   :  { %6328 = vmatpush1.bf16.msra.mxu1 %v6327_v38  ;;  %v4351_v38 = vld [vmem:[%s10569_s20 + $0x500] sm:$0xff] }
 0x9c1   :  { %6330 = vmatprep.subr.bf16.mxu1 %v6329_v45  ;;  %v4360_v45 = vld [vmem:[%s10569_s20 + $0x548] sm:$0xff]  ;;  %v6251_v28 = vpack.c.bf16 %v4355_v49, %v4351_v38  ;;  %v4003_v38 = vld [vmem:[%s10572_s19 + $0x20] sm:$0xff]  ;;  %v4001_v49 = vld [vmem:[%s10572_s19 + $0x10] sm:$0xff] }
 0x9c2   :  { %v6253_v24 = vpack.c.bf16 %v4364_v42, %v4360_v45  ;;  %v4014_v45 = vld [vmem:[%s10572_s19 + $0x78] sm:$0xff]  ;;  %v6363_v42 = vpack.c.bf16 %v4003_v38, %v3999_v55  ;;  %v4040_v55 = vld [vmem:[%s10572_s19 + $0x148] sm:$0xff] }
 0xa3a   :  { %v3924_v0 = vpop.f32.mrb[18].mxu0  ;;  %v9746_v61 = vpop.f32.mrb[16].mxu1 }
 0xa3b   :  { %v3926_v16 = vpop.f32.mrb[19].mxu0  ;;  %v9757_v27 = vpop.f32.mrb[17].mxu1 }
 0xa3c   :  { %4447 = vmatprep.mubr.f32.mxu0 %v3926_v16  ;;  %4589 = vmatprep.mubr.f32.mxu1 %v3926_v16  ;;  %v4370_v16 = vld [vmem:[%s10569_s20 + $0x598] sm:$0xff] }
 0xa3d   :  { %4448 = vmatmul.mubr.f32.vlgmr.msra.gmra.mrb[20].mxu0 %v3924_v0  ;;  %4590 = vmatmul.mubr.f32.vlgmr.msra.gmra.mrb[22].mxu1 %v3924_v0  ;;  %v6349_v0 = vpack.c.bf16 %v4366_v62, %v4362_v17  ;;  %v4007_v62 = vld [vmem:[%s10572_s19 + $0x40] sm:$0xff] }
 0xa3e   :  { %6236 = vmatpush1.bf16.msra.mxu0 %v6235_v34  ;;  %6332 = vmatpush1.bf16.msra.mxu1 %v6331_v3  ;;  %v4361_v34 = vld [vmem:[%s10569_s20 + $0x550] sm:$0xff] }
 0xa3f   :  { %6238 = vmatprep.subr.bf16.mxu0 %v6237_v52  ;;  %6334 = vmatprep.subr.bf16.mxu1 %v6333_v51  ;;  %v4365_v3 = vld [vmem:[%s10569_s20 + $0x570] sm:$0xff]  ;;  %v4374_v52 = vld [vmem:[%s10569_s20 + $0x5b8] sm:$0xff]  ;;  %v6255_v51 = vpack.c.bf16 %v4363_v14, %v4359_v56  ;;  %v4016_v14 = vld [vmem:[%s10572_s19 + $0x88] sm:$0xff] }
 0xa40   :  { %4518 = vmatprep.mubr.f32.mxu0 %v6632_v36  ;;  %4660 = vmatprep.mubr.f32.mxu1 %v6632_v36  ;;  %v6351_v4 = vpack.c.bf16 %v4365_v3, %v4361_v34  ;;  %v6353_v11 = vpack.c.bf16 %v4374_v52, %v4370_v16  ;;  %v4013_v56 = vld [vmem:[%s10572_s19 + $0x70] sm:$0xff]  ;;  %v4020_v34 = vld [vmem:[%s10572_s19 + $0xa8] sm:$0xff]  ;;  %v4018_v3 = vld [vmem:[%s10572_s19 + $0x98] sm:$0xff] }
 0xa41   :  { %v4015_v52 = vld [vmem:[%s10572_s19 + $0x80] sm:$0xff] }
 0xa42   :  { %6240 = vmatpush1.bf16.msra.mxu0 %v6239_v54  ;;  %6336 = vmatpush1.bf16.msra.mxu1 %v6335_v37  ;;  %v4373_v54 = vld [vmem:[%s10569_s20 + $0x5b0] sm:$0xff]  ;;  %v4376_v37 = vld [vmem:[%s10569_s20 + $0x5c8] sm:$0xff] }
 0xa43   :  { %6242 = vmatprep.subr.bf16.mxu0 %v6241_v7  ;;  %6338 = vmatprep.subr.bf16.mxu1 %v6337_v5  ;;  %v4382_v7 = vld [vmem:[%s10569_s20 + $0x5f8] sm:$0xff]  ;;  %v6259_v5 = vpack.c.bf16 %v4371_v1, %v4367_v40  ;;  %v6355_v60 = vpack.c.bf16 %v4373_v54, %v4369_v15  ;;  %v6261_v43 = vpack.c.bf16 %v4380_v20, %v4376_v37  ;;  %v4017_v1 = vld [vmem:[%s10572_s19 + $0x90] sm:$0xff] }
 0xa44   :  { %v6357_v59 = vpack.c.bf16 %v4382_v7, %v4378_v29  ;;  %v6465_v40 = vpack.c.bf16 %v4022_v8, %v4018_v3  ;;  %v4026_v15 = vld [vmem:[%s10572_s19 + $0xd8] sm:$0xff]  ;;  %v4023_v29 = vld [vmem:[%s10572_s19 + $0xc0] sm:$0xff]  ;;  %v4049_v8 = vld [vmem:[%s10572_s19 + $0x190] sm:$0xff] }
 0xa45   :  { %v4030_v54 = vld [vmem:[%s10572_s19 + $0xf8] sm:$0xff]  ;;  %v4027_v7 = vld [vmem:[%s10572_s19 + $0xe0] sm:$0xff] }
 0xa46   :  { %6244 = vmatpush1.bf16.msra.mxu0 %v6243_v44  ;;  %6340 = vmatpush1.bf16.msra.mxu1 %v6339_v6  ;;  %v4377_v6 = vld [vmem:[%s10569_s20 + $0x5d0] sm:$0xff] }
 0xa47   :  { %6246 = vmatprep.subr.bf16.mxu0 %v6245_v25  ;;  %6342 = vmatprep.subr.bf16.mxu1 %v6341_v12  ;;  %v4004_v25 = vld [vmem:[%s10572_s19 + $0x28] sm:$0xff]  ;;  %v4002_v12 = vld [vmem:[%s10572_s19 + $0x18] sm:$0xff]  ;;  %v6359_v57 = vpack.c.bf16 %v4381_v63, %v4377_v6  ;;  %v6375_v63 = vpack.c.bf16 %v4027_v7, %v4023_v29 }
 0xa48   :  { %v6361_v32 = vpack.c.bf16 %v4004_v25, %v4000_v9  ;;  %v4038_v6 = vld [vmem:[%s10572_s19 + $0x138] sm:$0xff]  ;;  %v6471_v9 = vpack.c.bf16 %v4029_v39, %v4025_v35  ;;  %v4031_v25 = vld [vmem:[%s10572_s19 + $0x100] sm:$0xff]  ;;  %v4068_v29 = vld [vmem:[%s10572_s19 + $0x228] sm:$0xff] }
 0xa49   :  { %v4066_v7 = vld [vmem:[%s10572_s19 + $0x218] sm:$0xff]  ;;  %v4063_v39 = vld [vmem:[%s10572_s19 + $0x200] sm:$0xff] }
 0xa4a   :  { %6248 = vmatpush1.bf16.msra.mxu0 %v6247_v2  ;;  %6344 = vmatpush1.bf16.msra.mxu1 %v6343_v50  ;;  %v6457_v2 = vpack.c.bf16 %v4006_v31, %v4002_v12  ;;  %v4035_v12 = vld [vmem:[%s10572_s19 + $0x120] sm:$0xff] }
 0xa4b   :  { %6250 = vmatprep.subr.bf16.mxu0 %v6249_v13  ;;  %6346 = vmatprep.subr.bf16.mxu1 %v6345_v53  ;;  %v4005_v13 = vld [vmem:[%s10572_s19 + $0x30] sm:$0xff]  ;;  %v4008_v53 = vld [vmem:[%s10572_s19 + $0x48] sm:$0xff]  ;;  %v6379_v38 = vpack.c.bf16 %v4035_v12, %v4031_v25  ;;  %v4074_v12 = vld [vmem:[%s10572_s19 + $0x258] sm:$0xff] }
 0xa4c   :  { %v6459_v17 = vpack.c.bf16 %v4005_v13, %v4001_v49  ;;  %v4039_v13 = vld [vmem:[%s10572_s19 + $0x140] sm:$0xff]  ;;  %v4076_v25 = vld [vmem:[%s10572_s19 + $0x268] sm:$0xff] }
 0xa4e   :  { %6252 = vmatpush1.bf16.msra.mxu0 %v6251_v28  ;;  %6348 = vmatpush1.bf16.msra.mxu1 %v6347_v47  ;;  %v4011_v28 = vld [vmem:[%s10572_s19 + $0x60] sm:$0xff]  ;;  %v4009_v47 = vld [vmem:[%s10572_s19 + $0x50] sm:$0xff] }
 0xa4f   :  { %6254 = vmatprep.subr.bf16.mxu0 %v6253_v24  ;;  %6350 = vmatprep.subr.bf16.mxu1 %v6349_v0  ;;  %v6365_v24 = vpack.c.bf16 %v4012_v30, %v4008_v53  ;;  %v6461_v0 = vpack.c.bf16 %v4014_v45, %v4010_v33  ;;  %v6367_v41 = vpack.c.bf16 %v4011_v28, %v4007_v62  ;;  %v4043_v53 = vld [vmem:[%s10572_s19 + $0x160] sm:$0xff]  ;;  %v4041_v45 = vld [vmem:[%s10572_s19 + $0x150] sm:$0xff]  ;;  %v4052_v62 = vld [vmem:[%s10572_s19 + $0x1a8] sm:$0xff] }
 0xa50   :  { %v6463_v16 = vpack.c.bf16 %v4013_v56, %v4009_v47  ;;  %v4050_v28 = vld [vmem:[%s10572_s19 + $0x198] sm:$0xff]  ;;  %v6383_v56 = vpack.c.bf16 %v4043_v53, %v4039_v13  ;;  %v4084_v13 = vld [vmem:[%s10572_s19 + $0x2a8] sm:$0xff] }
 0xa51   :  { %v4054_v47 = vld [vmem:[%s10572_s19 + $0x1b8] sm:$0xff] }
 0xa52   :  { %6256 = vmatpush1.bf16.msra.mxu0 %v6255_v51  ;;  %6352 = vmatpush1.bf16.msra.mxu1 %v6351_v4  ;;  %v9890_v10 = vpop.f32.mrb[18].mxu1  ;;  %v4019_v51 = vld [vmem:[%s10572_s19 + $0xa0] sm:$0xff]  ;;  %v6369_v4 = vpack.c.bf16 %v4020_v34, %v4016_v14  ;;  %v6481_v3 = vpack.c.bf16 %v4054_v47, %v4050_v28  ;;  %v4082_v53 = vld [vmem:[%s10572_s19 + $0x298] sm:$0xff]  ;;  %v4081_v47 = vld [vmem:[%s10572_s19 + $0x290] sm:$0xff] }
 0xa53   :  { %6258 = vmatprep.subr.bf16.mxu0 %v6257_v58  ;;  %6354 = vmatprep.subr.bf16.mxu1 %v6353_v11  ;;  %v5651_v44 = vpop.f32.mrb[19].mxu1  ;;  %v4021_v58 = vld [vmem:[%s10572_s19 + $0xb0] sm:$0xff]  ;;  %v4024_v11 = vld [vmem:[%s10572_s19 + $0xc8] sm:$0xff]  ;;  %v6371_v37 = vpack.c.bf16 %v4019_v51, %v4015_v52  ;;  %v4058_v51 = vld [vmem:[%s10572_s19 + $0x1d8] sm:$0xff] }
 0xa54   :  { %v6467_v20 = vpack.c.bf16 %v4021_v58, %v4017_v1  ;;  %v4034_v44 = vld [vmem:[%s10572_s19 + $0x118] sm:$0xff]  ;;  %v4060_v52 = vld [vmem:[%s10572_s19 + $0x1e8] sm:$0xff]  ;;  %v4055_v58 = vld [vmem:[%s10572_s19 + $0x1c0] sm:$0xff] }
 0xa56   :  { %6260 = vmatpush1.bf16.msra.mxu0 %v6259_v5  ;;  %6356 = vmatpush1.bf16.msra.mxu1 %v6355_v60  ;;  %v3995_v21 = vpop.f32.mrb[20].mxu1  ;;  %v6469_v60 = vpack.c.bf16 %v4030_v54, %v4026_v15  ;;  %v4057_v54 = vld [vmem:[%s10572_s19 + $0x1d0] sm:$0xff] }
 0xa57   :  { %6262 = vmatprep.subr.bf16.mxu0 %v6261_v43  ;;  %6358 = vmatprep.subr.bf16.mxu1 %v6357_v59  ;;  %v5658_v50 = vpop.f32.mrb[21].mxu1  ;;  %v4032_v43 = vld [vmem:[%s10572_s19 + $0x108] sm:$0xff] }
 0xa58   :  { %v4036_v59 = vld [vmem:[%s10572_s19 + $0x128] sm:$0xff]  ;;  %v4046_v50 = vld [vmem:[%s10572_s19 + $0x178] sm:$0xff] }
 0xa59   :  { %v6377_v31 = vpack.c.bf16 %v4036_v59, %v4032_v43  ;;  %v4067_v43 = vld [vmem:[%s10572_s19 + $0x220] sm:$0xff] }
 0xa5a   :  { %6264 = vmatpush1.bf16.msra.mxu0 %v6263_v19  ;;  %6360 = vmatpush1.bf16.msra.mxu1 %v6359_v57  ;;  %v6473_v19 = vpack.c.bf16 %v4038_v6, %v4034_v44  ;;  %v4033_v57 = vld [vmem:[%s10572_s19 + $0x110] sm:$0xff] }
 0xa5b   :  { %6362 = vmatprep.subr.bf16.mxu0 %v6361_v32  ;;  %6458 = vmatprep.subr.bf16.mxu1 %v6457_v2  ;;  %v4044_v32 = vld [vmem:[%s10572_s19 + $0x168] sm:$0xff]  ;;  %v4042_v2 = vld [vmem:[%s10572_s19 + $0x158] sm:$0xff]  ;;  %v4065_v6 = vld [vmem:[%s10572_s19 + $0x210] sm:$0xff] }
 0xa5c   :  { %v6381_v30 = vpack.c.bf16 %v4044_v32, %v4040_v55  ;;  %v6477_v33 = vpack.c.bf16 %v4046_v50, %v4042_v2  ;;  %v4075_v55 = vld [vmem:[%s10572_s19 + $0x260] sm:$0xff]  ;;  %v4073_v50 = vld [vmem:[%s10572_s19 + $0x250] sm:$0xff] }
 0xa5d   :  { %4519 = vmatmul.mubr.f32.vlgmr.msra.gmra.mrb[20].mxu0 %v3995_v21  ;;  %4661 = vmatmul.mubr.f32.vlgmr.msra.gmra.mrb[22].mxu1 %v3995_v21  ;;  %v4037_v21 = vld [vmem:[%s10572_s19 + $0x130] sm:$0xff] }
 0xa5e   :  { %6364 = vmatpush1.bf16.msra.mxu0 %v6363_v42  ;;  %6460 = vmatpush1.bf16.msra.mxu1 %v6459_v17  ;;  %v6475_v49 = vpack.c.bf16 %v4037_v21, %v4033_v57  ;;  %v4045_v42 = vld [vmem:[%s10572_s19 + $0x170] sm:$0xff]  ;;  %v4048_v17 = vld [vmem:[%s10572_s19 + $0x188] sm:$0xff]  ;;  %v4071_v21 = vld [vmem:[%s10572_s19 + $0x240] sm:$0xff] }
 0xa5f   :  { %4731 = vmatprep.mubr.f32.mxu0 %v9757_v27  ;;  %4873 = vmatprep.mubr.f32.mxu1 %v9757_v27  ;;  %v4028_v27 = vld [vmem:[%s10572_s19 + $0xe8] sm:$0xff]  ;;  %v6479_v14 = vpack.c.bf16 %v4045_v42, %v4041_v45  ;;  %v6385_v34 = vpack.c.bf16 %v4052_v62, %v4048_v17  ;;  %v4079_v42 = vld [vmem:[%s10572_s19 + $0x280] sm:$0xff] }
 0xa60   :  { %6366 = vmatprep.subr.bf16.mxu0 %v6365_v24  ;;  %6462 = vmatprep.subr.bf16.mxu1 %v6461_v0  ;;  %v6373_v5 = vpack.c.bf16 %v4028_v27, %v4024_v11  ;;  %v4047_v24 = vld [vmem:[%s10572_s19 + $0x180] sm:$0xff] }
 0xa61   :  { %v4051_v0 = vld [vmem:[%s10572_s19 + $0x1a0] sm:$0xff] }
 0xa62   :  { %6368 = vmatpush1.bf16.msra.mxu0 %v6367_v41  ;;  %6464 = vmatpush1.bf16.msra.mxu1 %v6463_v16  ;;  %v4053_v41 = vld [vmem:[%s10572_s19 + $0x1b0] sm:$0xff]  ;;  %v4056_v16 = vld [vmem:[%s10572_s19 + $0x1c8] sm:$0xff]  ;;  %v4059_v11 = vld [vmem:[%s10572_s19 + $0x1e0] sm:$0xff] }
 0xa63   :  { %6370 = vmatprep.subr.bf16.mxu0 %v6369_v4  ;;  %6466 = vmatprep.subr.bf16.mxu1 %v6465_v40  ;;  %v4062_v4 = vld [vmem:[%s10572_s19 + $0x1f8] sm:$0xff]  ;;  %v6387_v40 = vpack.c.bf16 %v4051_v0, %v4047_v24  ;;  %v6483_v1 = vpack.c.bf16 %v4053_v41, %v4049_v8  ;;  %v6389_v27 = vpack.c.bf16 %v4060_v52, %v4056_v16  ;;  %v4083_v17 = vld [vmem:[%s10572_s19 + $0x2a0] sm:$0xff]  ;;  %v4092_v24 = vld [vmem:[%s10572_s19 + $0x2e8] sm:$0xff] }
 0xa64   :  { %v6485_v15 = vpack.c.bf16 %v4062_v4, %v4058_v51  ;;  %v4090_v0 = vld [vmem:[%s10572_s19 + $0x2d8] sm:$0xff]  ;;  %v4087_v41 = vld [vmem:[%s10572_s19 + $0x2c0] sm:$0xff]  ;;  %v4089_v4 = vld [vmem:[%s10572_s19 + $0x2d0] sm:$0xff] }
 0xa65   :  { %v4091_v16 = vld [vmem:[%s10572_s19 + $0x2e0] sm:$0xff] }
 0xa66   :  { %6372 = vmatpush1.bf16.msra.mxu0 %v6371_v37  ;;  %6468 = vmatpush1.bf16.msra.mxu1 %v6467_v20  ;;  %v4061_v37 = vld [vmem:[%s10572_s19 + $0x1f0] sm:$0xff]  ;;  %v4064_v20 = vld [vmem:[%s10572_s19 + $0x208] sm:$0xff] }
 0xa67   :  { %6374 = vmatprep.subr.bf16.mxu0 %v6373_v5  ;;  %6470 = vmatprep.subr.bf16.mxu1 %v6469_v60  ;;  %v4070_v5 = vld [vmem:[%s10572_s19 + $0x238] sm:$0xff]  ;;  %v6391_v60 = vpack.c.bf16 %v4059_v11, %v4055_v58  ;;  %v6487_v35 = vpack.c.bf16 %v4061_v37, %v4057_v54  ;;  %v6393_v59 = vpack.c.bf16 %v4068_v29, %v4064_v20  ;;  %v4100_v58 = vld [vmem:[%s10572_s19 + $0x328] sm:$0xff]  ;;  %v4095_v37 = vld [vmem:[%s10572_s19 + $0x300] sm:$0xff] }
 0xa68   :  { %v6489_v44 = vpack.c.bf16 %v4070_v5, %v4066_v7  ;;  %v4098_v11 = vld [vmem:[%s10572_s19 + $0x318] sm:$0xff]  ;;  %v4099_v20 = vld [vmem:[%s10572_s19 + $0x320] sm:$0xff]  ;;  %v4097_v5 = vld [vmem:[%s10572_s19 + $0x310] sm:$0xff] }
 0xa6a   :  { %6376 = vmatpush1.bf16.msra.mxu0 %v6375_v63  ;;  %6472 = vmatpush1.bf16.msra.mxu1 %v6471_v9  ;;  %v4069_v63 = vld [vmem:[%s10572_s19 + $0x230] sm:$0xff]  ;;  %v4072_v9 = vld [vmem:[%s10572_s19 + $0x248] sm:$0xff] }
 0xa6b   :  { %6378 = vmatprep.subr.bf16.mxu0 %v6377_v31  ;;  %6474 = vmatprep.subr.bf16.mxu1 %v6473_v19  ;;  %v4078_v31 = vld [vmem:[%s10572_s19 + $0x278] sm:$0xff]  ;;  %v6395_v19 = vpack.c.bf16 %v4067_v43, %v4063_v39  ;;  %v6491_v57 = vpack.c.bf16 %v4069_v63, %v4065_v6  ;;  %v6397_v32 = vpack.c.bf16 %v4076_v25, %v4072_v9  ;;  %v4108_v39 = vld [vmem:[%s10572_s19 + $0x368] sm:$0xff]  ;;  %v4103_v63 = vld [vmem:[%s10572_s19 + $0x340] sm:$0xff] }
 0xa6c   :  { %v6493_v2 = vpack.c.bf16 %v4078_v31, %v4074_v12  ;;  %v4106_v43 = vld [vmem:[%s10572_s19 + $0x358] sm:$0xff]  ;;  %v4107_v9 = vld [vmem:[%s10572_s19 + $0x360] sm:$0xff]  ;;  %v4105_v31 = vld [vmem:[%s10572_s19 + $0x350] sm:$0xff] }
 0xa6e   :  { %6380 = vmatpush1.bf16.msra.mxu0 %v6379_v38  ;;  %6476 = vmatpush1.bf16.msra.mxu1 %v6475_v49  ;;  %v4077_v38 = vld [vmem:[%s10572_s19 + $0x270] sm:$0xff]  ;;  %v4080_v49 = vld [vmem:[%s10572_s19 + $0x288] sm:$0xff] }
 0xa6f   :  { %6382 = vmatprep.subr.bf16.mxu0 %v6381_v30  ;;  %6478 = vmatprep.subr.bf16.mxu1 %v6477_v33  ;;  %v4086_v30 = vld [vmem:[%s10572_s19 + $0x2b8] sm:$0xff]  ;;  %v6399_v33 = vpack.c.bf16 %v4075_v55, %v4071_v21  ;;  %v6495_v45 = vpack.c.bf16 %v4077_v38, %v4073_v50  ;;  %v6401_v62 = vpack.c.bf16 %v4084_v13, %v4080_v49  ;;  %v4116_v21 = vld [vmem:[%s10572_s19 + $0x3a8] sm:$0xff]  ;;  %v4111_v38 = vld [vmem:[%s10572_s19 + $0x380] sm:$0xff] }
 0xa70   :  { %v6497_v28 = vpack.c.bf16 %v4086_v30, %v4082_v53  ;;  %v4114_v55 = vld [vmem:[%s10572_s19 + $0x398] sm:$0xff]  ;;  %v4115_v49 = vld [vmem:[%s10572_s19 + $0x3a0] sm:$0xff]  ;;  %v4113_v30 = vld [vmem:[%s10572_s19 + $0x390] sm:$0xff] }
 0xa72   :  { %6384 = vmatpush1.bf16.msra.mxu0 %v6383_v56  ;;  %6480 = vmatpush1.bf16.msra.mxu1 %v6479_v14  ;;  %v4085_v56 = vld [vmem:[%s10572_s19 + $0x2b0] sm:$0xff]  ;;  %v4088_v14 = vld [vmem:[%s10572_s19 + $0x2c8] sm:$0xff] }
 0xa73   :  { %6386 = vmatprep.subr.bf16.mxu0 %v6385_v34  ;;  %6482 = vmatprep.subr.bf16.mxu1 %v6481_v3  ;;  %v4094_v34 = vld [vmem:[%s10572_s19 + $0x2f8] sm:$0xff]  ;;  %v6403_v3 = vpack.c.bf16 %v4083_v17, %v4079_v42  ;;  %v6499_v8 = vpack.c.bf16 %v4085_v56, %v4081_v47  ;;  %v6405_v52 = vpack.c.bf16 %v4092_v24, %v4088_v14  ;;  %v4124_v42 = vld [vmem:[%s10572_s19 + $0x3e8] sm:$0xff]  ;;  %v4119_v56 = vld [vmem:[%s10572_s19 + $0x3c0] sm:$0xff] }
 0xa74   :  { %v6501_v51 = vpack.c.bf16 %v4094_v34, %v4090_v0  ;;  %v4122_v17 = vld [vmem:[%s10572_s19 + $0x3d8] sm:$0xff]  ;;  %v4123_v14 = vld [vmem:[%s10572_s19 + $0x3e0] sm:$0xff]  ;;  %v4121_v34 = vld [vmem:[%s10572_s19 + $0x3d0] sm:$0xff] }
 0xa76   :  { %6388 = vmatpush1.bf16.msra.mxu0 %v6387_v40  ;;  %6484 = vmatpush1.bf16.msra.mxu1 %v6483_v1  ;;  %v4093_v40 = vld [vmem:[%s10572_s19 + $0x2f0] sm:$0xff]  ;;  %v4096_v1 = vld [vmem:[%s10572_s19 + $0x308] sm:$0xff] }
 0xa77   :  { %6390 = vmatprep.subr.bf16.mxu0 %v6389_v27  ;;  %6486 = vmatprep.subr.bf16.mxu1 %v6485_v15  ;;  %v4102_v27 = vld [vmem:[%s10572_s19 + $0x338] sm:$0xff]  ;;  %v6407_v15 = vpack.c.bf16 %v4091_v16, %v4087_v41  ;;  %v6503_v54 = vpack.c.bf16 %v4093_v40, %v4089_v4  ;;  %v6409_v29 = vpack.c.bf16 %v4100_v58, %v4096_v1  ;;  %v4132_v41 = vld [vmem:[%s10572_s19 + $0x428] sm:$0xff]  ;;  %v4127_v40 = vld [vmem:[%s10572_s19 + $0x400] sm:$0xff] }
 0xa78   :  { %v6505_v7 = vpack.c.bf16 %v4102_v27, %v4098_v11  ;;  %v4130_v16 = vld [vmem:[%s10572_s19 + $0x418] sm:$0xff]  ;;  %v4131_v1 = vld [vmem:[%s10572_s19 + $0x420] sm:$0xff]  ;;  %v4129_v27 = vld [vmem:[%s10572_s19 + $0x410] sm:$0xff] }
 0xa7a   :  { %6392 = vmatpush1.bf16.msra.mxu0 %v6391_v60  ;;  %6488 = vmatpush1.bf16.msra.mxu1 %v6487_v35  ;;  %v4101_v60 = vld [vmem:[%s10572_s19 + $0x330] sm:$0xff]  ;;  %v4104_v35 = vld [vmem:[%s10572_s19 + $0x348] sm:$0xff] }
 0xa7b   :  { %6394 = vmatprep.subr.bf16.mxu0 %v6393_v59  ;;  %6490 = vmatprep.subr.bf16.mxu1 %v6489_v44  ;;  %v4110_v59 = vld [vmem:[%s10572_s19 + $0x378] sm:$0xff]  ;;  %v6411_v44 = vpack.c.bf16 %v4099_v20, %v4095_v37  ;;  %v6507_v6 = vpack.c.bf16 %v4101_v60, %v4097_v5  ;;  %v6413_v25 = vpack.c.bf16 %v4108_v39, %v4104_v35  ;;  %v4140_v37 = vld [vmem:[%s10572_s19 + $0x468] sm:$0xff]  ;;  %v4135_v60 = vld [vmem:[%s10572_s19 + $0x440] sm:$0xff] }
 0xa7c   :  { %v6509_v12 = vpack.c.bf16 %v4110_v59, %v4106_v43  ;;  %v4138_v20 = vld [vmem:[%s10572_s19 + $0x458] sm:$0xff]  ;;  %v4139_v35 = vld [vmem:[%s10572_s19 + $0x460] sm:$0xff]  ;;  %v4137_v59 = vld [vmem:[%s10572_s19 + $0x450] sm:$0xff] }
 0xa7e   :  { %6396 = vmatpush1.bf16.msra.mxu0 %v6395_v19  ;;  %6492 = vmatpush1.bf16.msra.mxu1 %v6491_v57  ;;  %v4109_v19 = vld [vmem:[%s10572_s19 + $0x370] sm:$0xff]  ;;  %v4112_v57 = vld [vmem:[%s10572_s19 + $0x388] sm:$0xff] }
 0xa7f   :  { %6398 = vmatprep.subr.bf16.mxu0 %v6397_v32  ;;  %6494 = vmatprep.subr.bf16.mxu1 %v6493_v2  ;;  %v4118_v32 = vld [vmem:[%s10572_s19 + $0x3b8] sm:$0xff]  ;;  %v6415_v2 = vpack.c.bf16 %v4107_v9, %v4103_v63  ;;  %v6511_v50 = vpack.c.bf16 %v4109_v19, %v4105_v31  ;;  %v6417_v13 = vpack.c.bf16 %v4116_v21, %v4112_v57  ;;  %v4148_v63 = vld [vmem:[%s10572_s19 + $0x4a8] sm:$0xff]  ;;  %v4143_v19 = vld [vmem:[%s10572_s19 + $0x480] sm:$0xff] }
 0xa80   :  { %v6513_v53 = vpack.c.bf16 %v4118_v32, %v4114_v55  ;;  %v4146_v9 = vld [vmem:[%s10572_s19 + $0x498] sm:$0xff]  ;;  %v4147_v57 = vld [vmem:[%s10572_s19 + $0x4a0] sm:$0xff]  ;;  %v4149_v32 = vld [vmem:[%s10572_s19 + $0x4b0] sm:$0xff] }
 0xa82   :  { %6400 = vmatpush1.bf16.msra.mxu0 %v6399_v33  ;;  %6496 = vmatpush1.bf16.msra.mxu1 %v6495_v45  ;;  %v4117_v33 = vld [vmem:[%s10572_s19 + $0x3b0] sm:$0xff]  ;;  %v4120_v45 = vld [vmem:[%s10572_s19 + $0x3c8] sm:$0xff] }
 0xa83   :  { %6402 = vmatprep.subr.bf16.mxu0 %v6401_v62  ;;  %6498 = vmatprep.subr.bf16.mxu1 %v6497_v28  ;;  %v4126_v62 = vld [vmem:[%s10572_s19 + $0x3f8] sm:$0xff]  ;;  %v6419_v28 = vpack.c.bf16 %v4115_v49, %v4111_v38  ;;  %v6515_v47 = vpack.c.bf16 %v4117_v33, %v4113_v30  ;;  %v6421_v24 = vpack.c.bf16 %v4124_v42, %v4120_v45  ;;  %v4151_v30 = vld [vmem:[%s10572_s19 + $0x4c0] sm:$0xff] }
 0xa84   :  { %v6517_v0 = vpack.c.bf16 %v4126_v62, %v4122_v17  ;;  %v4154_v38 = vld [vmem:[%s10572_s19 + $0x4d8] sm:$0xff]  ;;  %v4155_v33 = vld [vmem:[%s10572_s19 + $0x4e0] sm:$0xff]  ;;  %v4153_v17 = vld [vmem:[%s10572_s19 + $0x4d0] sm:$0xff] }
 0xa85   :  { %v4158_v49 = vld [vmem:[%s10572_s19 + $0x4f8] sm:$0xff]  ;;  %v4157_v62 = vld [vmem:[%s10572_s19 + $0x4f0] sm:$0xff] }
 0xa86   :  { %6404 = vmatpush1.bf16.msra.mxu0 %v6403_v3  ;;  %6500 = vmatpush1.bf16.msra.mxu1 %v6499_v8  ;;  %v4125_v3 = vld [vmem:[%s10572_s19 + $0x3f0] sm:$0xff]  ;;  %v4128_v8 = vld [vmem:[%s10572_s19 + $0x408] sm:$0xff]  ;;  %v6533_v42 = vpack.c.bf16 %v4158_v49, %v4154_v38 }
 0xa87   :  { %6406 = vmatprep.subr.bf16.mxu0 %v6405_v52  ;;  %6502 = vmatprep.subr.bf16.mxu1 %v6501_v51  ;;  %v4134_v52 = vld [vmem:[%s10572_s19 + $0x438] sm:$0xff]  ;;  %v6423_v51 = vpack.c.bf16 %v4123_v14, %v4119_v56  ;;  %v6519_v4 = vpack.c.bf16 %v4125_v3, %v4121_v34  ;;  %v6425_v58 = vpack.c.bf16 %v4132_v41, %v4128_v8  ;;  %v4159_v34 = vld [vmem:[%s10572_s19 + $0x500] sm:$0xff]  ;;  %v4185_v38 = vld [vmem:[%s10572_s19 + $0x5d0] sm:$0xff] }
 0xa88   :  { %v6521_v11 = vpack.c.bf16 %v4134_v52, %v4130_v16  ;;  %v4162_v56 = vld [vmem:[%s10572_s19 + $0x518] sm:$0xff]  ;;  %v4163_v3 = vld [vmem:[%s10572_s19 + $0x520] sm:$0xff]  ;;  %v4161_v16 = vld [vmem:[%s10572_s19 + $0x510] sm:$0xff] }
 0xa89   :  { %v4166_v14 = vld [vmem:[%s10572_s19 + $0x538] sm:$0xff]  ;;  %v4165_v52 = vld [vmem:[%s10572_s19 + $0x530] sm:$0xff] }
 0xa8a   :  { %6408 = vmatpush1.bf16.msra.mxu0 %v6407_v15  ;;  %6504 = vmatpush1.bf16.msra.mxu1 %v6503_v54  ;;  %v4133_v15 = vld [vmem:[%s10572_s19 + $0x430] sm:$0xff]  ;;  %v4136_v54 = vld [vmem:[%s10572_s19 + $0x448] sm:$0xff]  ;;  %v6537_v41 = vpack.c.bf16 %v4166_v14, %v4162_v56 }
 0xa8b   :  { %6410 = vmatprep.subr.bf16.mxu0 %v6409_v29  ;;  %6506 = vmatprep.subr.bf16.mxu1 %v6505_v7  ;;  %v4142_v29 = vld [vmem:[%s10572_s19 + $0x478] sm:$0xff]  ;;  %v6427_v7 = vpack.c.bf16 %v4131_v1, %v4127_v40  ;;  %v6523_v5 = vpack.c.bf16 %v4133_v15, %v4129_v27  ;;  %v6429_v39 = vpack.c.bf16 %v4140_v37, %v4136_v54  ;;  %v4167_v27 = vld [vmem:[%s10572_s19 + $0x540] sm:$0xff]  ;;  %v4189_v49 = vld [vmem:[%s10572_s19 + $0x5f0] sm:$0xff] }
 0xa8c   :  { %v6525_v43 = vpack.c.bf16 %v4142_v29, %v4138_v20  ;;  %v4170_v40 = vld [vmem:[%s10572_s19 + $0x558] sm:$0xff]  ;;  %v4171_v15 = vld [vmem:[%s10572_s19 + $0x560] sm:$0xff]  ;;  %v4169_v20 = vld [vmem:[%s10572_s19 + $0x550] sm:$0xff] }
 0xa8d   :  { %v4174_v1 = vld [vmem:[%s10572_s19 + $0x578] sm:$0xff]  ;;  %v4173_v29 = vld [vmem:[%s10572_s19 + $0x570] sm:$0xff] }
 0xa8e   :  { %6412 = vmatpush1.bf16.msra.mxu0 %v6411_v44  ;;  %6508 = vmatpush1.bf16.msra.mxu1 %v6507_v6  ;;  %v4141_v44 = vld [vmem:[%s10572_s19 + $0x470] sm:$0xff]  ;;  %v4144_v6 = vld [vmem:[%s10572_s19 + $0x488] sm:$0xff]  ;;  %v6541_v37 = vpack.c.bf16 %v4174_v1, %v4170_v40 }
 0xa8f   :  { %6414 = vmatprep.subr.bf16.mxu0 %v6413_v25  ;;  %6510 = vmatprep.subr.bf16.mxu1 %v6509_v12  ;;  %v4150_v25 = vld [vmem:[%s10572_s19 + $0x4b8] sm:$0xff]  ;;  %v6431_v12 = vpack.c.bf16 %v4139_v35, %v4135_v60  ;;  %v6527_v31 = vpack.c.bf16 %v4141_v44, %v4137_v59  ;;  %v6433_v21 = vpack.c.bf16 %v4148_v63, %v4144_v6  ;;  %v4175_v59 = vld [vmem:[%s10572_s19 + $0x580] sm:$0xff] }
 0xa90   :  { %v6529_v55 = vpack.c.bf16 %v4150_v25, %v4146_v9  ;;  %v4178_v60 = vld [vmem:[%s10572_s19 + $0x598] sm:$0xff]  ;;  %v4179_v44 = vld [vmem:[%s10572_s19 + $0x5a0] sm:$0xff]  ;;  %v4177_v9 = vld [vmem:[%s10572_s19 + $0x590] sm:$0xff] }
 0xa91   :  { %v4182_v35 = vld [vmem:[%s10572_s19 + $0x5b8] sm:$0xff]  ;;  %v4181_v25 = vld [vmem:[%s10572_s19 + $0x5b0] sm:$0xff] }
 0xa92   :  { %6416 = vmatpush1.bf16.msra.mxu0 %v6415_v2  ;;  %6512 = vmatpush1.bf16.msra.mxu1 %v6511_v50  ;;  %v4152_v2 = vld [vmem:[%s10572_s19 + $0x4c8] sm:$0xff]  ;;  %v6545_v63 = vpack.c.bf16 %v4182_v35, %v4178_v60 }
 0xa93   :  { %6418 = vmatprep.subr.bf16.mxu0 %v6417_v13  ;;  %6514 = vmatprep.subr.bf16.mxu1 %v6513_v53  ;;  %v4156_v50 = vld [vmem:[%s10572_s19 + $0x4e8] sm:$0xff]  ;;  %v6435_v13 = vpack.c.bf16 %v4147_v57, %v4143_v19  ;;  %v4186_v19 = vld [vmem:[%s10572_s19 + $0x5d8] sm:$0xff] }
 0xa94   :  { %v6437_v45 = vpack.c.bf16 %v4156_v50, %v4152_v2  ;;  %v4190_v57 = vld [vmem:[%s10572_s19 + $0x5f8] sm:$0xff]  ;;  %v4187_v50 = vld [vmem:[%s10572_s19 + $0x5e0] sm:$0xff] }
 0xa95   :  { %v6549_v2 = vpack.c.bf16 %v4190_v57, %v4186_v19 }
 0xa96   :  { %6420 = vmatpush1.bf16.msra.mxu0 %v6419_v28  ;;  %6516 = vmatpush1.bf16.msra.mxu1 %v6515_v47  ;;  %v4160_v28 = vld [vmem:[%s10572_s19 + $0x508] sm:$0xff] }
 0xa97   :  { %6422 = vmatprep.subr.bf16.mxu0 %v6421_v24  ;;  %6518 = vmatprep.subr.bf16.mxu1 %v6517_v0  ;;  %v4164_v47 = vld [vmem:[%s10572_s19 + $0x528] sm:$0xff]  ;;  %v6439_v24 = vpack.c.bf16 %v4155_v33, %v4151_v30  ;;  %v6535_v0 = vpack.c.bf16 %v4157_v62, %v4153_v17  ;;  %v2309_v30 = vsel %vm309_vm1, %v9168_v18, -inf  ;;  %v2316_v33 = vsel %vm309_vm1, %v9176_v26, -inf }
 0xa98   :  { %v6441_v8 = vpack.c.bf16 %v4164_v47, %v4160_v28  ;;  %v2302_v17 = vsel %vm309_vm1, %v9263_v48, -inf  ;;  %v2317_v62 = vrot.slane %v2316_v33, 4 }
 0xa9a   :  { %6424 = vmatpush1.bf16.msra.mxu0 %v6423_v51  ;;  %6520 = vmatpush1.bf16.msra.mxu1 %v6519_v4  ;;  %v4168_v51 = vld [vmem:[%s10572_s19 + $0x548] sm:$0xff]  ;;  %v2318_v56 = vmax.f32 %v2316_v33, %v2317_v62  ;;  %v6630_v33 = vld [vmem:[%s10594_s4] sm:$0xff] }
 0xa9b   :  { %6426 = vmatprep.subr.bf16.mxu0 %v6425_v58  ;;  %6522 = vmatprep.subr.bf16.mxu1 %v6521_v11  ;;  %v4172_v4 = vld [vmem:[%s10572_s19 + $0x568] sm:$0xff]  ;;  %v6443_v58 = vpack.c.bf16 %v4163_v3, %v4159_v34  ;;  %v6539_v11 = vpack.c.bf16 %v4165_v52, %v4161_v16 }
 0xa9c   :  { %v6445_v54 = vpack.c.bf16 %v4172_v4, %v4168_v51  ;;  %v2319_v34 = vrot.slane %v2318_v56, 2  ;;  %v6631_v62 = vld [vmem:[%s10594_s4 + $0x8] sm:$0xff] }
 0xa9d   :  { %4732 = vmatmul.mubr.f32.vlgmr.msra.gmra.mrb[20].mxu0 %v9746_v61  ;;  %4874 = vmatmul.mubr.f32.vlgmr.msra.gmra.mrb[22].mxu1 %v9746_v61  ;;  %v4145_v61 = vld [vmem:[%s10572_s19 + $0x490] sm:$0xff] }
 0xa9e   :  { %6428 = vmatpush1.bf16.msra.mxu0 %v6427_v7  ;;  %6524 = vmatpush1.bf16.msra.mxu1 %v6523_v5  ;;  %v6531_v53 = vpack.c.bf16 %v4149_v32, %v4145_v61  ;;  %v4176_v7 = vld [vmem:[%s10572_s19 + $0x588] sm:$0xff]  ;;  %v4183_v61 = vld [vmem:[%s10572_s19 + $0x5c0] sm:$0xff]  ;;  %v2320_v16 = vmax.f32 %v2318_v56, %v2319_v34 }
 0xa9f   :  { %6430 = vmatprep.subr.bf16.mxu0 %v6429_v39  ;;  %6526 = vmatprep.subr.bf16.mxu1 %v6525_v43  ;;  %v4180_v5 = vld [vmem:[%s10572_s19 + $0x5a8] sm:$0xff]  ;;  %v6447_v39 = vpack.c.bf16 %v4171_v15, %v4167_v27  ;;  %v6543_v43 = vpack.c.bf16 %v4173_v29, %v4169_v20  ;;  %v4987_v56 = vld [vmem:[%s10574_s21] sm:$0xff] }
 0xaa0   :  { %4802 = vmatprep.mubr.f32.mxu0 %v6632_v36  ;;  %4944 = vmatprep.mubr.f32.mxu1 %v6632_v36  ;;  %v6449_v6 = vpack.c.bf16 %v4180_v5, %v4176_v7  ;;  %v2321_v40 = vrot.slane %v2320_v16, 1 }
 0xaa2   :  { %6432 = vmatpush1.bf16.msra.mxu0 %v6431_v12  ;;  %6528 = vmatpush1.bf16.msra.mxu1 %v6527_v31  ;;  %v4184_v12 = vld [vmem:[%s10572_s19 + $0x5c8] sm:$0xff]  ;;  %v2322_v27 = vmax.f32 %v2320_v16, %v2321_v40 }
 0xaa3   :  { %6434 = vmatprep.subr.bf16.mxu0 %v6433_v21  ;;  %6530 = vmatprep.subr.bf16.mxu1 %v6529_v55  ;;  %v4188_v31 = vld [vmem:[%s10572_s19 + $0x5e8] sm:$0xff]  ;;  %v6451_v21 = vpack.c.bf16 %v4179_v44, %v4175_v59  ;;  %v6547_v55 = vpack.c.bf16 %v4181_v25, %v4177_v9 }
 0xaa4   :  { %v6453_v32 = vpack.c.bf16 %v4188_v31, %v4184_v12  ;;  %v2326_v20 = vmax.f32 %v2322_v27, 1.0 }
 0xaa6   :  { %6436 = vmatpush1.bf16.msra.mxu0 %v6435_v13  ;;  %6532 = vmatpush1.bf16.msra.mxu1 %v6531_v53  ;;  %v6455_v13 = vpack.c.bf16 %v4187_v50, %v4183_v61  ;;  %v6551_v53 = vpack.c.bf16 %v4189_v49, %v4185_v38  ;;  %v4975_v61 = vld [vmem:[%s10573_s1] sm:$0xff]  ;;  %v4976_v38 = vld [vmem:[%s10573_s1 + $0x8] sm:$0xff] }
 0xaa7   :  { %6438 = vmatprep.subr.bf16.mxu0 %v6437_v45  ;;  %6534 = vmatprep.subr.bf16.mxu1 %v6533_v42  ;;  %v2295_v45 = vsel %vm309_vm1, %v9261_v46, -inf  ;;  %v2310_v42 = vrot.slane %v2309_v30, 4 }
 0xaa8   :  { %v2296_v28 = vrot.slane %v2295_v45, 4 }
 0xaa9   :  { %v2311_v47 = vmax.f32 %v2309_v30, %v2310_v42  ;;  %v4979_v30 = vcombine.high %v4975_v61, %v4975_v61 }
 0xaaa   :  { %6440 = vmatpush1.bf16.msra.mxu0 %v6439_v24  ;;  %6536 = vmatpush1.bf16.msra.mxu1 %v6535_v0  ;;  %v2297_v14 = vmax.f32 %v2295_v45, %v2296_v28 }
 0xaab   :  { %6442 = vmatprep.subr.bf16.mxu0 %v6441_v8  ;;  %6538 = vmatprep.subr.bf16.mxu1 %v6537_v41  ;;  %v2312_v0 = vrot.slane %v2311_v47, 2 }
 0xaac   :  { %v2298_v3 = vrot.slane %v2297_v14, 2 }
 0xaad   :  { %v2313_v41 = vmax.f32 %v2311_v47, %v2312_v0  ;;  %v4994_v0 = vpop.permute.xlu0 %4993 }
 0xaae   :  { %6444 = vmatpush1.bf16.msra.mxu0 %v6443_v58  ;;  %6540 = vmatpush1.bf16.msra.mxu1 %v6539_v11  ;;  %v2299_v52 = vmax.f32 %v2297_v14, %v2298_v3 }
 0xaaf   :  { %6446 = vmatprep.subr.bf16.mxu0 %v6445_v54  ;;  %6542 = vmatprep.subr.bf16.mxu1 %v6541_v37  ;;  %v2314_v4 = vrot.slane %v2313_v41, 1 }
 0xab0   :  { %v2300_v1 = vrot.slane %v2299_v52, 1 }
 0xab1   :  { %v2315_v11 = vmax.f32 %v2313_v41, %v2314_v4 }
 0xab2   :  { %6448 = vmatpush1.bf16.msra.mxu0 %v6447_v39  ;;  %6544 = vmatpush1.bf16.msra.mxu1 %v6543_v43  ;;  %v2301_v15 = vmax.f32 %v2299_v52, %v2300_v1 }
 0xab3   :  { %6450 = vmatprep.subr.bf16.mxu0 %v6449_v6  ;;  %6546 = vmatprep.subr.bf16.mxu1 %v6545_v63  ;;  %v2325_v37 = vmax.f32 %v2315_v11, 1.0 }
 0xab4   :  { %v2323_v29 = vmax.f32 %v2301_v15, 1.0 }
 0xab5   :  { %6612 = vrcp.f32 %v2325_v37 }
 0xab6   :  { %6452 = vmatpush1.bf16.msra.mxu0 %v6451_v21  ;;  %6548 = vmatpush1.bf16.msra.mxu1 %v6547_v55  ;;  %6614 = vrcp.f32 %v2326_v20 }
 0xab7   :  { %6454 = vmatprep.subr.bf16.mxu0 %v6453_v32  ;;  %6550 = vmatprep.subr.bf16.mxu1 %v6549_v2  ;;  %6616 = vrcp.f32 %v2323_v29 }
 0xaba   :  { %6456 = vmatpush1.bf16.msra.mxu0 %v6455_v13  ;;  %6552 = vmatpush1.bf16.msra.mxu1 %v6551_v53 }
 0xabd   :  { %4803 = vmatmul.mubr.f32.vlgmr.msra.gmra.mrb[20].mxu0 %v9890_v10  ;;  %4945 = vmatmul.mubr.f32.vlgmr.msra.gmra.mrb[22].mxu1 %v9890_v10  ;;  %v2303_v10 = vrot.slane %v2302_v17, 4 }
 0xabe   :  { %5083 = vmatprep.mubr.f32.mxu0 %v6632_v36  ;;  %5160 = vmatprep.mubr.f32.mxu1 %v6632_v36 }
 0xabf   :  { %v2304_v24 = vmax.f32 %v2302_v17, %v2303_v10  ;;  %v6613_v5 = vpop.eup %6612  ;;  %v4980_v17 = vcombine.high %v4976_v38, %v4976_v38 }
 0xac0   :  { %v6615_v60 = vpop.eup %6614 }
 0xac1   :  { %v2305_v8 = vrot.slane %v2304_v24, 2  ;;  %v6617_v35 = vpop.eup %6616 }
 0xac3   :  { %v2306_v51 = vmax.f32 %v2304_v24, %v2305_v8  ;;  %v4999_v8 = vpop.permute.xlu1 %4998 }
 0xac5   :  { %v2307_v58 = vrot.slane %v2306_v51, 1 }
 0xac7   :  { %v2308_v54 = vmax.f32 %v2306_v51, %v2307_v58 }
 0xac9   :  { %v2324_v7 = vmax.f32 %v2308_v54, 1.0 }
 0xacb   :  { %6618 = vrcp.f32 %v2324_v7 }
 0xad5   :  { %v6619_v59 = vpop.eup %6618 }
 0xb90   :  { %v4804_v39 = vpop.f32.mrb[20].mxu0  ;;  %v4946_v43 = vpop.f32.mrb[22].mxu1 }
 0xb91   :  { %v4955_v44 = vmul.f32 %v6617_v35, %v4804_v39  ;;  %v4957_v6 = vmul.f32 %v6613_v5, %v4946_v43  ;;  %v4806_v63 = vpop.f32.mrb[21].mxu0  ;;  %v4948_v9 = vpop.f32.mrb[23].mxu1 }
 0xb92   :  { %v4956_v25 = vmul.f32 %v6619_v59, %v4806_v63  ;;  %v4958_v12 = vmul.f32 %v6615_v60, %v4948_v9 }
 0xb93   :  { %6620 = vtanh.f32 %v4955_v44  ;;  %v5181_v44 = vld [vmem:[%s10575_s23] sm:$0xff] }
 0xb94   :  { %6622 = vtanh.f32 %v4957_v6  ;;  %v5186_v6 = vpop.permute.xlu0 %5185 }
 0xb95   :  { %6624 = vtanh.f32 %v4956_v25 }
 0xb96   :  { %6626 = vtanh.f32 %v4958_v12 }
 0xb9d   :  { %v6621_v31 = vpop.eup %6620 }
 0xb9e   :  { %v6623_v19 = vpop.eup %6622  ;;  %v4963_v57 = vmul.f32 %v6621_v31, %v2323_v29 }
 0xb9f   :  { %v6625_v21 = vpop.eup %6624  ;;  %v4965_v55 = vmul.f32 %v6623_v19, %v2325_v37 }
 0xba0   :  { %v6627_v32 = vpop.eup %6626  ;;  %v4967_v2 = vadd.f32 %v4963_v57, %v9261_v46  ;;  %v4964_v50 = vmul.f32 %v6625_v21, %v2324_v7 }
 0xba1   :  { %v4969_v49 = vadd.f32 %v4965_v55, %v9168_v18  ;;  %v4966_v13 = vmul.f32 %v6627_v32, %v2326_v20 }
 0xba2   :  { %v4968_v53 = vadd.f32 %v4964_v50, %v9263_v48  ;;  %v4971_v45 = vadd.f32 %v6630_v33, %v4967_v2 }
 0xba3   :  { %v4970_v42 = vadd.f32 %v4966_v13, %v9176_v26  ;;  %v4973_v28 = vadd.f32 %v6631_v62, %v4969_v49 }
 0xba4   :  { %v4972_v46 = vadd.f32 %v4968_v53, %v6963_v22  ;;  %v4983_v48 = vadd.f32 %v4975_v61, %v4971_v45  ;;  %v4988_v22 = vld [vmem:[%s10574_s21 + $0x8] sm:$0xff] }
 0xba5   :  { %v4974_v18 = vadd.f32 %v4970_v42, %v6967_v23  ;;  %v4985_v26 = vadd.f32 %v4976_v38, %v4973_v28 }
 0xba6   :  { %v4984_v10 = vadd.f32 %v4979_v30, %v4972_v46 }
 0xba7   :  { %v4986_v47 = vadd.f32 %v4980_v17, %v4974_v18 }
 0xba8   :  { %5389 = vmatprep.subr.msk.mxu0 %vm309_vm1, %v4984_v10 }
 0xba9   :  { %5393 = vmatprep.subr.msk.mxu1 %vm309_vm1, %v4986_v47  ;;  %5390 = vmatpush1.msk.msra.mxu0 %vm309_vm1, %v4983_v48 }
 0xbaa   :  { %5394 = vmatpush1.msk.msra.mxu1 %vm309_vm1, %v4985_v26  ;;  %5391 = vmatmul.mubr.msk.f32.vlgmr.msra.gmra.mrb[22].mxu0 %vm305_vm2, %v4987_v56 }
 0xbab   :  { %5395 = vmatmul.mubr.msk.f32.vlgmr.msra.gmra.mrb[24].mxu1 %vm305_vm2, %v4987_v56  ;;  %5089 = vmatprep.mubr.f32.mxu0 %v6632_v36 }
 0xbac   :  { %5166 = vmatprep.mubr.f32.mxu1 %v6632_v36 }
 0xbae   :  { %5392 = vmatmul.mubr.msk.f32.gmra.mrb[24].mxu0 %vm305_vm2, %v4988_v22 }
 0xbaf   :  { %5396 = vmatmul.mubr.msk.f32.gmra.mrb[26].mxu1 %vm305_vm2, %v4988_v22  ;;  %5255 = vmatprep.mubr.f32.mxu0 %v6632_v36 }
 0xbb0   :  { %5326 = vmatprep.mubr.f32.mxu1 %v6632_v36 }
 0xc7d   :  { %v5085_v23 = vpop.f32.mrb[22].mxu0 }
 0xc7e   :  { %v5162_v14 = vpop.f32.mrb[24].mxu1  ;;  %v5087_v24 = vpop.f32.mrb[23].mxu0  ;;  %v5086_v3 = vadd.f32 %v5085_v23, %v4994_v0 }
 0xc7f   :  { %v5164_v34 = vpop.f32.mrb[25].mxu1  ;;  %v5163_v41 = vadd.f32 %v5162_v14, %v4994_v0  ;;  %v5088_v16 = vadd.f32 %v5087_v24, %v4994_v0 }
 0xc80   :  { %v5165_v51 = vadd.f32 %v5164_v34, %v4994_v0  ;;  %v5173_v15 = vmax.f32 %v5086_v3, 0.0 }
 0xc81   :  { %v5091_v52 = vpop.f32.mrb[24].mxu0  ;;  %v5175_v37 = vmax.f32 %v5163_v41, 0.0  ;;  %v5174_v20 = vmax.f32 %v5088_v16, 0.0 }
 0xc82   :  { %v5092_v4 = vadd.f32 %v5091_v52, %v4999_v8  ;;  %v5168_v40 = vpop.f32.mrb[26].mxu1  ;;  %v5093_v1 = vpop.f32.mrb[25].mxu0  ;;  %v5176_v5 = vmax.f32 %v5165_v51, 0.0 }
 0xc83   :  { %v5169_v58 = vadd.f32 %v5168_v40, %v4999_v8  ;;  %v5094_v11 = vadd.f32 %v5093_v1, %v4999_v8  ;;  %v5170_v27 = vpop.f32.mrb[27].mxu1 }
 0xc84   :  { %v5177_v54 = vmax.f32 %v5092_v4, 0.0  ;;  %v5171_v36 = vadd.f32 %v5170_v27, %v4999_v8 }
 0xc85   :  { %v5179_v29 = vmax.f32 %v5169_v58, 0.0  ;;  %v5178_v7 = vmax.f32 %v5094_v11, 0.0 }
 0xc86   :  { %v6555_v60 = vpack.c.bf16 %v5177_v54, %v5173_v15  ;;  %v5180_v35 = vmax.f32 %v5171_v36, 0.0 }
 0xc87   :  { %v6559_v39 = vpack.c.bf16 %v5179_v29, %v5175_v37  ;;  %v6553_v43 = vpack.c.bf16 %v5178_v7, %v5174_v20 }
 0xc88   :  { %v6557_v59 = vpack.c.bf16 %v5180_v35, %v5176_v5 }
 0xc89   :  { %6554 = vmatprep.subr.bf16.mxu0 %v6553_v43 }
 0xc8a   :  { %6558 = vmatprep.subr.bf16.mxu1 %v6557_v59  ;;  %6556 = vmatpush1.bf16.msra.mxu0 %v6555_v60 }
 0xc8b   :  { %6560 = vmatpush1.bf16.msra.mxu1 %v6559_v39 }
 0xc8d   :  { %5397 = vmatmul.mubr.msk.f32.vlgmr.msra.gmra.mrb[26].mxu0 %vm3709_vm6, %v5181_v44 }
 0xc8e   :  { %5398 = vmatmul.mubr.msk.f32.vlgmr.msra.gmra.mrb[28].mxu1 %vm3709_vm6, %v5181_v44 }
 0xd60   :  { %v5257_v63 = vpop.f32.mrb[26].mxu0 }
 0xd61   :  { %v5258_v9 = vadd.f32 %v5257_v63, %v5186_v6  ;;  %v5328_v25 = vpop.f32.mrb[28].mxu1  ;;  %v5259_v12 = vpop.f32.mrb[27].mxu0 }
 0xd62   :  { %v5329_v31 = vadd.f32 %v5328_v25, %v5186_v6  ;;  %v5260_v19 = vadd.f32 %v5259_v12, %v5186_v6  ;;  %v5330_v57 = vpop.f32.mrb[29].mxu1 }
 0xd63   :  { %5333 = vst [vmem:[%s10576_s25] sm:$0xff] %v5258_v9  ;;  %v5331_v21 = vadd.f32 %v5330_v57, %v5186_v6 }
 0xd64   :  { %5335 = vst [vmem:[%s10576_s25 + $0x10] sm:$0xff] %v5329_v31  ;;  %5334 = vst [vmem:[%s10576_s25 + $0x8] sm:$0xff] %v5260_v19 }
 0xd65   :  { %5336 = vst [vmem:[%s10576_s25 + $0x18] sm:$0xff] %v5331_v21 }

</bundles_post_ra>
